<compile_context>
chip_gen: v7x
topology: tpu7x:2x2x1
jax: 0.10.0
libtpu: 0.0.40
codegen_flags: <defaults>
</compile_context>

<pallas_src>
import functools
import math

import jax
import jax.numpy as jnp
from jax import lax
from jax.experimental import pallas as pl
from jax.experimental.pallas import tpu as pltpu

# ----------------------------- config (cfg.*) -------------------------------
BATCH      = 4
T          = 8      # steps_dim
D_IN       = 16     # inputs_dim
H_ENC      = 32     # g0_encoder_dim
G_DIM      = 32     # g_dim
F_DIM      = 16     # factors_dim
CLIP_VAL   = 5.0
KEEP_PROB  = 1.0                      # dropout disabled (keep_prob < 1.0 paths skipped)
G0_PRIOR_MU       = 0.0
G0_PRIOR_LOGKAPPA = math.log(0.1)     # cfg.g0_prior_logkappa = 0.1, stored as log(.)
LOGVAR_MIN = math.log(1e-4)


# ------------------------------- kernel --------------------------------------
def lfads_kernel(
    # inputs
    xp_ref, noise_ref,
    wenc_in_ref, benc_in_ref,          # fused encoder input projection (2D, 192) / (1, 192)
    wrz_ref, wn_ref, bn_ref,           # fused encoder recurrence  (64,128) / (64,64) / (1,64)
    wg0_ref, bg0_ref,                  # fused g0 mean|logvar head (64,64) / (1,64)
    wgen_ref, bgen_ref,                # fused generator slab      (32,128) / (1,128)
    wfac_ref, bfac_ref,                # fc_factors
    w1_ref, b1_ref, w2_ref, b2_ref, w3_ref, b3_ref,   # recon_fc1/2/3
    # outputs
    factors_ref, states_ref, pred_ref, g0mean_ref, g0logvar_ref, kl_ref,
    # scratch (VMEM): per-gate encoder input projections, (T*BP, 2H) each
    gi_r, gi_z, gi_n,
    *, n_steps, bp, b_real, h_enc, g_dim, clip_val,
):
    H2 = 2 * h_enc          # fused encoder state width (64)
    G = g_dim               # generator width (32)

    # ---- encoder input projections: one fused dot over all T*BP rows -------
    # row (t, b) of xp is [x[b, t], x[b, T-1-t]]; columns are [r | z | n] with
    # each gate block laid out as [fwd(32) | bwd(32)].  Time-invariant biases
    # (b_ih + b_hh for r/z, b_ih for n) are folded in.  Off the critical path.
    gi_all = (jnp.dot(xp_ref[...], wenc_in_ref[...],
                      preferred_element_type=jnp.float32) + benc_in_ref[...])
    gi_r[...] = gi_all[:, 0:H2]
    gi_z[...] = gi_all[:, H2:2 * H2]
    gi_n[...] = gi_all[:, 2 * H2:3 * H2]

    # hot-path recurrence weights (lane-fused slabs, few vregs)
    w_rz = wrz_ref[...]                 # (64, 128): [r | z], block-diag fwd/bwd
    w_n = wn_ref[...]                   # (64, 64):  n-gate, block-diag fwd/bwd
    b_n = bn_ref[...]                   # (1, 64):   [b_hh_n fwd | bwd]

    # ------------------------------ encode() --------------------------------
    # fused fwd/bwd recurrence: carry e = [ef || eb]; 2 MXU pushes per step.
    def enc_step(t, e):
        off = pl.multiple_of(t * bp, bp)            # bp = 8 -> sublane-aligned
        rz = jnp.dot(e, w_rz, preferred_element_type=jnp.float32)   # (bp, 128)
        nh = jnp.dot(e, w_n, preferred_element_type=jnp.float32)    # (bp, 64)
        r = jax.nn.sigmoid(gi_r[pl.ds(off, bp), :] + rz[:, :H2])
        z = jax.nn.sigmoid(gi_z[pl.ds(off, bp), :] + rz[:, H2:])
        n = jnp.tanh(gi_n[pl.ds(off, bp), :] + r * (nh + b_n))
        return jnp.minimum((1.0 - z) * n + z * e, clip_val)         # clamp(max=clip)

    e0 = jnp.zeros((bp, H2), jnp.float32)
    e = lax.fori_loop(0, n_steps, enc_step, e0, unroll=True)

    # ---- g0 posterior: mean & logvar heads lane-fused into one dot ---------
    g0 = jnp.dot(e, wg0_ref[...], preferred_element_type=jnp.float32) + bg0_ref[...]
    g0_mean = g0[:, :G]
    g0_logvar = jnp.maximum(g0[:, G:], LOGVAR_MIN)
    g0mean_ref[...] = g0_mean
    g0logvar_ref[...] = g0_logvar
    g = noise_ref[...] * jnp.exp(0.5 * g0_logvar) + g0_mean          # reparam sample

    # KLCostGaussian(post_mu, post_lv, prior_mu, prior_lv) / batch_size,
    # masked to the real (unpadded) batch rows.
    kl_elem = (0.5 * (G0_PRIOR_LOGKAPPA - g0_logvar)
               + (jnp.exp(g0_logvar) + (g0_mean - G0_PRIOR_MU) ** 2)
               * (0.5 / math.exp(G0_PRIOR_LOGKAPPA)) - 0.5)
    rows = lax.broadcasted_iota(jnp.int32, (bp, G), 0)
    kl_elem = jnp.where(rows < b_real, kl_elem, 0.0)
    kl_ref[0, 0] = jnp.sum(kl_elem) * (1.0 / b_real)

    # ------------------------------ generate() ------------------------------
    # TODO(synk): the controller path (gru_controller / fc_umean / fc_ulogvar /
    # efcon / ebcon / u sampling + its KL) is referenced in generate() but never
    # constructed in __init__; the generator GRU here is driven by the factor
    # feedback f, matching gru_generator's declared input_size=factors_dim.
    #
    # Single (bp, 32) x (32, 128) MXU push per step: the slab holds
    # [Wfac@Wih_r + Whh_r | Wfac@Wih_z + Whh_z | Wfac@Wih_n | Whh_n] with the
    # matching fused biases.
    w_gen = wgen_ref[...]
    b_gen = bgen_ref[...]

    def gen_step(t, g_t):
        gates = jnp.dot(g_t, w_gen, preferred_element_type=jnp.float32) + b_gen
        r = jax.nn.sigmoid(gates[:, :G])
        z = jax.nn.sigmoid(gates[:, G:2 * G])
        n = jnp.tanh(gates[:, 2 * G:3 * G] + r * gates[:, 3 * G:])
        g_new = jnp.clip((1.0 - z) * n + z * g_t, -clip_val, clip_val)
        off = pl.multiple_of(t * bp, bp)
        states_ref[pl.ds(off, bp), :] = g_new       # aligned whole-tile store
        return g_new

    lax.fori_loop(0, n_steps, gen_step, g, unroll=True)

    # ---- batched factor / reconstruction readout (T*BP rows at once) -------
    states_all = states_ref[...]                                     # (T*BP, G)
    factors_all = (jnp.dot(states_all, wfac_ref[...], preferred_element_type=jnp.float32)
                   + bfac_ref[...])
    factors_ref[...] = factors_all
    h1 = jnp.maximum(jnp.dot(factors_all, w1_ref[...], preferred_element_type=jnp.float32)
                     + b1_ref[...], 0.0)
    h2 = jnp.maximum(jnp.dot(h1, w2_ref[...], preferred_element_type=jnp.float32)
                     + b2_ref[...], 0.0)
    pred_ref[...] = jnp.dot(h2, w3_ref[...], preferred_element_type=jnp.float32) + b3_ref[...]


# --------------------- param layout prep (one-time, hoisted) ------------------
def _split_gru(p, hid):
    """PyTorch GRUCell params -> per-gate transposed slabs (gate order r, z, n)."""
    wih = [p["w_ih"][k * hid:(k + 1) * hid].T for k in range(3)]   # each (in, hid)
    whh = [p["w_hh"][k * hid:(k + 1) * hid].T for k in range(3)]   # each (hid, hid)
    bih = [p["b_ih"][k * hid:(k + 1) * hid] for k in range(3)]
    bhh = [p["b_hh"][k * hid:(k + 1) * hid] for k in range(3)]
    return wih, whh, bih, bhh


def _prepare_kernel_args(params):
    """One-time packing of all weights into lane-fused slabs (call once, reuse)."""
    f32 = jnp.float32

    wf_ih, wf_hh, bf_ih, bf_hh = _split_gru(params["enc_f"], H_ENC)
    wb_ih, wb_hh, bb_ih, bb_hh = _split_gru(params["enc_b"], H_ENC)

    zD = jnp.zeros((D_IN, H_ENC), f32)
    zH = jnp.zeros((H_ENC, H_ENC), f32)

    def blk(a, b, z):                              # block-diag [[a, 0], [0, b]]
        return jnp.concatenate([jnp.concatenate([a, z], axis=1),
                                jnp.concatenate([z, b], axis=1)], axis=0)

    def cat_row(a, b):
        return jnp.concatenate([a, b]).reshape(1, -1)

    # fused encoder input projection: rows [x_t | x_{T-1-t}] -> cols [r | z | n]
    w_enc_in = jnp.concatenate([blk(wf_ih[0], wb_ih[0], zD),
                                blk(wf_ih[1], wb_ih[1], zD),
                                blk(wf_ih[2], wb_ih[2], zD)], axis=1)       # (2D, 192)
    b_enc_in = jnp.concatenate([cat_row(bf_ih[0] + bf_hh[0], bb_ih[0] + bb_hh[0]),
                                cat_row(bf_ih[1] + bf_hh[1], bb_ih[1] + bb_hh[1]),
                                cat_row(bf_ih[2], bb_ih[2])], axis=1)       # (1, 192)

    # fused encoder recurrence: state e = [ef | eb]; r+z lane-fused, n separate
    w_enc_rz = jnp.concatenate([blk(wf_hh[0], wb_hh[0], zH),
                                blk(wf_hh[1], wb_hh[1], zH)], axis=1)       # (64, 128)
    w_enc_n = blk(wf_hh[2], wb_hh[2], zH)                                   # (64, 64)
    b_enc_n = cat_row(bf_hh[2], bb_hh[2])                                   # (1, 64)

    # g0 mean / logvar heads lane-fused into one dot on the fused [ef|eb] state
    w_g0 = jnp.concatenate([params["g0mean"]["w"].T,
                            params["g0logvar"]["w"].T], axis=1)             # (64, 64)
    b_g0 = cat_row(params["g0mean"]["b"], params["g0logvar"]["b"])          # (1, 64)

    # generator: fold fc_factors into the input side, pre-add input/hidden
    # weights for r/z, lane-fuse everything into one (G, 4G) = (32, 128) slab.
    wfac = params["factors"]["w"].T                                         # (G, F)
    bfac = params["factors"]["b"].reshape(1, -1)                            # (1, F)
    wg_ih, wg_hh, bg_ih, bg_hh = _split_gru(params["gen"], G_DIM)
    w_gen = jnp.concatenate([wfac @ wg_ih[0] + wg_hh[0],
                             wfac @ wg_ih[1] + wg_hh[1],
                             wfac @ wg_ih[2],
                             wg_hh[2]], axis=1)                             # (32, 128)
    b_gen = jnp.concatenate([
        (bfac @ wg_ih[0]).reshape(-1) + bg_ih[0] + bg_hh[0],
        (bfac @ wg_ih[1]).reshape(-1) + bg_ih[1] + bg_hh[1],
        (bfac @ wg_ih[2]).reshape(-1) + bg_ih[2],
        bg_hh[2]]).reshape(1, -1)                                           # (1, 128)

    def lin(name):
        return params[name]["w"].T, params[name]["b"].reshape(1, -1)

    w1, b1 = lin("recon1")
    w2, b2 = lin("recon2")
    w3, b3 = lin("recon3")

    args = (w_enc_in, b_enc_in, w_enc_rz, w_enc_n, b_enc_n,
            w_g0, b_g0, w_gen, b_gen,
            wfac, bfac, w1, b1, w2, b2, w3, b3)
    return tuple(a.astype(f32) for a in args)


# ------------------------------- wrapper --------------------------------------
@jax.jit
def lfads_forward_packed(x, noise, kargs):
    """x: (B, T, D_in) f32, noise: (B, G) f32, kargs: _prepare_kernel_args(params).
    Returns (factors (B,T,F), gen_states (B,T,G), predicted (B,T,D_in),
             g0_mean (B,G), g0_logvar (B,G), kl_loss scalar)."""
    B, T_, D = x.shape
    bp = max(8, -(-B // 8) * 8)                    # pad batch to a sublane multiple
    pad = bp - B
    x_p = jnp.pad(x.astype(jnp.float32), ((0, pad), (0, 0), (0, 0)))
    noise_p = jnp.pad(noise.astype(jnp.float32), ((0, pad), (0, 0)))

    x_tm = jnp.transpose(x_p, (1, 0, 2))                           # (T, BP, D) time-major
    # row (t, b) = [x[b, t], x[b, T-1-t]] so fwd/bwd encoders share one offset
    x_pair = jnp.concatenate([x_tm, x_tm[::-1]], axis=-1).reshape(T_ * bp, 2 * D)

    vmem = pl.BlockSpec(memory_space=pltpu.MemorySpace.VMEM)
    smem = pl.BlockSpec(memory_space=pltpu.MemorySpace.SMEM)

    kernel = functools.partial(lfads_kernel, n_steps=T_, bp=bp, b_real=B,
                               h_enc=H_ENC, g_dim=G_DIM, clip_val=CLIP_VAL)

    outs = pl.pallas_call(
        kernel,
        out_shape=(
            jax.ShapeDtypeStruct((T_ * bp, F_DIM), jnp.float32),
            jax.ShapeDtypeStruct((T_ * bp, G_DIM), jnp.float32),
            jax.ShapeDtypeStruct((T_ * bp, D), jnp.float32),
            jax.ShapeDtypeStruct((bp, G_DIM), jnp.float32),
            jax.ShapeDtypeStruct((bp, G_DIM), jnp.float32),
            jax.ShapeDtypeStruct((1, 1), jnp.float32),
        ),
        in_specs=[vmem] * (2 + len(kargs)),
        out_specs=(vmem, vmem, vmem, vmem, vmem, smem),
        scratch_shapes=[pltpu.VMEM((T_ * bp, 2 * H_ENC), jnp.float32)] * 3,
    )(x_pair, noise_p, *kargs)

    factors_f, states_f, pred_f, g0_mean, g0_logvar, kl = outs

    def to_btd(a, d):
        return jnp.transpose(a.reshape(T_, bp, d), (1, 0, 2))[:B]

    return (to_btd(factors_f, F_DIM), to_btd(states_f, G_DIM), to_btd(pred_f, D),
            g0_mean[:B], g0_logvar[:B], kl[0, 0])


def lfads_forward(x, noise, params):
    """Convenience wrapper (packs params per call; prefer packing once)."""
    return lfads_forward_packed(x, noise, _prepare_kernel_args(params))


# ---------------------- pure-JAX reference (module semantics) ------------------
def lfads_reference(x, noise, params):
    B = x.shape[0]

    def gru_cell(xx, h, p, hid):
        gi = xx @ p["w_ih"].T + p["b_ih"]
        gh = h @ p["w_hh"].T + p["b_hh"]
        r = jax.nn.sigmoid(gi[:, :hid] + gh[:, :hid])
        z = jax.nn.sigmoid(gi[:, hid:2 * hid] + gh[:, hid:2 * hid])
        n = jnp.tanh(gi[:, 2 * hid:] + r * gh[:, 2 * hid:])
        return (1.0 - z) * n + z * h

    def lin(name, v):
        return v @ params[name]["w"].T + params[name]["b"]

    ef = jnp.zeros((B, H_ENC), jnp.float32)
    eb = jnp.zeros((B, H_ENC), jnp.float32)
    for t in range(1, T + 1):
        ef = jnp.minimum(gru_cell(x[:, t - 1], ef, params["enc_f"], H_ENC), CLIP_VAL)
        eb = jnp.minimum(gru_cell(x[:, -t], eb, params["enc_b"], H_ENC), CLIP_VAL)
    egen = jnp.concatenate([ef, eb], axis=1)
    g0_mean = lin("g0mean", egen)
    g0_logvar = jnp.maximum(lin("g0logvar", egen), LOGVAR_MIN)
    g = noise * jnp.exp(0.5 * g0_logvar) + g0_mean
    kl = jnp.sum(0.5 * (G0_PRIOR_LOGKAPPA - g0_logvar)
                 + (jnp.exp(g0_logvar) + (g0_mean - G0_PRIOR_MU) ** 2)
                 / (2.0 * math.exp(G0_PRIOR_LOGKAPPA)) - 0.5) / B
    f = lin("factors", g)

    factors, states, preds = [], [], []
    for _ in range(T):
        g = jnp.clip(gru_cell(f, g, params["gen"], G_DIM), -CLIP_VAL, CLIP_VAL)
        f = lin("factors", g)
        h1 = jax.nn.relu(lin("recon1", f))
        h2 = jax.nn.relu(lin("recon2", h1))
        out = lin("recon3", h2)
        factors.append(f); states.append(g); preds.append(out)
    return (jnp.stack(factors, 1), jnp.stack(states, 1), jnp.stack(preds, 1),
            g0_mean, g0_logvar, kl)


# -------------------------- deterministic params ------------------------------
def init_params(key):
    ks = iter(jax.random.split(key, 64))

    def normal(shape, std):
        return jax.random.normal(next(ks), shape, jnp.float32) * std

    def uniform(shape, bound):
        return jax.random.uniform(next(ks), shape, jnp.float32, -bound, bound)

    def gru(in_dim, hid):
        return dict(w_ih=normal((3 * hid, in_dim), in_dim ** -0.5),
                    w_hh=normal((3 * hid, hid), hid ** -0.5),
                    b_ih=uniform((3 * hid,), hid ** -0.5),
                    b_hh=uniform((3 * hid,), hid ** -0.5))

    def linear(in_dim, out_dim, normalize_rows=False):
        w = normal((out_dim, in_dim), in_dim ** -0.5)
        if normalize_rows:   # F.normalize(fc_factors.weight, dim=1)
            w = w / jnp.sqrt(jnp.sum(w * w, axis=1, keepdims=True))
        b = uniform((out_dim,), in_dim ** -0.5)
        return dict(w=w, b=b)

    return dict(enc_f=gru(D_IN, H_ENC),
                enc_b=gru(D_IN, H_ENC),
                gen=gru(F_DIM, G_DIM),
                g0mean=linear(2 * H_ENC, G_DIM),
                g0logvar=linear(2 * H_ENC, G_DIM),
                factors=linear(G_DIM, F_DIM, normalize_rows=True),
                recon1=linear(F_DIM, D_IN),
                recon2=linear(D_IN, D_IN),
                recon3=linear(D_IN, D_IN))


if __name__ == "__main__":
    key = jax.random.PRNGKey(0)
    k_x, k_n, k_p = jax.random.split(key, 3)

    x = jax.random.normal(k_x, (BATCH, T, D_IN), jnp.float32)
    noise = jax.random.normal(k_n, (BATCH, G_DIM), jnp.float32)   # reparam randn
    params = init_params(k_p)

    # pack params once (hoisted out of the per-call path), call the jitted wrapper
    kargs = _prepare_kernel_args(params)
    outs = jax.block_until_ready(lfads_forward_packed(x, noise, kargs))
    factors, states, predicted, g0_mean, g0_logvar, kl = outs

    assert factors.shape == (BATCH, T, F_DIM)
    assert states.shape == (BATCH, T, G_DIM)
    assert predicted.shape == (BATCH, T, D_IN)
    assert g0_mean.shape == (BATCH, G_DIM)
    assert g0_logvar.shape == (BATCH, G_DIM)
    assert jnp.all(jnp.isfinite(factors)) and jnp.all(jnp.isfinite(predicted))
    assert jnp.isfinite(kl)

    # correctness vs. pure-JAX reference of the module forward
    ref = lfads_reference(x, noise, params)
    for got, want in zip((factors, states, predicted, g0_mean, g0_logvar,
                          jnp.asarray(kl)), ref):
        assert jnp.allclose(got, want, rtol=1e-3, atol=1e-3), "mismatch vs reference"

    print("KERNEL_OK")
</pallas_src>

<mosaic_0001>
module attributes {stable_mosaic.version = 11 : i64} {
  func.func @lfads_kernel(%arg0: memref<64x32xf32, #tpu.memory_space<vmem>>, %arg1: memref<8x32xf32, #tpu.memory_space<vmem>>, %arg2: memref<32x192xf32, #tpu.memory_space<vmem>>, %arg3: memref<1x192xf32, #tpu.memory_space<vmem>>, %arg4: memref<64x128xf32, #tpu.memory_space<vmem>>, %arg5: memref<64x64xf32, #tpu.memory_space<vmem>>, %arg6: memref<1x64xf32, #tpu.memory_space<vmem>>, %arg7: memref<64x64xf32, #tpu.memory_space<vmem>>, %arg8: memref<1x64xf32, #tpu.memory_space<vmem>>, %arg9: memref<32x128xf32, #tpu.memory_space<vmem>>, %arg10: memref<1x128xf32, #tpu.memory_space<vmem>>, %arg11: memref<32x16xf32, #tpu.memory_space<vmem>>, %arg12: memref<1x16xf32, #tpu.memory_space<vmem>>, %arg13: memref<16x16xf32, #tpu.memory_space<vmem>>, %arg14: memref<1x16xf32, #tpu.memory_space<vmem>>, %arg15: memref<16x16xf32, #tpu.memory_space<vmem>>, %arg16: memref<1x16xf32, #tpu.memory_space<vmem>>, %arg17: memref<16x16xf32, #tpu.memory_space<vmem>>, %arg18: memref<1x16xf32, #tpu.memory_space<vmem>>, %arg19: memref<64x16xf32, #tpu.memory_space<vmem>>, %arg20: memref<64x32xf32, #tpu.memory_space<vmem>>, %arg21: memref<64x16xf32, #tpu.memory_space<vmem>>, %arg22: memref<8x32xf32, #tpu.memory_space<vmem>>, %arg23: memref<8x32xf32, #tpu.memory_space<vmem>>, %arg24: memref<1x1xf32, #tpu.memory_space<smem>>, %arg25: memref<64x64xf32, #tpu.memory_space<vmem>>, %arg26: memref<64x64xf32, #tpu.memory_space<vmem>>, %arg27: memref<64x64xf32, #tpu.memory_space<vmem>>) attributes {dimension_semantics = [], scalar_prefetch = 0 : i64, scratch_operands = 3 : i64, tpu.core_type = #tpu.core_type<tc>} {
    %c0 = arith.constant 0 : index
    %c0_0 = arith.constant 0 : index
    %0 = vector.load %arg0[%c0, %c0_0] : memref<64x32xf32, #tpu.memory_space<vmem>>, vector<64x32xf32>
    %c0_1 = arith.constant 0 : index
    %c0_2 = arith.constant 0 : index
    %1 = vector.load %arg2[%c0_1, %c0_2] : memref<32x192xf32, #tpu.memory_space<vmem>>, vector<32x192xf32>
    %cst = arith.constant dense<0.000000e+00> : vector<64x192xf32>
    %2 = tpu.matmul %0, %1, %cst {dimension_numbers = #tpu.dot_dimension_numbers<[1], [0], [0], [1], [0, 0, 1, 1], [], []>} : vector<64x32xf32>, vector<32x192xf32>, vector<64x192xf32> -> vector<64x192xf32>
    %c0_3 = arith.constant 0 : index
    %c0_4 = arith.constant 0 : index
    %3 = vector.load %arg3[%c0_3, %c0_4] : memref<1x192xf32, #tpu.memory_space<vmem>>, vector<1x192xf32>
    %4 = vector.broadcast %3 : vector<1x192xf32> to vector<64x192xf32>
    %5 = arith.addf %2, %4 : vector<64x192xf32>
    %6 = vector.extract_strided_slice %5 {offsets = [0, 0], sizes = [64, 64], strides = [1, 1]} : vector<64x192xf32> to vector<64x64xf32>
    %c0_5 = arith.constant 0 : index
    %c0_6 = arith.constant 0 : index
    %7 = vector.load %arg25[%c0_5, %c0_6] : memref<64x64xf32, #tpu.memory_space<vmem>>, vector<64x64xf32>
    tpu.vector_store %arg25[%c0_5, %c0_6], %6 {strides = array<i32>} : memref<64x64xf32, #tpu.memory_space<vmem>>, vector<64x64xf32>,
    %8 = vector.extract_strided_slice %5 {offsets = [0, 64], sizes = [64, 64], strides = [1, 1]} : vector<64x192xf32> to vector<64x64xf32>
    %c0_7 = arith.constant 0 : index
    %c0_8 = arith.constant 0 : index
    %9 = vector.load %arg26[%c0_7, %c0_8] : memref<64x64xf32, #tpu.memory_space<vmem>>, vector<64x64xf32>
    tpu.vector_store %arg26[%c0_7, %c0_8], %8 {strides = array<i32>} : memref<64x64xf32, #tpu.memory_space<vmem>>, vector<64x64xf32>,
    %10 = vector.extract_strided_slice %5 {offsets = [0, 128], sizes = [64, 64], strides = [1, 1]} : vector<64x192xf32> to vector<64x64xf32>
    %c0_9 = arith.constant 0 : index
    %c0_10 = arith.constant 0 : index
    %11 = vector.load %arg27[%c0_9, %c0_10] : memref<64x64xf32, #tpu.memory_space<vmem>>, vector<64x64xf32>
    tpu.vector_store %arg27[%c0_9, %c0_10], %10 {strides = array<i32>} : memref<64x64xf32, #tpu.memory_space<vmem>>, vector<64x64xf32>,
    %c0_11 = arith.constant 0 : index
    %c0_12 = arith.constant 0 : index
    %12 = vector.load %arg4[%c0_11, %c0_12] : memref<64x128xf32, #tpu.memory_space<vmem>>, vector<64x128xf32>
    %c0_13 = arith.constant 0 : index
    %c0_14 = arith.constant 0 : index
    %13 = vector.load %arg5[%c0_13, %c0_14] : memref<64x64xf32, #tpu.memory_space<vmem>>, vector<64x64xf32>
    %c0_15 = arith.constant 0 : index
    %c0_16 = arith.constant 0 : index
    %14 = vector.load %arg6[%c0_15, %c0_16] : memref<1x64xf32, #tpu.memory_space<vmem>>, vector<1x64xf32>
    %cst_17 = arith.constant 0.000000e+00 : f32
    %15 = vector.broadcast %cst_17 : f32 to vector<8x64xf32>
    %c0_i32 = arith.constant 0 : i32
    %c8_i32 = arith.constant 8 : i32
    %16 = arith.muli %c0_i32, %c8_i32 : i32
    %17 = tpu.assume_multiple %16, 8 : i32
    %cst_18 = arith.constant dense<0.000000e+00> : vector<8x128xf32>
    %18 = tpu.matmul %15, %12, %cst_18 {dimension_numbers = #tpu.dot_dimension_numbers<[1], [0], [0], [1], [0, 0, 1, 1], [], []>} : vector<8x64xf32>, vector<64x128xf32>, vector<8x128xf32> -> vector<8x128xf32>
    %cst_19 = arith.constant dense<0.000000e+00> : vector<8x64xf32>
    %19 = tpu.matmul %15, %13, %cst_19 {dimension_numbers = #tpu.dot_dimension_numbers<[1], [0], [0], [1], [0, 0, 1, 1], [], []>} : vector<8x64xf32>, vector<64x64xf32>, vector<8x64xf32> -> vector<8x64xf32>
    %20 = arith.index_cast %17 : i32 to index
    %c0_20 = arith.constant 0 : index
    %21 = vector.load %arg25[%20, %c0_20] : memref<64x64xf32, #tpu.memory_space<vmem>>, vector<8x64xf32>
    %22 = vector.extract_strided_slice %18 {offsets = [0, 0], sizes = [8, 64], strides = [1, 1]} : vector<8x128xf32> to vector<8x64xf32>
    %23 = arith.addf %21, %22 : vector<8x64xf32>
    %24 = arith.negf %23 : vector<8x64xf32>
    %25 = math.exp %24 : vector<8x64xf32>
    %cst_21 = arith.constant 1.000000e+00 : f32
    %26 = vector.broadcast %cst_21 : f32 to vector<8x64xf32>
    %27 = arith.addf %26, %25 : vector<8x64xf32>
    %28 = arith.divf %26, %27 : vector<8x64xf32>
    %29 = arith.index_cast %17 : i32 to index
    %c0_22 = arith.constant 0 : index
    %30 = vector.load %arg26[%29, %c0_22] : memref<64x64xf32, #tpu.memory_space<vmem>>, vector<8x64xf32>
    %31 = vector.extract_strided_slice %18 {offsets = [0, 64], sizes = [8, 64], strides = [1, 1]} : vector<8x128xf32> to vector<8x64xf32>
    %32 = arith.addf %30, %31 : vector<8x64xf32>
    %33 = arith.negf %32 : vector<8x64xf32>
    %34 = math.exp %33 : vector<8x64xf32>
    %cst_23 = arith.constant 1.000000e+00 : f32
    %35 = vector.broadcast %cst_23 : f32 to vector<8x64xf32>
    %36 = arith.addf %35, %34 : vector<8x64xf32>
    %37 = arith.divf %35, %36 : vector<8x64xf32>
    %38 = arith.index_cast %17 : i32 to index
    %c0_24 = arith.constant 0 : index
    %39 = vector.load %arg27[%38, %c0_24] : memref<64x64xf32, #tpu.memory_space<vmem>>, vector<8x64xf32>
    %40 = vector.broadcast %14 : vector<1x64xf32> to vector<8x64xf32>
    %41 = arith.addf %19, %40 : vector<8x64xf32>
    %42 = arith.mulf %28, %41 : vector<8x64xf32>
    %43 = arith.addf %39, %42 : vector<8x64xf32>
    %44 = math.tanh %43 : vector<8x64xf32>
    %cst_25 = arith.constant 1.000000e+00 : f32
    %45 = vector.broadcast %cst_25 : f32 to vector<8x64xf32>
    %46 = arith.subf %45, %37 : vector<8x64xf32>
    %47 = arith.mulf %46, %44 : vector<8x64xf32>
    %48 = arith.mulf %37, %15 : vector<8x64xf32>
    %49 = arith.addf %47, %48 : vector<8x64xf32>
    %cst_26 = arith.constant 5.000000e+00 : f32
    %50 = vector.broadcast %cst_26 : f32 to vector<8x64xf32>
    %51 = arith.minimumf %49, %50 : vector<8x64xf32>
    %c1_i32 = arith.constant 1 : i32
    %c8_i32_27 = arith.constant 8 : i32
    %52 = arith.muli %c1_i32, %c8_i32_27 : i32
    %53 = tpu.assume_multiple %52, 8 : i32
    %cst_28 = arith.constant dense<0.000000e+00> : vector<8x128xf32>
    %54 = tpu.matmul %51, %12, %cst_28 {dimension_numbers = #tpu.dot_dimension_numbers<[1], [0], [0], [1], [0, 0, 1, 1], [], []>} : vector<8x64xf32>, vector<64x128xf32>, vector<8x128xf32> -> vector<8x128xf32>
    %cst_29 = arith.constant dense<0.000000e+00> : vector<8x64xf32>
    %55 = tpu.matmul %51, %13, %cst_29 {dimension_numbers = #tpu.dot_dimension_numbers<[1], [0], [0], [1], [0, 0, 1, 1], [], []>} : vector<8x64xf32>, vector<64x64xf32>, vector<8x64xf32> -> vector<8x64xf32>
    %56 = arith.index_cast %53 : i32 to index
    %c0_30 = arith.constant 0 : index
    %57 = vector.load %arg25[%56, %c0_30] : memref<64x64xf32, #tpu.memory_space<vmem>>, vector<8x64xf32>
    %58 = vector.extract_strided_slice %54 {offsets = [0, 0], sizes = [8, 64], strides = [1, 1]} : vector<8x128xf32> to vector<8x64xf32>
    %59 = arith.addf %57, %58 : vector<8x64xf32>
    %60 = arith.negf %59 : vector<8x64xf32>
    %61 = math.exp %60 : vector<8x64xf32>
    %cst_31 = arith.constant 1.000000e+00 : f32
    %62 = vector.broadcast %cst_31 : f32 to vector<8x64xf32>
    %63 = arith.addf %62, %61 : vector<8x64xf32>
    %64 = arith.divf %62, %63 : vector<8x64xf32>
    %65 = arith.index_cast %53 : i32 to index
    %c0_32 = arith.constant 0 : index
    %66 = vector.load %arg26[%65, %c0_32] : memref<64x64xf32, #tpu.memory_space<vmem>>, vector<8x64xf32>
    %67 = vector.extract_strided_slice %54 {offsets = [0, 64], sizes = [8, 64], strides = [1, 1]} : vector<8x128xf32> to vector<8x64xf32>
    %68 = arith.addf %66, %67 : vector<8x64xf32>
    %69 = arith.negf %68 : vector<8x64xf32>
    %70 = math.exp %69 : vector<8x64xf32>
    %cst_33 = arith.constant 1.000000e+00 : f32
    %71 = vector.broadcast %cst_33 : f32 to vector<8x64xf32>
    %72 = arith.addf %71, %70 : vector<8x64xf32>
    %73 = arith.divf %71, %72 : vector<8x64xf32>
    %74 = arith.index_cast %53 : i32 to index
    %c0_34 = arith.constant 0 : index
    %75 = vector.load %arg27[%74, %c0_34] : memref<64x64xf32, #tpu.memory_space<vmem>>, vector<8x64xf32>
    %76 = vector.broadcast %14 : vector<1x64xf32> to vector<8x64xf32>
    %77 = arith.addf %55, %76 : vector<8x64xf32>
    %78 = arith.mulf %64, %77 : vector<8x64xf32>
    %79 = arith.addf %75, %78 : vector<8x64xf32>
    %80 = math.tanh %79 : vector<8x64xf32>
    %cst_35 = arith.constant 1.000000e+00 : f32
    %81 = vector.broadcast %cst_35 : f32 to vector<8x64xf32>
    %82 = arith.subf %81, %73 : vector<8x64xf32>
    %83 = arith.mulf %82, %80 : vector<8x64xf32>
    %84 = arith.mulf %73, %51 : vector<8x64xf32>
    %85 = arith.addf %83, %84 : vector<8x64xf32>
    %cst_36 = arith.constant 5.000000e+00 : f32
    %86 = vector.broadcast %cst_36 : f32 to vector<8x64xf32>
    %87 = arith.minimumf %85, %86 : vector<8x64xf32>
    %c2_i32 = arith.constant 2 : i32
    %c8_i32_37 = arith.constant 8 : i32
    %88 = arith.muli %c2_i32, %c8_i32_37 : i32
    %89 = tpu.assume_multiple %88, 8 : i32
    %cst_38 = arith.constant dense<0.000000e+00> : vector<8x128xf32>
    %90 = tpu.matmul %87, %12, %cst_38 {dimension_numbers = #tpu.dot_dimension_numbers<[1], [0], [0], [1], [0, 0, 1, 1], [], []>} : vector<8x64xf32>, vector<64x128xf32>, vector<8x128xf32> -> vector<8x128xf32>
    %cst_39 = arith.constant dense<0.000000e+00> : vector<8x64xf32>
    %91 = tpu.matmul %87, %13, %cst_39 {dimension_numbers = #tpu.dot_dimension_numbers<[1], [0], [0], [1], [0, 0, 1, 1], [], []>} : vector<8x64xf32>, vector<64x64xf32>, vector<8x64xf32> -> vector<8x64xf32>
    %92 = arith.index_cast %89 : i32 to index
    %c0_40 = arith.constant 0 : index
    %93 = vector.load %arg25[%92, %c0_40] : memref<64x64xf32, #tpu.memory_space<vmem>>, vector<8x64xf32>
    %94 = vector.extract_strided_slice %90 {offsets = [0, 0], sizes = [8, 64], strides = [1, 1]} : vector<8x128xf32> to vector<8x64xf32>
    %95 = arith.addf %93, %94 : vector<8x64xf32>
    %96 = arith.negf %95 : vector<8x64xf32>
    %97 = math.exp %96 : vector<8x64xf32>
    %cst_41 = arith.constant 1.000000e+00 : f32
    %98 = vector.broadcast %cst_41 : f32 to vector<8x64xf32>
    %99 = arith.addf %98, %97 : vector<8x64xf32>
    %100 = arith.divf %98, %99 : vector<8x64xf32>
    %101 = arith.index_cast %89 : i32 to index
    %c0_42 = arith.constant 0 : index
    %102 = vector.load %arg26[%101, %c0_42] : memref<64x64xf32, #tpu.memory_space<vmem>>, vector<8x64xf32>
    %103 = vector.extract_strided_slice %90 {offsets = [0, 64], sizes = [8, 64], strides = [1, 1]} : vector<8x128xf32> to vector<8x64xf32>
    %104 = arith.addf %102, %103 : vector<8x64xf32>
    %105 = arith.negf %104 : vector<8x64xf32>
    %106 = math.exp %105 : vector<8x64xf32>
    %cst_43 = arith.constant 1.000000e+00 : f32
    %107 = vector.broadcast %cst_43 : f32 to vector<8x64xf32>
    %108 = arith.addf %107, %106 : vector<8x64xf32>
    %109 = arith.divf %107, %108 : vector<8x64xf32>
    %110 = arith.index_cast %89 : i32 to index
    %c0_44 = arith.constant 0 : index
    %111 = vector.load %arg27[%110, %c0_44] : memref<64x64xf32, #tpu.memory_space<vmem>>, vector<8x64xf32>
    %112 = vector.broadcast %14 : vector<1x64xf32> to vector<8x64xf32>
    %113 = arith.addf %91, %112 : vector<8x64xf32>
    %114 = arith.mulf %100, %113 : vector<8x64xf32>
    %115 = arith.addf %111, %114 : vector<8x64xf32>
    %116 = math.tanh %115 : vector<8x64xf32>
    %cst_45 = arith.constant 1.000000e+00 : f32
    %117 = vector.broadcast %cst_45 : f32 to vector<8x64xf32>
    %118 = arith.subf %117, %109 : vector<8x64xf32>
    %119 = arith.mulf %118, %116 : vector<8x64xf32>
    %120 = arith.mulf %109, %87 : vector<8x64xf32>
    %121 = arith.addf %119, %120 : vector<8x64xf32>
    %cst_46 = arith.constant 5.000000e+00 : f32
    %122 = vector.broadcast %cst_46 : f32 to vector<8x64xf32>
    %123 = arith.minimumf %121, %122 : vector<8x64xf32>
    %c3_i32 = arith.constant 3 : i32
    %c8_i32_47 = arith.constant 8 : i32
    %124 = arith.muli %c3_i32, %c8_i32_47 : i32
    %125 = tpu.assume_multiple %124, 8 : i32
    %cst_48 = arith.constant dense<0.000000e+00> : vector<8x128xf32>
    %126 = tpu.matmul %123, %12, %cst_48 {dimension_numbers = #tpu.dot_dimension_numbers<[1], [0], [0], [1], [0, 0, 1, 1], [], []>} : vector<8x64xf32>, vector<64x128xf32>, vector<8x128xf32> -> vector<8x128xf32>
    %cst_49 = arith.constant dense<0.000000e+00> : vector<8x64xf32>
    %127 = tpu.matmul %123, %13, %cst_49 {dimension_numbers = #tpu.dot_dimension_numbers<[1], [0], [0], [1], [0, 0, 1, 1], [], []>} : vector<8x64xf32>, vector<64x64xf32>, vector<8x64xf32> -> vector<8x64xf32>
    %128 = arith.index_cast %125 : i32 to index
    %c0_50 = arith.constant 0 : index
    %129 = vector.load %arg25[%128, %c0_50] : memref<64x64xf32, #tpu.memory_space<vmem>>, vector<8x64xf32>
    %130 = vector.extract_strided_slice %126 {offsets = [0, 0], sizes = [8, 64], strides = [1, 1]} : vector<8x128xf32> to vector<8x64xf32>
    %131 = arith.addf %129, %130 : vector<8x64xf32>
    %132 = arith.negf %131 : vector<8x64xf32>
    %133 = math.exp %132 : vector<8x64xf32>
    %cst_51 = arith.constant 1.000000e+00 : f32
    %134 = vector.broadcast %cst_51 : f32 to vector<8x64xf32>
    %135 = arith.addf %134, %133 : vector<8x64xf32>
    %136 = arith.divf %134, %135 : vector<8x64xf32>
    %137 = arith.index_cast %125 : i32 to index
    %c0_52 = arith.constant 0 : index
    %138 = vector.load %arg26[%137, %c0_52] : memref<64x64xf32, #tpu.memory_space<vmem>>, vector<8x64xf32>
    %139 = vector.extract_strided_slice %126 {offsets = [0, 64], sizes = [8, 64], strides = [1, 1]} : vector<8x128xf32> to vector<8x64xf32>
    %140 = arith.addf %138, %139 : vector<8x64xf32>
    %141 = arith.negf %140 : vector<8x64xf32>
    %142 = math.exp %141 : vector<8x64xf32>
    %cst_53 = arith.constant 1.000000e+00 : f32
    %143 = vector.broadcast %cst_53 : f32 to vector<8x64xf32>
    %144 = arith.addf %143, %142 : vector<8x64xf32>
    %145 = arith.divf %143, %144 : vector<8x64xf32>
    %146 = arith.index_cast %125 : i32 to index
    %c0_54 = arith.constant 0 : index
    %147 = vector.load %arg27[%146, %c0_54] : memref<64x64xf32, #tpu.memory_space<vmem>>, vector<8x64xf32>
    %148 = vector.broadcast %14 : vector<1x64xf32> to vector<8x64xf32>
    %149 = arith.addf %127, %148 : vector<8x64xf32>
    %150 = arith.mulf %136, %149 : vector<8x64xf32>
    %151 = arith.addf %147, %150 : vector<8x64xf32>
    %152 = math.tanh %151 : vector<8x64xf32>
    %cst_55 = arith.constant 1.000000e+00 : f32
    %153 = vector.broadcast %cst_55 : f32 to vector<8x64xf32>
    %154 = arith.subf %153, %145 : vector<8x64xf32>
    %155 = arith.mulf %154, %152 : vector<8x64xf32>
    %156 = arith.mulf %145, %123 : vector<8x64xf32>
    %157 = arith.addf %155, %156 : vector<8x64xf32>
    %cst_56 = arith.constant 5.000000e+00 : f32
    %158 = vector.broadcast %cst_56 : f32 to vector<8x64xf32>
    %159 = arith.minimumf %157, %158 : vector<8x64xf32>
    %c4_i32 = arith.constant 4 : i32
    %c8_i32_57 = arith.constant 8 : i32
    %160 = arith.muli %c4_i32, %c8_i32_57 : i32
    %161 = tpu.assume_multiple %160, 8 : i32
    %cst_58 = arith.constant dense<0.000000e+00> : vector<8x128xf32>
    %162 = tpu.matmul %159, %12, %cst_58 {dimension_numbers = #tpu.dot_dimension_numbers<[1], [0], [0], [1], [0, 0, 1, 1], [], []>} : vector<8x64xf32>, vector<64x128xf32>, vector<8x128xf32> -> vector<8x128xf32>
    %cst_59 = arith.constant dense<0.000000e+00> : vector<8x64xf32>
    %163 = tpu.matmul %159, %13, %cst_59 {dimension_numbers = #tpu.dot_dimension_numbers<[1], [0], [0], [1], [0, 0, 1, 1], [], []>} : vector<8x64xf32>, vector<64x64xf32>, vector<8x64xf32> -> vector<8x64xf32>
    %164 = arith.index_cast %161 : i32 to index
    %c0_60 = arith.constant 0 : index
    %165 = vector.load %arg25[%164, %c0_60] : memref<64x64xf32, #tpu.memory_space<vmem>>, vector<8x64xf32>
    %166 = vector.extract_strided_slice %162 {offsets = [0, 0], sizes = [8, 64], strides = [1, 1]} : vector<8x128xf32> to vector<8x64xf32>
    %167 = arith.addf %165, %166 : vector<8x64xf32>
    %168 = arith.negf %167 : vector<8x64xf32>
    %169 = math.exp %168 : vector<8x64xf32>
    %cst_61 = arith.constant 1.000000e+00 : f32
    %170 = vector.broadcast %cst_61 : f32 to vector<8x64xf32>
    %171 = arith.addf %170, %169 : vector<8x64xf32>
    %172 = arith.divf %170, %171 : vector<8x64xf32>
    %173 = arith.index_cast %161 : i32 to index
    %c0_62 = arith.constant 0 : index
    %174 = vector.load %arg26[%173, %c0_62] : memref<64x64xf32, #tpu.memory_space<vmem>>, vector<8x64xf32>
    %175 = vector.extract_strided_slice %162 {offsets = [0, 64], sizes = [8, 64], strides = [1, 1]} : vector<8x128xf32> to vector<8x64xf32>
    %176 = arith.addf %174, %175 : vector<8x64xf32>
    %177 = arith.negf %176 : vector<8x64xf32>
    %178 = math.exp %177 : vector<8x64xf32>
    %cst_63 = arith.constant 1.000000e+00 : f32
    %179 = vector.broadcast %cst_63 : f32 to vector<8x64xf32>
    %180 = arith.addf %179, %178 : vector<8x64xf32>
    %181 = arith.divf %179, %180 : vector<8x64xf32>
    %182 = arith.index_cast %161 : i32 to index
    %c0_64 = arith.constant 0 : index
    %183 = vector.load %arg27[%182, %c0_64] : memref<64x64xf32, #tpu.memory_space<vmem>>, vector<8x64xf32>
    %184 = vector.broadcast %14 : vector<1x64xf32> to vector<8x64xf32>
    %185 = arith.addf %163, %184 : vector<8x64xf32>
    %186 = arith.mulf %172, %185 : vector<8x64xf32>
    %187 = arith.addf %183, %186 : vector<8x64xf32>
    %188 = math.tanh %187 : vector<8x64xf32>
    %cst_65 = arith.constant 1.000000e+00 : f32
    %189 = vector.broadcast %cst_65 : f32 to vector<8x64xf32>
    %190 = arith.subf %189, %181 : vector<8x64xf32>
    %191 = arith.mulf %190, %188 : vector<8x64xf32>
    %192 = arith.mulf %181, %159 : vector<8x64xf32>
    %193 = arith.addf %191, %192 : vector<8x64xf32>
    %cst_66 = arith.constant 5.000000e+00 : f32
    %194 = vector.broadcast %cst_66 : f32 to vector<8x64xf32>
    %195 = arith.minimumf %193, %194 : vector<8x64xf32>
    %c5_i32 = arith.constant 5 : i32
    %c8_i32_67 = arith.constant 8 : i32
    %196 = arith.muli %c5_i32, %c8_i32_67 : i32
    %197 = tpu.assume_multiple %196, 8 : i32
    %cst_68 = arith.constant dense<0.000000e+00> : vector<8x128xf32>
    %198 = tpu.matmul %195, %12, %cst_68 {dimension_numbers = #tpu.dot_dimension_numbers<[1], [0], [0], [1], [0, 0, 1, 1], [], []>} : vector<8x64xf32>, vector<64x128xf32>, vector<8x128xf32> -> vector<8x128xf32>
    %cst_69 = arith.constant dense<0.000000e+00> : vector<8x64xf32>
    %199 = tpu.matmul %195, %13, %cst_69 {dimension_numbers = #tpu.dot_dimension_numbers<[1], [0], [0], [1], [0, 0, 1, 1], [], []>} : vector<8x64xf32>, vector<64x64xf32>, vector<8x64xf32> -> vector<8x64xf32>
    %200 = arith.index_cast %197 : i32 to index
    %c0_70 = arith.constant 0 : index
    %201 = vector.load %arg25[%200, %c0_70] : memref<64x64xf32, #tpu.memory_space<vmem>>, vector<8x64xf32>
    %202 = vector.extract_strided_slice %198 {offsets = [0, 0], sizes = [8, 64], strides = [1, 1]} : vector<8x128xf32> to vector<8x64xf32>
    %203 = arith.addf %201, %202 : vector<8x64xf32>
    %204 = arith.negf %203 : vector<8x64xf32>
    %205 = math.exp %204 : vector<8x64xf32>
    %cst_71 = arith.constant 1.000000e+00 : f32
    %206 = vector.broadcast %cst_71 : f32 to vector<8x64xf32>
    %207 = arith.addf %206, %205 : vector<8x64xf32>
    %208 = arith.divf %206, %207 : vector<8x64xf32>
    %209 = arith.index_cast %197 : i32 to index
    %c0_72 = arith.constant 0 : index
    %210 = vector.load %arg26[%209, %c0_72] : memref<64x64xf32, #tpu.memory_space<vmem>>, vector<8x64xf32>
    %211 = vector.extract_strided_slice %198 {offsets = [0, 64], sizes = [8, 64], strides = [1, 1]} : vector<8x128xf32> to vector<8x64xf32>
    %212 = arith.addf %210, %211 : vector<8x64xf32>
    %213 = arith.negf %212 : vector<8x64xf32>
    %214 = math.exp %213 : vector<8x64xf32>
    %cst_73 = arith.constant 1.000000e+00 : f32
    %215 = vector.broadcast %cst_73 : f32 to vector<8x64xf32>
    %216 = arith.addf %215, %214 : vector<8x64xf32>
    %217 = arith.divf %215, %216 : vector<8x64xf32>
    %218 = arith.index_cast %197 : i32 to index
    %c0_74 = arith.constant 0 : index
    %219 = vector.load %arg27[%218, %c0_74] : memref<64x64xf32, #tpu.memory_space<vmem>>, vector<8x64xf32>
    %220 = vector.broadcast %14 : vector<1x64xf32> to vector<8x64xf32>
    %221 = arith.addf %199, %220 : vector<8x64xf32>
    %222 = arith.mulf %208, %221 : vector<8x64xf32>
    %223 = arith.addf %219, %222 : vector<8x64xf32>
    %224 = math.tanh %223 : vector<8x64xf32>
    %cst_75 = arith.constant 1.000000e+00 : f32
    %225 = vector.broadcast %cst_75 : f32 to vector<8x64xf32>
    %226 = arith.subf %225, %217 : vector<8x64xf32>
    %227 = arith.mulf %226, %224 : vector<8x64xf32>
    %228 = arith.mulf %217, %195 : vector<8x64xf32>
    %229 = arith.addf %227, %228 : vector<8x64xf32>
    %cst_76 = arith.constant 5.000000e+00 : f32
    %230 = vector.broadcast %cst_76 : f32 to vector<8x64xf32>
    %231 = arith.minimumf %229, %230 : vector<8x64xf32>
    %c6_i32 = arith.constant 6 : i32
    %c8_i32_77 = arith.constant 8 : i32
    %232 = arith.muli %c6_i32, %c8_i32_77 : i32
    %233 = tpu.assume_multiple %232, 8 : i32
    %cst_78 = arith.constant dense<0.000000e+00> : vector<8x128xf32>
    %234 = tpu.matmul %231, %12, %cst_78 {dimension_numbers = #tpu.dot_dimension_numbers<[1], [0], [0], [1], [0, 0, 1, 1], [], []>} : vector<8x64xf32>, vector<64x128xf32>, vector<8x128xf32> -> vector<8x128xf32>
    %cst_79 = arith.constant dense<0.000000e+00> : vector<8x64xf32>
    %235 = tpu.matmul %231, %13, %cst_79 {dimension_numbers = #tpu.dot_dimension_numbers<[1], [0], [0], [1], [0, 0, 1, 1], [], []>} : vector<8x64xf32>, vector<64x64xf32>, vector<8x64xf32> -> vector<8x64xf32>
    %236 = arith.index_cast %233 : i32 to index
    %c0_80 = arith.constant 0 : index
    %237 = vector.load %arg25[%236, %c0_80] : memref<64x64xf32, #tpu.memory_space<vmem>>, vector<8x64xf32>
    %238 = vector.extract_strided_slice %234 {offsets = [0, 0], sizes = [8, 64], strides = [1, 1]} : vector<8x128xf32> to vector<8x64xf32>
    %239 = arith.addf %237, %238 : vector<8x64xf32>
    %240 = arith.negf %239 : vector<8x64xf32>
    %241 = math.exp %240 : vector<8x64xf32>
    %cst_81 = arith.constant 1.000000e+00 : f32
    %242 = vector.broadcast %cst_81 : f32 to vector<8x64xf32>
    %243 = arith.addf %242, %241 : vector<8x64xf32>
    %244 = arith.divf %242, %243 : vector<8x64xf32>
    %245 = arith.index_cast %233 : i32 to index
    %c0_82 = arith.constant 0 : index
    %246 = vector.load %arg26[%245, %c0_82] : memref<64x64xf32, #tpu.memory_space<vmem>>, vector<8x64xf32>
    %247 = vector.extract_strided_slice %234 {offsets = [0, 64], sizes = [8, 64], strides = [1, 1]} : vector<8x128xf32> to vector<8x64xf32>
    %248 = arith.addf %246, %247 : vector<8x64xf32>
    %249 = arith.negf %248 : vector<8x64xf32>
    %250 = math.exp %249 : vector<8x64xf32>
    %cst_83 = arith.constant 1.000000e+00 : f32
    %251 = vector.broadcast %cst_83 : f32 to vector<8x64xf32>
    %252 = arith.addf %251, %250 : vector<8x64xf32>
    %253 = arith.divf %251, %252 : vector<8x64xf32>
    %254 = arith.index_cast %233 : i32 to index
    %c0_84 = arith.constant 0 : index
    %255 = vector.load %arg27[%254, %c0_84] : memref<64x64xf32, #tpu.memory_space<vmem>>, vector<8x64xf32>
    %256 = vector.broadcast %14 : vector<1x64xf32> to vector<8x64xf32>
    %257 = arith.addf %235, %256 : vector<8x64xf32>
    %258 = arith.mulf %244, %257 : vector<8x64xf32>
    %259 = arith.addf %255, %258 : vector<8x64xf32>
    %260 = math.tanh %259 : vector<8x64xf32>
    %cst_85 = arith.constant 1.000000e+00 : f32
    %261 = vector.broadcast %cst_85 : f32 to vector<8x64xf32>
    %262 = arith.subf %261, %253 : vector<8x64xf32>
    %263 = arith.mulf %262, %260 : vector<8x64xf32>
    %264 = arith.mulf %253, %231 : vector<8x64xf32>
    %265 = arith.addf %263, %264 : vector<8x64xf32>
    %cst_86 = arith.constant 5.000000e+00 : f32
    %266 = vector.broadcast %cst_86 : f32 to vector<8x64xf32>
    %267 = arith.minimumf %265, %266 : vector<8x64xf32>
    %c7_i32 = arith.constant 7 : i32
    %c8_i32_87 = arith.constant 8 : i32
    %268 = arith.muli %c7_i32, %c8_i32_87 : i32
    %269 = tpu.assume_multiple %268, 8 : i32
    %cst_88 = arith.constant dense<0.000000e+00> : vector<8x128xf32>
    %270 = tpu.matmul %267, %12, %cst_88 {dimension_numbers = #tpu.dot_dimension_numbers<[1], [0], [0], [1], [0, 0, 1, 1], [], []>} : vector<8x64xf32>, vector<64x128xf32>, vector<8x128xf32> -> vector<8x128xf32>
    %cst_89 = arith.constant dense<0.000000e+00> : vector<8x64xf32>
    %271 = tpu.matmul %267, %13, %cst_89 {dimension_numbers = #tpu.dot_dimension_numbers<[1], [0], [0], [1], [0, 0, 1, 1], [], []>} : vector<8x64xf32>, vector<64x64xf32>, vector<8x64xf32> -> vector<8x64xf32>
    %272 = arith.index_cast %269 : i32 to index
    %c0_90 = arith.constant 0 : index
    %273 = vector.load %arg25[%272, %c0_90] : memref<64x64xf32, #tpu.memory_space<vmem>>, vector<8x64xf32>
    %274 = vector.extract_strided_slice %270 {offsets = [0, 0], sizes = [8, 64], strides = [1, 1]} : vector<8x128xf32> to vector<8x64xf32>
    %275 = arith.addf %273, %274 : vector<8x64xf32>
    %276 = arith.negf %275 : vector<8x64xf32>
    %277 = math.exp %276 : vector<8x64xf32>
    %cst_91 = arith.constant 1.000000e+00 : f32
    %278 = vector.broadcast %cst_91 : f32 to vector<8x64xf32>
    %279 = arith.addf %278, %277 : vector<8x64xf32>
    %280 = arith.divf %278, %279 : vector<8x64xf32>
    %281 = arith.index_cast %269 : i32 to index
    %c0_92 = arith.constant 0 : index
    %282 = vector.load %arg26[%281, %c0_92] : memref<64x64xf32, #tpu.memory_space<vmem>>, vector<8x64xf32>
    %283 = vector.extract_strided_slice %270 {offsets = [0, 64], sizes = [8, 64], strides = [1, 1]} : vector<8x128xf32> to vector<8x64xf32>
    %284 = arith.addf %282, %283 : vector<8x64xf32>
    %285 = arith.negf %284 : vector<8x64xf32>
    %286 = math.exp %285 : vector<8x64xf32>
    %cst_93 = arith.constant 1.000000e+00 : f32
    %287 = vector.broadcast %cst_93 : f32 to vector<8x64xf32>
    %288 = arith.addf %287, %286 : vector<8x64xf32>
    %289 = arith.divf %287, %288 : vector<8x64xf32>
    %290 = arith.index_cast %269 : i32 to index
    %c0_94 = arith.constant 0 : index
    %291 = vector.load %arg27[%290, %c0_94] : memref<64x64xf32, #tpu.memory_space<vmem>>, vector<8x64xf32>
    %292 = vector.broadcast %14 : vector<1x64xf32> to vector<8x64xf32>
    %293 = arith.addf %271, %292 : vector<8x64xf32>
    %294 = arith.mulf %280, %293 : vector<8x64xf32>
    %295 = arith.addf %291, %294 : vector<8x64xf32>
    %296 = math.tanh %295 : vector<8x64xf32>
    %cst_95 = arith.constant 1.000000e+00 : f32
    %297 = vector.broadcast %cst_95 : f32 to vector<8x64xf32>
    %298 = arith.subf %297, %289 : vector<8x64xf32>
    %299 = arith.mulf %298, %296 : vector<8x64xf32>
    %300 = arith.mulf %289, %267 : vector<8x64xf32>
    %301 = arith.addf %299, %300 : vector<8x64xf32>
    %cst_96 = arith.constant 5.000000e+00 : f32
    %302 = vector.broadcast %cst_96 : f32 to vector<8x64xf32>
    %303 = arith.minimumf %301, %302 : vector<8x64xf32>
    %c8_i32_97 = arith.constant 8 : i32
    %c0_98 = arith.constant 0 : index
    %c0_99 = arith.constant 0 : index
    %304 = vector.load %arg7[%c0_98, %c0_99] : memref<64x64xf32, #tpu.memory_space<vmem>>, vector<64x64xf32>
    %cst_100 = arith.constant dense<0.000000e+00> : vector<8x64xf32>
    %305 = tpu.matmul %303, %304, %cst_100 {dimension_numbers = #tpu.dot_dimension_numbers<[1], [0], [0], [1], [0, 0, 1, 1], [], []>} : vector<8x64xf32>, vector<64x64xf32>, vector<8x64xf32> -> vector<8x64xf32>
    %c0_101 = arith.constant 0 : index
    %c0_102 = arith.constant 0 : index
    %306 = vector.load %arg8[%c0_101, %c0_102] : memref<1x64xf32, #tpu.memory_space<vmem>>, vector<1x64xf32>
    %307 = vector.broadcast %306 : vector<1x64xf32> to vector<8x64xf32>
    %308 = arith.addf %305, %307 : vector<8x64xf32>
    %309 = vector.extract_strided_slice %308 {offsets = [0, 0], sizes = [8, 32], strides = [1, 1]} : vector<8x64xf32> to vector<8x32xf32>
    %310 = vector.extract_strided_slice %308 {offsets = [0, 32], sizes = [8, 32], strides = [1, 1]} : vector<8x64xf32> to vector<8x32xf32>
    %cst_103 = arith.constant -9.21034049 : f32
    %311 = vector.broadcast %cst_103 : f32 to vector<8x32xf32>
    %312 = arith.maximumf %310, %311 : vector<8x32xf32>
    %c0_104 = arith.constant 0 : index
    %c0_105 = arith.constant 0 : index
    %313 = vector.load %arg22[%c0_104, %c0_105] : memref<8x32xf32, #tpu.memory_space<vmem>>, vector<8x32xf32>
    tpu.vector_store %arg22[%c0_104, %c0_105], %309 {strides = array<i32>} : memref<8x32xf32, #tpu.memory_space<vmem>>, vector<8x32xf32>,
    %c0_106 = arith.constant 0 : index
    %c0_107 = arith.constant 0 : index
    %314 = vector.load %arg23[%c0_106, %c0_107] : memref<8x32xf32, #tpu.memory_space<vmem>>, vector<8x32xf32>
    tpu.vector_store %arg23[%c0_106, %c0_107], %312 {strides = array<i32>} : memref<8x32xf32, #tpu.memory_space<vmem>>, vector<8x32xf32>,
    %c0_108 = arith.constant 0 : index
    %c0_109 = arith.constant 0 : index
    %315 = vector.load %arg1[%c0_108, %c0_109] : memref<8x32xf32, #tpu.memory_space<vmem>>, vector<8x32xf32>
    %cst_110 = arith.constant 5.000000e-01 : f32
    %316 = vector.broadcast %cst_110 : f32 to vector<8x32xf32>
    %317 = arith.mulf %316, %312 : vector<8x32xf32>
    %318 = math.exp %317 : vector<8x32xf32>
    %319 = arith.mulf %315, %318 : vector<8x32xf32>
    %320 = arith.addf %319, %309 : vector<8x32xf32>
    %cst_111 = arith.constant -2.30258512 : f32
    %321 = vector.broadcast %cst_111 : f32 to vector<8x32xf32>
    %322 = arith.subf %321, %312 : vector<8x32xf32>
    %cst_112 = arith.constant 5.000000e-01 : f32
    %323 = vector.broadcast %cst_112 : f32 to vector<8x32xf32>
    %324 = arith.mulf %323, %322 : vector<8x32xf32>
    %325 = math.exp %312 : vector<8x32xf32>
    %cst_113 = arith.constant 0.000000e+00 : f32
    %326 = vector.broadcast %cst_113 : f32 to vector<8x32xf32>
    %327 = arith.subf %309, %326 : vector<8x32xf32>
    %328 = arith.mulf %327, %327 : vector<8x32xf32>
    %329 = arith.addf %325, %328 : vector<8x32xf32>
    %cst_114 = arith.constant 5.000000e+00 : f32
    %330 = vector.broadcast %cst_114 : f32 to vector<8x32xf32>
    %331 = arith.mulf %329, %330 : vector<8x32xf32>
    %332 = arith.addf %324, %331 : vector<8x32xf32>
    %cst_115 = arith.constant 5.000000e-01 : f32
    %333 = vector.broadcast %cst_115 : f32 to vector<8x32xf32>
    %334 = arith.subf %332, %333 : vector<8x32xf32>
    %335 = tpu.iota {dimensions = array<i32: 0>} : vector<8x32xi32>
    %c4_i32_116 = arith.constant 4 : i32
    %336 = vector.broadcast %c4_i32_116 : i32 to vector<8x32xi32>
    %337 = arith.cmpi slt, %335, %336 : vector<8x32xi32>
    %cst_117 = arith.constant 0.000000e+00 : f32
    %338 = vector.broadcast %cst_117 : f32 to vector<8x32xf32>
    %339 = arith.select %337, %334, %338 : vector<8x32xi1>, vector<8x32xf32>
    %340 = vector.shape_cast %339 : vector<8x32xf32> to vector<1x8x32xf32>
    %cst_118 = arith.constant dense<0.000000e+00> : vector<1xf32>
    %341 = vector.multi_reduction <add>, %340, %cst_118 [1, 2] : vector<1x8x32xf32> to vector<1xf32>
    %342 = vector.shape_cast %341 : vector<1xf32> to vector<1x1x1xf32>
    %343 = vector.extract %342[0, 0, 0] : f32 from vector<1x1x1xf32>
    %cst_119 = arith.constant 2.500000e-01 : f32
    %344 = arith.mulf %343, %cst_119 : f32
    %c0_120 = arith.constant 0 : index
    %c0_121 = arith.constant 0 : index
    %345 = memref.load %arg24[%c0_120, %c0_121] : memref<1x1xf32, #tpu.memory_space<smem>>
    memref.store %344, %arg24[%c0_120, %c0_121] : memref<1x1xf32, #tpu.memory_space<smem>>
    %c0_122 = arith.constant 0 : index
    %c0_123 = arith.constant 0 : index
    %346 = vector.load %arg9[%c0_122, %c0_123] : memref<32x128xf32, #tpu.memory_space<vmem>>, vector<32x128xf32>
    %c0_124 = arith.constant 0 : index
    %c0_125 = arith.constant 0 : index
    %347 = vector.load %arg10[%c0_124, %c0_125] : memref<1x128xf32, #tpu.memory_space<vmem>>, vector<1x128xf32>
    %c0_i32_126 = arith.constant 0 : i32
    %cst_127 = arith.constant dense<0.000000e+00> : vector<8x128xf32>
    %348 = tpu.matmul %320, %346, %cst_127 {dimension_numbers = #tpu.dot_dimension_numbers<[1], [0], [0], [1], [0, 0, 1, 1], [], []>} : vector<8x32xf32>, vector<32x128xf32>, vector<8x128xf32> -> vector<8x128xf32>
    %349 = vector.broadcast %347 : vector<1x128xf32> to vector<8x128xf32>
    %350 = arith.addf %348, %349 : vector<8x128xf32>
    %351 = vector.extract_strided_slice %350 {offsets = [0, 0], sizes = [8, 32], strides = [1, 1]} : vector<8x128xf32> to vector<8x32xf32>
    %352 = arith.negf %351 : vector<8x32xf32>
    %353 = math.exp %352 : vector<8x32xf32>
    %cst_128 = arith.constant 1.000000e+00 : f32
    %354 = vector.broadcast %cst_128 : f32 to vector<8x32xf32>
    %355 = arith.addf %354, %353 : vector<8x32xf32>
    %356 = arith.divf %354, %355 : vector<8x32xf32>
    %357 = vector.extract_strided_slice %350 {offsets = [0, 32], sizes = [8, 32], strides = [1, 1]} : vector<8x128xf32> to vector<8x32xf32>
    %358 = arith.negf %357 : vector<8x32xf32>
    %359 = math.exp %358 : vector<8x32xf32>
    %cst_129 = arith.constant 1.000000e+00 : f32
    %360 = vector.broadcast %cst_129 : f32 to vector<8x32xf32>
    %361 = arith.addf %360, %359 : vector<8x32xf32>
    %362 = arith.divf %360, %361 : vector<8x32xf32>
    %363 = vector.extract_strided_slice %350 {offsets = [0, 64], sizes = [8, 32], strides = [1, 1]} : vector<8x128xf32> to vector<8x32xf32>
    %364 = vector.extract_strided_slice %350 {offsets = [0, 96], sizes = [8, 32], strides = [1, 1]} : vector<8x128xf32> to vector<8x32xf32>
    %365 = arith.mulf %356, %364 : vector<8x32xf32>
    %366 = arith.addf %363, %365 : vector<8x32xf32>
    %367 = math.tanh %366 : vector<8x32xf32>
    %cst_130 = arith.constant 1.000000e+00 : f32
    %368 = vector.broadcast %cst_130 : f32 to vector<8x32xf32>
    %369 = arith.subf %368, %362 : vector<8x32xf32>
    %370 = arith.mulf %369, %367 : vector<8x32xf32>
    %371 = arith.mulf %362, %320 : vector<8x32xf32>
    %372 = arith.addf %370, %371 : vector<8x32xf32>
    %cst_131 = arith.constant -5.000000e+00 : f32
    %cst_132 = arith.constant 5.000000e+00 : f32
    %373 = vector.broadcast %cst_131 : f32 to vector<8x32xf32>
    %374 = arith.maximumf %373, %372 : vector<8x32xf32>
    %375 = vector.broadcast %cst_132 : f32 to vector<8x32xf32>
    %376 = arith.minimumf %375, %374 : vector<8x32xf32>
    %c8_i32_133 = arith.constant 8 : i32
    %377 = arith.muli %c0_i32_126, %c8_i32_133 : i32
    %378 = tpu.assume_multiple %377, 8 : i32
    %379 = arith.index_cast %378 : i32 to index
    %c0_134 = arith.constant 0 : index
    %380 = vector.load %arg20[%379, %c0_134] : memref<64x32xf32, #tpu.memory_space<vmem>>, vector<8x32xf32>
    tpu.vector_store %arg20[%379, %c0_134], %376 {strides = array<i32>} : memref<64x32xf32, #tpu.memory_space<vmem>>, vector<8x32xf32>,
    %c1_i32_135 = arith.constant 1 : i32
    %cst_136 = arith.constant dense<0.000000e+00> : vector<8x128xf32>
    %381 = tpu.matmul %376, %346, %cst_136 {dimension_numbers = #tpu.dot_dimension_numbers<[1], [0], [0], [1], [0, 0, 1, 1], [], []>} : vector<8x32xf32>, vector<32x128xf32>, vector<8x128xf32> -> vector<8x128xf32>
    %382 = vector.broadcast %347 : vector<1x128xf32> to vector<8x128xf32>
    %383 = arith.addf %381, %382 : vector<8x128xf32>
    %384 = vector.extract_strided_slice %383 {offsets = [0, 0], sizes = [8, 32], strides = [1, 1]} : vector<8x128xf32> to vector<8x32xf32>
    %385 = arith.negf %384 : vector<8x32xf32>
    %386 = math.exp %385 : vector<8x32xf32>
    %cst_137 = arith.constant 1.000000e+00 : f32
    %387 = vector.broadcast %cst_137 : f32 to vector<8x32xf32>
    %388 = arith.addf %387, %386 : vector<8x32xf32>
    %389 = arith.divf %387, %388 : vector<8x32xf32>
    %390 = vector.extract_strided_slice %383 {offsets = [0, 32], sizes = [8, 32], strides = [1, 1]} : vector<8x128xf32> to vector<8x32xf32>
    %391 = arith.negf %390 : vector<8x32xf32>
    %392 = math.exp %391 : vector<8x32xf32>
    %cst_138 = arith.constant 1.000000e+00 : f32
    %393 = vector.broadcast %cst_138 : f32 to vector<8x32xf32>
    %394 = arith.addf %393, %392 : vector<8x32xf32>
    %395 = arith.divf %393, %394 : vector<8x32xf32>
    %396 = vector.extract_strided_slice %383 {offsets = [0, 64], sizes = [8, 32], strides = [1, 1]} : vector<8x128xf32> to vector<8x32xf32>
    %397 = vector.extract_strided_slice %383 {offsets = [0, 96], sizes = [8, 32], strides = [1, 1]} : vector<8x128xf32> to vector<8x32xf32>
    %398 = arith.mulf %389, %397 : vector<8x32xf32>
    %399 = arith.addf %396, %398 : vector<8x32xf32>
    %400 = math.tanh %399 : vector<8x32xf32>
    %cst_139 = arith.constant 1.000000e+00 : f32
    %401 = vector.broadcast %cst_139 : f32 to vector<8x32xf32>
    %402 = arith.subf %401, %395 : vector<8x32xf32>
    %403 = arith.mulf %402, %400 : vector<8x32xf32>
    %404 = arith.mulf %395, %376 : vector<8x32xf32>
    %405 = arith.addf %403, %404 : vector<8x32xf32>
    %cst_140 = arith.constant -5.000000e+00 : f32
    %cst_141 = arith.constant 5.000000e+00 : f32
    %406 = vector.broadcast %cst_140 : f32 to vector<8x32xf32>
    %407 = arith.maximumf %406, %405 : vector<8x32xf32>
    %408 = vector.broadcast %cst_141 : f32 to vector<8x32xf32>
    %409 = arith.minimumf %408, %407 : vector<8x32xf32>
    %c8_i32_142 = arith.constant 8 : i32
    %410 = arith.muli %c1_i32_135, %c8_i32_142 : i32
    %411 = tpu.assume_multiple %410, 8 : i32
    %412 = arith.index_cast %411 : i32 to index
    %c0_143 = arith.constant 0 : index
    %413 = vector.load %arg20[%412, %c0_143] : memref<64x32xf32, #tpu.memory_space<vmem>>, vector<8x32xf32>
    tpu.vector_store %arg20[%412, %c0_143], %409 {strides = array<i32>} : memref<64x32xf32, #tpu.memory_space<vmem>>, vector<8x32xf32>,
    %c2_i32_144 = arith.constant 2 : i32
    %cst_145 = arith.constant dense<0.000000e+00> : vector<8x128xf32>
    %414 = tpu.matmul %409, %346, %cst_145 {dimension_numbers = #tpu.dot_dimension_numbers<[1], [0], [0], [1], [0, 0, 1, 1], [], []>} : vector<8x32xf32>, vector<32x128xf32>, vector<8x128xf32> -> vector<8x128xf32>
    %415 = vector.broadcast %347 : vector<1x128xf32> to vector<8x128xf32>
    %416 = arith.addf %414, %415 : vector<8x128xf32>
    %417 = vector.extract_strided_slice %416 {offsets = [0, 0], sizes = [8, 32], strides = [1, 1]} : vector<8x128xf32> to vector<8x32xf32>
    %418 = arith.negf %417 : vector<8x32xf32>
    %419 = math.exp %418 : vector<8x32xf32>
    %cst_146 = arith.constant 1.000000e+00 : f32
    %420 = vector.broadcast %cst_146 : f32 to vector<8x32xf32>
    %421 = arith.addf %420, %419 : vector<8x32xf32>
    %422 = arith.divf %420, %421 : vector<8x32xf32>
    %423 = vector.extract_strided_slice %416 {offsets = [0, 32], sizes = [8, 32], strides = [1, 1]} : vector<8x128xf32> to vector<8x32xf32>
    %424 = arith.negf %423 : vector<8x32xf32>
    %425 = math.exp %424 : vector<8x32xf32>
    %cst_147 = arith.constant 1.000000e+00 : f32
    %426 = vector.broadcast %cst_147 : f32 to vector<8x32xf32>
    %427 = arith.addf %426, %425 : vector<8x32xf32>
    %428 = arith.divf %426, %427 : vector<8x32xf32>
    %429 = vector.extract_strided_slice %416 {offsets = [0, 64], sizes = [8, 32], strides = [1, 1]} : vector<8x128xf32> to vector<8x32xf32>
    %430 = vector.extract_strided_slice %416 {offsets = [0, 96], sizes = [8, 32], strides = [1, 1]} : vector<8x128xf32> to vector<8x32xf32>
    %431 = arith.mulf %422, %430 : vector<8x32xf32>
    %432 = arith.addf %429, %431 : vector<8x32xf32>
    %433 = math.tanh %432 : vector<8x32xf32>
    %cst_148 = arith.constant 1.000000e+00 : f32
    %434 = vector.broadcast %cst_148 : f32 to vector<8x32xf32>
    %435 = arith.subf %434, %428 : vector<8x32xf32>
    %436 = arith.mulf %435, %433 : vector<8x32xf32>
    %437 = arith.mulf %428, %409 : vector<8x32xf32>
    %438 = arith.addf %436, %437 : vector<8x32xf32>
    %cst_149 = arith.constant -5.000000e+00 : f32
    %cst_150 = arith.constant 5.000000e+00 : f32
    %439 = vector.broadcast %cst_149 : f32 to vector<8x32xf32>
    %440 = arith.maximumf %439, %438 : vector<8x32xf32>
    %441 = vector.broadcast %cst_150 : f32 to vector<8x32xf32>
    %442 = arith.minimumf %441, %440 : vector<8x32xf32>
    %c8_i32_151 = arith.constant 8 : i32
    %443 = arith.muli %c2_i32_144, %c8_i32_151 : i32
    %444 = tpu.assume_multiple %443, 8 : i32
    %445 = arith.index_cast %444 : i32 to index
    %c0_152 = arith.constant 0 : index
    %446 = vector.load %arg20[%445, %c0_152] : memref<64x32xf32, #tpu.memory_space<vmem>>, vector<8x32xf32>
    tpu.vector_store %arg20[%445, %c0_152], %442 {strides = array<i32>} : memref<64x32xf32, #tpu.memory_space<vmem>>, vector<8x32xf32>,
    %c3_i32_153 = arith.constant 3 : i32
    %cst_154 = arith.constant dense<0.000000e+00> : vector<8x128xf32>
    %447 = tpu.matmul %442, %346, %cst_154 {dimension_numbers = #tpu.dot_dimension_numbers<[1], [0], [0], [1], [0, 0, 1, 1], [], []>} : vector<8x32xf32>, vector<32x128xf32>, vector<8x128xf32> -> vector<8x128xf32>
    %448 = vector.broadcast %347 : vector<1x128xf32> to vector<8x128xf32>
    %449 = arith.addf %447, %448 : vector<8x128xf32>
    %450 = vector.extract_strided_slice %449 {offsets = [0, 0], sizes = [8, 32], strides = [1, 1]} : vector<8x128xf32> to vector<8x32xf32>
    %451 = arith.negf %450 : vector<8x32xf32>
    %452 = math.exp %451 : vector<8x32xf32>
    %cst_155 = arith.constant 1.000000e+00 : f32
    %453 = vector.broadcast %cst_155 : f32 to vector<8x32xf32>
    %454 = arith.addf %453, %452 : vector<8x32xf32>
    %455 = arith.divf %453, %454 : vector<8x32xf32>
    %456 = vector.extract_strided_slice %449 {offsets = [0, 32], sizes = [8, 32], strides = [1, 1]} : vector<8x128xf32> to vector<8x32xf32>
    %457 = arith.negf %456 : vector<8x32xf32>
    %458 = math.exp %457 : vector<8x32xf32>
    %cst_156 = arith.constant 1.000000e+00 : f32
    %459 = vector.broadcast %cst_156 : f32 to vector<8x32xf32>
    %460 = arith.addf %459, %458 : vector<8x32xf32>
    %461 = arith.divf %459, %460 : vector<8x32xf32>
    %462 = vector.extract_strided_slice %449 {offsets = [0, 64], sizes = [8, 32], strides = [1, 1]} : vector<8x128xf32> to vector<8x32xf32>
    %463 = vector.extract_strided_slice %449 {offsets = [0, 96], sizes = [8, 32], strides = [1, 1]} : vector<8x128xf32> to vector<8x32xf32>
    %464 = arith.mulf %455, %463 : vector<8x32xf32>
    %465 = arith.addf %462, %464 : vector<8x32xf32>
    %466 = math.tanh %465 : vector<8x32xf32>
    %cst_157 = arith.constant 1.000000e+00 : f32
    %467 = vector.broadcast %cst_157 : f32 to vector<8x32xf32>
    %468 = arith.subf %467, %461 : vector<8x32xf32>
    %469 = arith.mulf %468, %466 : vector<8x32xf32>
    %470 = arith.mulf %461, %442 : vector<8x32xf32>
    %471 = arith.addf %469, %470 : vector<8x32xf32>
    %cst_158 = arith.constant -5.000000e+00 : f32
    %cst_159 = arith.constant 5.000000e+00 : f32
    %472 = vector.broadcast %cst_158 : f32 to vector<8x32xf32>
    %473 = arith.maximumf %472, %471 : vector<8x32xf32>
    %474 = vector.broadcast %cst_159 : f32 to vector<8x32xf32>
    %475 = arith.minimumf %474, %473 : vector<8x32xf32>
    %c8_i32_160 = arith.constant 8 : i32
    %476 = arith.muli %c3_i32_153, %c8_i32_160 : i32
    %477 = tpu.assume_multiple %476, 8 : i32
    %478 = arith.index_cast %477 : i32 to index
    %c0_161 = arith.constant 0 : index
    %479 = vector.load %arg20[%478, %c0_161] : memref<64x32xf32, #tpu.memory_space<vmem>>, vector<8x32xf32>
    tpu.vector_store %arg20[%478, %c0_161], %475 {strides = array<i32>} : memref<64x32xf32, #tpu.memory_space<vmem>>, vector<8x32xf32>,
    %c4_i32_162 = arith.constant 4 : i32
    %cst_163 = arith.constant dense<0.000000e+00> : vector<8x128xf32>
    %480 = tpu.matmul %475, %346, %cst_163 {dimension_numbers = #tpu.dot_dimension_numbers<[1], [0], [0], [1], [0, 0, 1, 1], [], []>} : vector<8x32xf32>, vector<32x128xf32>, vector<8x128xf32> -> vector<8x128xf32>
    %481 = vector.broadcast %347 : vector<1x128xf32> to vector<8x128xf32>
    %482 = arith.addf %480, %481 : vector<8x128xf32>
    %483 = vector.extract_strided_slice %482 {offsets = [0, 0], sizes = [8, 32], strides = [1, 1]} : vector<8x128xf32> to vector<8x32xf32>
    %484 = arith.negf %483 : vector<8x32xf32>
    %485 = math.exp %484 : vector<8x32xf32>
    %cst_164 = arith.constant 1.000000e+00 : f32
    %486 = vector.broadcast %cst_164 : f32 to vector<8x32xf32>
    %487 = arith.addf %486, %485 : vector<8x32xf32>
    %488 = arith.divf %486, %487 : vector<8x32xf32>
    %489 = vector.extract_strided_slice %482 {offsets = [0, 32], sizes = [8, 32], strides = [1, 1]} : vector<8x128xf32> to vector<8x32xf32>
    %490 = arith.negf %489 : vector<8x32xf32>
    %491 = math.exp %490 : vector<8x32xf32>
    %cst_165 = arith.constant 1.000000e+00 : f32
    %492 = vector.broadcast %cst_165 : f32 to vector<8x32xf32>
    %493 = arith.addf %492, %491 : vector<8x32xf32>
    %494 = arith.divf %492, %493 : vector<8x32xf32>
    %495 = vector.extract_strided_slice %482 {offsets = [0, 64], sizes = [8, 32], strides = [1, 1]} : vector<8x128xf32> to vector<8x32xf32>
    %496 = vector.extract_strided_slice %482 {offsets = [0, 96], sizes = [8, 32], strides = [1, 1]} : vector<8x128xf32> to vector<8x32xf32>
    %497 = arith.mulf %488, %496 : vector<8x32xf32>
    %498 = arith.addf %495, %497 : vector<8x32xf32>
    %499 = math.tanh %498 : vector<8x32xf32>
    %cst_166 = arith.constant 1.000000e+00 : f32
    %500 = vector.broadcast %cst_166 : f32 to vector<8x32xf32>
    %501 = arith.subf %500, %494 : vector<8x32xf32>
    %502 = arith.mulf %501, %499 : vector<8x32xf32>
    %503 = arith.mulf %494, %475 : vector<8x32xf32>
    %504 = arith.addf %502, %503 : vector<8x32xf32>
    %cst_167 = arith.constant -5.000000e+00 : f32
    %cst_168 = arith.constant 5.000000e+00 : f32
    %505 = vector.broadcast %cst_167 : f32 to vector<8x32xf32>
    %506 = arith.maximumf %505, %504 : vector<8x32xf32>
    %507 = vector.broadcast %cst_168 : f32 to vector<8x32xf32>
    %508 = arith.minimumf %507, %506 : vector<8x32xf32>
    %c8_i32_169 = arith.constant 8 : i32
    %509 = arith.muli %c4_i32_162, %c8_i32_169 : i32
    %510 = tpu.assume_multiple %509, 8 : i32
    %511 = arith.index_cast %510 : i32 to index
    %c0_170 = arith.constant 0 : index
    %512 = vector.load %arg20[%511, %c0_170] : memref<64x32xf32, #tpu.memory_space<vmem>>, vector<8x32xf32>
    tpu.vector_store %arg20[%511, %c0_170], %508 {strides = array<i32>} : memref<64x32xf32, #tpu.memory_space<vmem>>, vector<8x32xf32>,
    %c5_i32_171 = arith.constant 5 : i32
    %cst_172 = arith.constant dense<0.000000e+00> : vector<8x128xf32>
    %513 = tpu.matmul %508, %346, %cst_172 {dimension_numbers = #tpu.dot_dimension_numbers<[1], [0], [0], [1], [0, 0, 1, 1], [], []>} : vector<8x32xf32>, vector<32x128xf32>, vector<8x128xf32> -> vector<8x128xf32>
    %514 = vector.broadcast %347 : vector<1x128xf32> to vector<8x128xf32>
    %515 = arith.addf %513, %514 : vector<8x128xf32>
    %516 = vector.extract_strided_slice %515 {offsets = [0, 0], sizes = [8, 32], strides = [1, 1]} : vector<8x128xf32> to vector<8x32xf32>
    %517 = arith.negf %516 : vector<8x32xf32>
    %518 = math.exp %517 : vector<8x32xf32>
    %cst_173 = arith.constant 1.000000e+00 : f32
    %519 = vector.broadcast %cst_173 : f32 to vector<8x32xf32>
    %520 = arith.addf %519, %518 : vector<8x32xf32>
    %521 = arith.divf %519, %520 : vector<8x32xf32>
    %522 = vector.extract_strided_slice %515 {offsets = [0, 32], sizes = [8, 32], strides = [1, 1]} : vector<8x128xf32> to vector<8x32xf32>
    %523 = arith.negf %522 : vector<8x32xf32>
    %524 = math.exp %523 : vector<8x32xf32>
    %cst_174 = arith.constant 1.000000e+00 : f32
    %525 = vector.broadcast %cst_174 : f32 to vector<8x32xf32>
    %526 = arith.addf %525, %524 : vector<8x32xf32>
    %527 = arith.divf %525, %526 : vector<8x32xf32>
    %528 = vector.extract_strided_slice %515 {offsets = [0, 64], sizes = [8, 32], strides = [1, 1]} : vector<8x128xf32> to vector<8x32xf32>
    %529 = vector.extract_strided_slice %515 {offsets = [0, 96], sizes = [8, 32], strides = [1, 1]} : vector<8x128xf32> to vector<8x32xf32>
    %530 = arith.mulf %521, %529 : vector<8x32xf32>
    %531 = arith.addf %528, %530 : vector<8x32xf32>
    %532 = math.tanh %531 : vector<8x32xf32>
    %cst_175 = arith.constant 1.000000e+00 : f32
    %533 = vector.broadcast %cst_175 : f32 to vector<8x32xf32>
    %534 = arith.subf %533, %527 : vector<8x32xf32>
    %535 = arith.mulf %534, %532 : vector<8x32xf32>
    %536 = arith.mulf %527, %508 : vector<8x32xf32>
    %537 = arith.addf %535, %536 : vector<8x32xf32>
    %cst_176 = arith.constant -5.000000e+00 : f32
    %cst_177 = arith.constant 5.000000e+00 : f32
    %538 = vector.broadcast %cst_176 : f32 to vector<8x32xf32>
    %539 = arith.maximumf %538, %537 : vector<8x32xf32>
    %540 = vector.broadcast %cst_177 : f32 to vector<8x32xf32>
    %541 = arith.minimumf %540, %539 : vector<8x32xf32>
    %c8_i32_178 = arith.constant 8 : i32
    %542 = arith.muli %c5_i32_171, %c8_i32_178 : i32
    %543 = tpu.assume_multiple %542, 8 : i32
    %544 = arith.index_cast %543 : i32 to index
    %c0_179 = arith.constant 0 : index
    %545 = vector.load %arg20[%544, %c0_179] : memref<64x32xf32, #tpu.memory_space<vmem>>, vector<8x32xf32>
    tpu.vector_store %arg20[%544, %c0_179], %541 {strides = array<i32>} : memref<64x32xf32, #tpu.memory_space<vmem>>, vector<8x32xf32>,
    %c6_i32_180 = arith.constant 6 : i32
    %cst_181 = arith.constant dense<0.000000e+00> : vector<8x128xf32>
    %546 = tpu.matmul %541, %346, %cst_181 {dimension_numbers = #tpu.dot_dimension_numbers<[1], [0], [0], [1], [0, 0, 1, 1], [], []>} : vector<8x32xf32>, vector<32x128xf32>, vector<8x128xf32> -> vector<8x128xf32>
    %547 = vector.broadcast %347 : vector<1x128xf32> to vector<8x128xf32>
    %548 = arith.addf %546, %547 : vector<8x128xf32>
    %549 = vector.extract_strided_slice %548 {offsets = [0, 0], sizes = [8, 32], strides = [1, 1]} : vector<8x128xf32> to vector<8x32xf32>
    %550 = arith.negf %549 : vector<8x32xf32>
    %551 = math.exp %550 : vector<8x32xf32>
    %cst_182 = arith.constant 1.000000e+00 : f32
    %552 = vector.broadcast %cst_182 : f32 to vector<8x32xf32>
    %553 = arith.addf %552, %551 : vector<8x32xf32>
    %554 = arith.divf %552, %553 : vector<8x32xf32>
    %555 = vector.extract_strided_slice %548 {offsets = [0, 32], sizes = [8, 32], strides = [1, 1]} : vector<8x128xf32> to vector<8x32xf32>
    %556 = arith.negf %555 : vector<8x32xf32>
    %557 = math.exp %556 : vector<8x32xf32>
    %cst_183 = arith.constant 1.000000e+00 : f32
    %558 = vector.broadcast %cst_183 : f32 to vector<8x32xf32>
    %559 = arith.addf %558, %557 : vector<8x32xf32>
    %560 = arith.divf %558, %559 : vector<8x32xf32>
    %561 = vector.extract_strided_slice %548 {offsets = [0, 64], sizes = [8, 32], strides = [1, 1]} : vector<8x128xf32> to vector<8x32xf32>
    %562 = vector.extract_strided_slice %548 {offsets = [0, 96], sizes = [8, 32], strides = [1, 1]} : vector<8x128xf32> to vector<8x32xf32>
    %563 = arith.mulf %554, %562 : vector<8x32xf32>
    %564 = arith.addf %561, %563 : vector<8x32xf32>
    %565 = math.tanh %564 : vector<8x32xf32>
    %cst_184 = arith.constant 1.000000e+00 : f32
    %566 = vector.broadcast %cst_184 : f32 to vector<8x32xf32>
    %567 = arith.subf %566, %560 : vector<8x32xf32>
    %568 = arith.mulf %567, %565 : vector<8x32xf32>
    %569 = arith.mulf %560, %541 : vector<8x32xf32>
    %570 = arith.addf %568, %569 : vector<8x32xf32>
    %cst_185 = arith.constant -5.000000e+00 : f32
    %cst_186 = arith.constant 5.000000e+00 : f32
    %571 = vector.broadcast %cst_185 : f32 to vector<8x32xf32>
    %572 = arith.maximumf %571, %570 : vector<8x32xf32>
    %573 = vector.broadcast %cst_186 : f32 to vector<8x32xf32>
    %574 = arith.minimumf %573, %572 : vector<8x32xf32>
    %c8_i32_187 = arith.constant 8 : i32
    %575 = arith.muli %c6_i32_180, %c8_i32_187 : i32
    %576 = tpu.assume_multiple %575, 8 : i32
    %577 = arith.index_cast %576 : i32 to index
    %c0_188 = arith.constant 0 : index
    %578 = vector.load %arg20[%577, %c0_188] : memref<64x32xf32, #tpu.memory_space<vmem>>, vector<8x32xf32>
    tpu.vector_store %arg20[%577, %c0_188], %574 {strides = array<i32>} : memref<64x32xf32, #tpu.memory_space<vmem>>, vector<8x32xf32>,
    %c7_i32_189 = arith.constant 7 : i32
    %cst_190 = arith.constant dense<0.000000e+00> : vector<8x128xf32>
    %579 = tpu.matmul %574, %346, %cst_190 {dimension_numbers = #tpu.dot_dimension_numbers<[1], [0], [0], [1], [0, 0, 1, 1], [], []>} : vector<8x32xf32>, vector<32x128xf32>, vector<8x128xf32> -> vector<8x128xf32>
    %580 = vector.broadcast %347 : vector<1x128xf32> to vector<8x128xf32>
    %581 = arith.addf %579, %580 : vector<8x128xf32>
    %582 = vector.extract_strided_slice %581 {offsets = [0, 0], sizes = [8, 32], strides = [1, 1]} : vector<8x128xf32> to vector<8x32xf32>
    %583 = arith.negf %582 : vector<8x32xf32>
    %584 = math.exp %583 : vector<8x32xf32>
    %cst_191 = arith.constant 1.000000e+00 : f32
    %585 = vector.broadcast %cst_191 : f32 to vector<8x32xf32>
    %586 = arith.addf %585, %584 : vector<8x32xf32>
    %587 = arith.divf %585, %586 : vector<8x32xf32>
    %588 = vector.extract_strided_slice %581 {offsets = [0, 32], sizes = [8, 32], strides = [1, 1]} : vector<8x128xf32> to vector<8x32xf32>
    %589 = arith.negf %588 : vector<8x32xf32>
    %590 = math.exp %589 : vector<8x32xf32>
    %cst_192 = arith.constant 1.000000e+00 : f32
    %591 = vector.broadcast %cst_192 : f32 to vector<8x32xf32>
    %592 = arith.addf %591, %590 : vector<8x32xf32>
    %593 = arith.divf %591, %592 : vector<8x32xf32>
    %594 = vector.extract_strided_slice %581 {offsets = [0, 64], sizes = [8, 32], strides = [1, 1]} : vector<8x128xf32> to vector<8x32xf32>
    %595 = vector.extract_strided_slice %581 {offsets = [0, 96], sizes = [8, 32], strides = [1, 1]} : vector<8x128xf32> to vector<8x32xf32>
    %596 = arith.mulf %587, %595 : vector<8x32xf32>
    %597 = arith.addf %594, %596 : vector<8x32xf32>
    %598 = math.tanh %597 : vector<8x32xf32>
    %cst_193 = arith.constant 1.000000e+00 : f32
    %599 = vector.broadcast %cst_193 : f32 to vector<8x32xf32>
    %600 = arith.subf %599, %593 : vector<8x32xf32>
    %601 = arith.mulf %600, %598 : vector<8x32xf32>
    %602 = arith.mulf %593, %574 : vector<8x32xf32>
    %603 = arith.addf %601, %602 : vector<8x32xf32>
    %cst_194 = arith.constant -5.000000e+00 : f32
    %cst_195 = arith.constant 5.000000e+00 : f32
    %604 = vector.broadcast %cst_194 : f32 to vector<8x32xf32>
    %605 = arith.maximumf %604, %603 : vector<8x32xf32>
    %606 = vector.broadcast %cst_195 : f32 to vector<8x32xf32>
    %607 = arith.minimumf %606, %605 : vector<8x32xf32>
    %c8_i32_196 = arith.constant 8 : i32
    %608 = arith.muli %c7_i32_189, %c8_i32_196 : i32
    %609 = tpu.assume_multiple %608, 8 : i32
    %610 = arith.index_cast %609 : i32 to index
    %c0_197 = arith.constant 0 : index
    %611 = vector.load %arg20[%610, %c0_197] : memref<64x32xf32, #tpu.memory_space<vmem>>, vector<8x32xf32>
    tpu.vector_store %arg20[%610, %c0_197], %607 {strides = array<i32>} : memref<64x32xf32, #tpu.memory_space<vmem>>, vector<8x32xf32>,
    %c8_i32_198 = arith.constant 8 : i32
    %c0_199 = arith.constant 0 : index
    %c0_200 = arith.constant 0 : index
    %612 = vector.load %arg20[%c0_199, %c0_200] : memref<64x32xf32, #tpu.memory_space<vmem>>, vector<64x32xf32>
    %c0_201 = arith.constant 0 : index
    %c0_202 = arith.constant 0 : index
    %613 = vector.load %arg11[%c0_201, %c0_202] : memref<32x16xf32, #tpu.memory_space<vmem>>, vector<32x16xf32>
    %cst_203 = arith.constant dense<0.000000e+00> : vector<64x16xf32>
    %614 = tpu.matmul %612, %613, %cst_203 {dimension_numbers = #tpu.dot_dimension_numbers<[1], [0], [0], [1], [0, 0, 1, 1], [], []>} : vector<64x32xf32>, vector<32x16xf32>, vector<64x16xf32> -> vector<64x16xf32>
    %c0_204 = arith.constant 0 : index
    %c0_205 = arith.constant 0 : index
    %615 = vector.load %arg12[%c0_204, %c0_205] : memref<1x16xf32, #tpu.memory_space<vmem>>, vector<1x16xf32>
    %616 = vector.broadcast %615 : vector<1x16xf32> to vector<64x16xf32>
    %617 = arith.addf %614, %616 : vector<64x16xf32>
    %c0_206 = arith.constant 0 : index
    %c0_207 = arith.constant 0 : index
    %618 = vector.load %arg19[%c0_206, %c0_207] : memref<64x16xf32, #tpu.memory_space<vmem>>, vector<64x16xf32>
    tpu.vector_store %arg19[%c0_206, %c0_207], %617 {strides = array<i32>} : memref<64x16xf32, #tpu.memory_space<vmem>>, vector<64x16xf32>,
    %c0_208 = arith.constant 0 : index
    %c0_209 = arith.constant 0 : index
    %619 = vector.load %arg13[%c0_208, %c0_209] : memref<16x16xf32, #tpu.memory_space<vmem>>, vector<16x16xf32>
    %cst_210 = arith.constant dense<0.000000e+00> : vector<64x16xf32>
    %620 = tpu.matmul %617, %619, %cst_210 {dimension_numbers = #tpu.dot_dimension_numbers<[1], [0], [0], [1], [0, 0, 1, 1], [], []>} : vector<64x16xf32>, vector<16x16xf32>, vector<64x16xf32> -> vector<64x16xf32>
    %c0_211 = arith.constant 0 : index
    %c0_212 = arith.constant 0 : index
    %621 = vector.load %arg14[%c0_211, %c0_212] : memref<1x16xf32, #tpu.memory_space<vmem>>, vector<1x16xf32>
    %622 = vector.broadcast %621 : vector<1x16xf32> to vector<64x16xf32>
    %623 = arith.addf %620, %622 : vector<64x16xf32>
    %cst_213 = arith.constant 0.000000e+00 : f32
    %624 = vector.broadcast %cst_213 : f32 to vector<64x16xf32>
    %625 = arith.maximumf %623, %624 : vector<64x16xf32>
    %c0_214 = arith.constant 0 : index
    %c0_215 = arith.constant 0 : index
    %626 = vector.load %arg15[%c0_214, %c0_215] : memref<16x16xf32, #tpu.memory_space<vmem>>, vector<16x16xf32>
    %cst_216 = arith.constant dense<0.000000e+00> : vector<64x16xf32>
    %627 = tpu.matmul %625, %626, %cst_216 {dimension_numbers = #tpu.dot_dimension_numbers<[1], [0], [0], [1], [0, 0, 1, 1], [], []>} : vector<64x16xf32>, vector<16x16xf32>, vector<64x16xf32> -> vector<64x16xf32>
    %c0_217 = arith.constant 0 : index
    %c0_218 = arith.constant 0 : index
    %628 = vector.load %arg16[%c0_217, %c0_218] : memref<1x16xf32, #tpu.memory_space<vmem>>, vector<1x16xf32>
    %629 = vector.broadcast %628 : vector<1x16xf32> to vector<64x16xf32>
    %630 = arith.addf %627, %629 : vector<64x16xf32>
    %cst_219 = arith.constant 0.000000e+00 : f32
    %631 = vector.broadcast %cst_219 : f32 to vector<64x16xf32>
    %632 = arith.maximumf %630, %631 : vector<64x16xf32>
    %c0_220 = arith.constant 0 : index
    %c0_221 = arith.constant 0 : index
    %633 = vector.load %arg17[%c0_220, %c0_221] : memref<16x16xf32, #tpu.memory_space<vmem>>, vector<16x16xf32>
    %cst_222 = arith.constant dense<0.000000e+00> : vector<64x16xf32>
    %634 = tpu.matmul %632, %633, %cst_222 {dimension_numbers = #tpu.dot_dimension_numbers<[1], [0], [0], [1], [0, 0, 1, 1], [], []>} : vector<64x16xf32>, vector<16x16xf32>, vector<64x16xf32> -> vector<64x16xf32>
    %c0_223 = arith.constant 0 : index
    %c0_224 = arith.constant 0 : index
    %635 = vector.load %arg18[%c0_223, %c0_224] : memref<1x16xf32, #tpu.memory_space<vmem>>, vector<1x16xf32>
    %636 = vector.broadcast %635 : vector<1x16xf32> to vector<64x16xf32>
    %637 = arith.addf %634, %636 : vector<64x16xf32>
    %c0_225 = arith.constant 0 : index
    %c0_226 = arith.constant 0 : index
    %638 = vector.load %arg21[%c0_225, %c0_226] : memref<64x16xf32, #tpu.memory_space<vmem>>, vector<64x16xf32>
    tpu.vector_store %arg21[%c0_225, %c0_226], %637 {strides = array<i32>} : memref<64x16xf32, #tpu.memory_space<vmem>>, vector<64x16xf32>,
    return
  }
}

</mosaic_0001>

<bundles_post_ra>
// kernel: lfads_forward_packed.1
= control target key start
LH: loop header
LB: loop body
LE: loop exit
PB: predicated region body
PF: predicated region fallthrough
CT: control target
= control target key end

     0   :  { %s5529_s0 = inlined_call_operand.vmem [shape: f32[64,32], index: 0, kind: input, shape index: {}]   ;;  %s5530_s1 = inlined_call_operand.vmem [shape: f32[8,32], index: 1, kind: input, shape index: {}]   ;;  %s5531_s2 = inlined_call_operand.vmem [shape: f32[32,192], index: 2, kind: input, shape index: {}]   ;;  %s5532_s3 = inlined_call_operand.vmem [shape: f32[1,192], index: 3, kind: input, shape index: {}]   ;;  %s5533_s4 = inlined_call_operand.vmem [shape: f32[64,128], index: 4, kind: input, shape index: {}]   ;;  %s5534_s5 = inlined_call_operand.vmem [shape: f32[64,64], index: 5, kind: input, shape index: {}]   ;;  %s5535_s6 = inlined_call_operand.vmem [shape: f32[1,64], index: 6, kind: input, shape index: {}]   ;;  %s5536_s7 = inlined_call_operand.vmem [shape: f32[64,64], index: 7, kind: input, shape index: {}]   ;;  %s5537_s8 = inlined_call_operand.vmem [shape: f32[1,64], index: 8, kind: input, shape index: {}]   ;;  %s5538_s9 = inlined_call_operand.vmem [shape: f32[32,128], index: 9, kind: input, shape index: {}]   ;;  %s5539_s10 = inlined_call_operand.vmem [shape: f32[1,128], index: 10, kind: input, shape index: {}]   ;;  %s5540_s11 = inlined_call_operand.vmem [shape: f32[32,16], index: 11, kind: input, shape index: {}]   ;;  %s5541_s12 = inlined_call_operand.vmem [shape: f32[1,16], index: 12, kind: input, shape index: {}]   ;;  %s5542_s13 = inlined_call_operand.vmem [shape: f32[16,16], index: 13, kind: input, shape index: {}]   ;;  %s5543_s14 = inlined_call_operand.vmem [shape: f32[1,16], index: 14, kind: input, shape index: {}]   ;;  %s5544_s15 = inlined_call_operand.vmem [shape: f32[16,16], index: 15, kind: input, shape index: {}]   ;;  %s5545_s16 = inlined_call_operand.vmem [shape: f32[1,16], index: 16, kind: input, shape index: {}]   ;;  %s5546_s17 = inlined_call_operand.vmem [shape: f32[16,16], index: 17, kind: input, shape index: {}]   ;;  %s5547_s18 = inlined_call_operand.vmem [shape: f32[1,16], index: 18, kind: input, shape index: {}]   ;;  %s5548_s19 = inlined_call_operand.vmem [shape: f32[64,16], index: 19, kind: output, shape index: {0}]   ;;  %s5549_s20 = inlined_call_operand.vmem [shape: f32[64,32], index: 20, kind: output, shape index: {1}]   ;;  %s5550_s21 = inlined_call_operand.vmem [shape: f32[64,16], index: 21, kind: output, shape index: {2}]   ;;  %s5551_s22 = inlined_call_operand.vmem [shape: f32[8,32], index: 22, kind: output, shape index: {3}]   ;;  %s5552_s23 = inlined_call_operand.vmem [shape: f32[8,32], index: 23, kind: output, shape index: {4}]   ;;  %s5553_s24 = inlined_call_operand.hbm [shape: f32[1,1], index: 24, kind: output, shape index: {5}]  }
   0x1   :  { %5559 = sst [smem:[#allocation8_spill]] %s5529_s0 }
   0x2   :  { %5560 = sst [smem:[#allocation9_spill]] %s5530_s1 }
   0x3   :  { %5561 = sst [smem:[#allocation10_spill]] %s5531_s2 }
   0x4   :  { %5562 = sst [smem:[#allocation11_spill]] %s5532_s3 }
   0x5   :  { %5563 = sst [smem:[#allocation12_spill]] %s5533_s4 }
   0x6   :  { %5564 = sst [smem:[#allocation13_spill]] %s5534_s5 }
   0x7   :  { %5565 = sst [smem:[#allocation14_spill]] %s5535_s6 }
   0x8   :  { %5566 = sst [smem:[#allocation15_spill]] %s5536_s7 }
   0x9   :  { %5567 = sst [smem:[#allocation16_spill]] %s5537_s8 }
   0xa   :  { %s5568_s27 = sld [smem:[#allocation10_spill]]  ;;  %v4590_v5 = vmov 0.0|0.0   ;;  %s5569_s25 = sld [smem:[#allocation12_spill]]  ;;  %v4591_v8 = vmov 0.0   ;;  %vm4592_vm0 = vmmov 0   ;;  %vm97_vm1 = vcmask 261120  }
   0xb   :  { %4165 = vmatprep.subr.bf16.mxu1 %v4590_v5  ;;  %186 = vmatprep.mubr.f32.mxu0 %v4591_v8  ;;  %s5570_s6 = sld [smem:[#allocation8_spill]] }
   0xc   :  { %3694 = vmatprep.mubr.msk.f32.mxu1 %vm4592_vm0, %v4591_v8 }
  0x10   :  { %v78_v0 = vld [vmem:[%s5568_s27 + $0x8] sm:$0xff]  ;;  %v80_v1 = vld [vmem:[%s5568_s27 + $0x18] sm:$0xff]  ;;  %v77_v2 = vld [vmem:[%s5568_s27] sm:$0xff] }
  0x11   :  { %v4157_v3 = vpack.c.bf16 %v80_v1, %v78_v0  ;;  %v79_v4 = vld [vmem:[%s5568_s27 + $0x10] sm:$0xff]  ;;  %v292_v6 = vld [vmem:[%s5569_s25] sm:$0xff]  ;;  %v293_v7 = vld [vmem:[%s5569_s25 + $0x8] sm:$0xff] }
  0x12   :  { %v4159_v9 = vpack.c.bf16 %v79_v4, %v77_v2  ;;  %v4742_v10 = vpack.c.bf16 %v293_v7, %v292_v6  ;;  %v82_v11 = vld [vmem:[%s5568_s27 + $0x28] sm:$0xff]  ;;  %v84_v12 = vld [vmem:[%s5568_s27 + $0x38] sm:$0xff]  ;;  %v81_v13 = vld [vmem:[%s5568_s27 + $0x20] sm:$0xff] }
  0x13   :  { %4158 = vmatprep.subr.bf16.mxu0 %v4157_v3  ;;  %v4161_v14 = vpack.c.bf16 %v84_v12, %v82_v11  ;;  %v83_v15 = vld [vmem:[%s5568_s27 + $0x30] sm:$0xff]  ;;  %v295_v17 = vld [vmem:[%s5569_s25 + $0x18] sm:$0xff]  ;;  %v296_v20 = vld [vmem:[%s5569_s25 + $0x20] sm:$0xff] }
  0x14   :  { %v294_v16 = vld [vmem:[%s5569_s25 + $0x10] sm:$0xff]  ;;  %4160 = vmatpush1.bf16.msra.mxu0 %v4159_v9  ;;  %4167 = vmatpush3.bf16.msra.mxu1 %v4742_v10  ;;  %v4163_v18 = vpack.c.bf16 %v83_v15, %v81_v13  ;;  %v297_v21 = vld [vmem:[%s5569_s25 + $0x28] sm:$0xff]  ;;  %v69_v22 = vld [vmem:[%s5570_s6] sm:$0xff] }
  0x15   :  { %v4765_v19 = vpack.c.bf16 %v295_v17, %v294_v16  ;;  %4162 = vmatprep.subr.bf16.mxu0 %v4161_v14  ;;  %4168 = vmatprep.subr.bf16.mxu1 %v4590_v5  ;;  %v4778_v23 = vpack.c.bf16 %v297_v21, %v296_v20 }
  0x18   :  { %4164 = vmatpush1.bf16.msra.mxu0 %v4163_v18  ;;  %4170 = vmatpush3.bf16.msra.mxu1 %v4765_v19 }
  0x19   :  { %30 = vsyncpa [#allocation6], 0  ;;  %4171 = vmatprep.subr.bf16.mxu1 %v4590_v5  ;;  %v298_v24 = vld [vmem:[%s5569_s25 + $0x30] sm:$0xff]  ;;  %v299_v25 = vld [vmem:[%s5569_s25 + $0x38] sm:$0xff]  ;;  %4189 = vmatprep.subr.bf16.mxu0 %v4590_v5  ;;  %s5571_s8 = sld [smem:[#allocation13_spill]]  ;;  %v87_v39 = vlaneseq  ;;  %s5572_s25 = sld [smem:[#allocation11_spill]] }
  0x1a   :  { %v4790_v26 = vpack.c.bf16 %v299_v25, %v298_v24  ;;  %vm235_vm2 = vcmask 523264   ;;  %s4593_s27 = smov 64   ;;  %v70_v50 = vld [vmem:[%s5570_s6 + $0x8] sm:$0xff]  ;;  %v71_v52 = vld [vmem:[%s5570_s6 + $0x10] sm:$0xff]  ;;  %v72_v56 = vld [vmem:[%s5570_s6 + $0x18] sm:$0xff]  ;;  %s5573_s2 = sld [smem:[#allocation14_spill]] }
  0x1b   :  { %3333 = vmatmul.mubr.msk.f32.vlgmr.msra.gmra.mrb[0].mxu0 %vm97_vm1, %v69_v22  ;;  %v4858_v40 = vshrl.u32 %v87_v39, 7  ;;  %v73_v58 = vld [vmem:[%s5570_s6 + $0x20] sm:$0xff]  ;;  %v74_v59 = vld [vmem:[%s5570_s6 + $0x28] sm:$0xff]  ;;  %v75_v61 = vld [vmem:[%s5570_s6 + $0x30] sm:$0xff]  ;;  %s5574_s0 = sld [smem:[#allocation15_spill]]  ;;  %s5576_s30 = sld [smem:[#allocation9_spill]] }
  0x1c   :  { %4173 = vmatpush3.bf16.msra.mxu1 %v4778_v23  ;;  %4191 = vmatpush3.bf16.msra.mxu0 %v4742_v10  ;;  %v76_v1 = vld [vmem:[%s5570_s6 + $0x38] sm:$0xff]  ;;  %s4595_s4 = smov 32   ;;  %vm2853_vm3 = vcmask 130048   ;;  %s4578_s29 = scalar_lea.hbm %s5553_s24, 16 }
  0x1d   :  { %4174 = vmatprep.subr.bf16.mxu1 %v4590_v5  ;;  %192 = vmatprep.mubr.f32.mxu0 %v4591_v8  ;;  %v89_v41 = vsub.s32 0, %v4858_v40  ;;  %v93_v43 = vsub.s32 1, %v4858_v40  ;;  %vm1832_vm4 = vcmp.lt.s32.totalorder %v4858_v40, 4  ;;  %p4579_p0 = scmp.ne.s32.totalorder %s5553_s24, %s4578_s29  ;;  %p4582_p1 = scmp.lt.u32.totalorder %s4578_s29, %s5553_s24 }
  0x1e   :  { %4192 = vmatprep.subr.bf16.mxu0 %v4590_v5 }
  0x1f   :  { %v300_v27 = vld [vmem:[%s5571_s8] sm:$0xff]  ;;  %v301_v28 = vld [vmem:[%s5571_s8 + $0x8] sm:$0xff]  ;;  %v302_v30 = vld [vmem:[%s5571_s8 + $0x10] sm:$0xff]  ;;  %3334 = vmatmul.mubr.msk.f32.gmra.mrb[2].mxu0 %vm97_vm1, %v70_v50  ;;  %p4584_p2 = pnand %p4582_p1, %p4579_p0 }
  0x20   :  { %4176 = vmatpush3.bf16.msra.mxu1 %v4790_v26  ;;  %v4803_v29 = vpack.c.bf16 %v301_v28, %v300_v27  ;;  %4194 = vmatpush3.bf16.msra.mxu0 %v4765_v19  ;;  %v303_v31 = vld [vmem:[%s5571_s8 + $0x18] sm:$0xff]  ;;  %v304_v33 = vld [vmem:[%s5571_s8 + $0x20] sm:$0xff]  ;;  %v305_v34 = vld [vmem:[%s5571_s8 + $0x28] sm:$0xff] }
  0x21   :  { %4177 = vmatprep.subr.bf16.mxu1 %v4590_v5  ;;  %4195 = vmatprep.subr.bf16.mxu0 %v4590_v5  ;;  %v4816_v32 = vpack.c.bf16 %v303_v31, %v302_v30  ;;  %v4830_v35 = vpack.c.bf16 %v305_v34, %v304_v33  ;;  %v306_v36 = vld [vmem:[%s5571_s8 + $0x30] sm:$0xff]  ;;  %v307_v37 = vld [vmem:[%s5571_s8 + $0x38] sm:$0xff]  ;;  %v85_v42 = vld [vmem:[%s5572_s25] sm:$0x3]  ;;  %s5575_s25 = sld [smem:[#allocation16_spill]] }
  0x22   :  { %v4842_v38 = vpack.c.bf16 %v307_v37, %v306_v36  ;;  %v4865_v44 = vrot.slane %v85_v42, %v89_v41  ;;  %v4867_v45 = vrot.slane %v85_v42, %v93_v43  ;;  %198 = vmatprep.mubr.f32.mxu0 %v4591_v8  ;;  %v4914_v2 = vld [vmem:[%s5573_s2] ss:$0 sm:$0xff] }
  0x23   :  { %3695 = vmatmul.mubr.f32.vlgmr.msra.gmra.mrb[0].mxu1 %v4591_v8  ;;  %3335 = vmatmul.mubr.msk.f32.gmra.mrb[4].mxu0 %vm97_vm1, %v71_v52 }
  0x24   :  { %4179 = vmatpush3.bf16.msra.mxu1 %v4803_v29  ;;  %3713 = vmatprep.mubr.msk.f32.mxu1 %vm4592_vm0, %v4591_v8 }
  0x25   :  { %4180 = vmatprep.subr.bf16.mxu1 %v4590_v5  ;;  %4197 = vmatpush3.bf16.msra.mxu0 %v4778_v23 }
  0x26   :  { %4198 = vmatprep.subr.bf16.mxu0 %v4590_v5  ;;  %204 = vmatprep.mubr.f32.mxu0 %v4591_v8 }
  0x27   :  { %3336 = vmatmul.mubr.msk.f32.gmra.mrb[6].mxu0 %vm97_vm1, %v72_v56 }
  0x28   :  { %4182 = vmatpush3.bf16.msra.mxu1 %v4816_v32  ;;  %210 = vmatprep.mubr.f32.mxu0 %v4591_v8 }
  0x29   :  { %4183 = vmatprep.subr.bf16.mxu1 %v4590_v5  ;;  %4200 = vmatpush3.bf16.msra.mxu0 %v4790_v26 }
  0x2a   :  { %4213 = vmatprep.subr.bf16.mxu0 %v4590_v5 }
  0x2b   :  { %3337 = vmatmul.mubr.msk.f32.gmra.mrb[8].mxu0 %vm97_vm1, %v73_v58 }
  0x2c   :  { %4185 = vmatpush3.bf16.msra.mxu1 %v4830_v35  ;;  %216 = vmatprep.mubr.f32.mxu0 %v4591_v8 }
  0x2d   :  { %4186 = vmatprep.subr.bf16.mxu1 %v4590_v5 }
  0x2f   :  { %3338 = vmatmul.mubr.msk.f32.gmra.mrb[10].mxu0 %vm97_vm1, %v74_v59 }
  0x30   :  { %4188 = vmatpush3.bf16.msra.mxu1 %v4842_v38  ;;  %222 = vmatprep.mubr.f32.mxu0 %v4591_v8 }
  0x31   :  { %4201 = vmatprep.subr.bf16.mxu1 %v4590_v5 }
  0x33   :  { %3714 = vmatmul.mubr.f32.vlgmr.msra.gmra.mrb[2].mxu1 %v4591_v8  ;;  %3339 = vmatmul.mubr.msk.f32.gmra.mrb[12].mxu0 %vm97_vm1, %v75_v61 }
  0x34   :  { %4203 = vmatpush3.bf16.msra.mxu1 %v4803_v29  ;;  %3751 = vmatprep.mubr.msk.f32.mxu1 %vm4592_vm0, %v4591_v8 }
  0x35   :  { %4204 = vmatprep.subr.bf16.mxu1 %v4590_v5  ;;  %228 = vmatprep.mubr.f32.mxu0 %v4591_v8 }
  0x37   :  { %3340 = vmatmul.mubr.msk.f32.gmra.mrb[14].mxu0 %vm97_vm1, %v76_v1 }
  0x38   :  { %4206 = vmatpush3.bf16.msra.mxu1 %v4816_v32  ;;  %3732 = vmatprep.mubr.msk.f32.mxu0 %vm4592_vm0, %v4591_v8 }
  0x39   :  { %4207 = vmatprep.subr.bf16.mxu1 %v4590_v5 }
  0x3c   :  { %4209 = vmatpush3.bf16.msra.mxu1 %v4830_v35 }
  0x3d   :  { %4210 = vmatprep.subr.bf16.mxu1 %v4590_v5 }
  0x40   :  { %4212 = vmatpush3.bf16.msra.mxu1 %v4842_v38 }
  0x41   :  { %4225 = vmatprep.subr.bf16.mxu1 %v4590_v5 }
  0xee   :  { %v188_v46 = vpop.f32.mrb[0].mxu0 }
  0xef   :  { %v189_v47 = vadd.f32 %v188_v46, %v4865_v44  ;;  %v190_v48 = vpop.f32.mrb[1].mxu0 }
  0xf0   :  { %v191_v49 = vadd.f32 %v190_v48, %v4867_v45 }
  0xf1   :  { %236 = vst.msk [vmem:[#allocation2] sm:$0xff] %vm235_vm2, %v189_v47  ;;  %252 = vrot.lane.b32.xlu0 %v189_v47, %s4593_s27 }
  0xf2   :  { %284 = vst.msk [vmem:[#allocation4] sm:$0xff] %vm235_vm2, %v191_v49  ;;  %v194_v28 = vpop.f32.mrb[2].mxu0 }
  0xf3   :  { %v195_v30 = vadd.f32 %v194_v28, %v4865_v44  ;;  %v196_v31 = vpop.f32.mrb[3].mxu0 }
  0xf4   :  { %v197_v33 = vadd.f32 %v196_v31, %v4867_v45 }
  0xf5   :  { %237 = vst.msk [vmem:[#allocation2 + $0x8] sm:$0xff] %vm235_vm2, %v195_v30  ;;  %254 = vrot.lane.b32.xlu1 %v195_v30, %s4593_s27 }
  0xf6   :  { %v378_v51 = vpop.f32.mrb[0].mxu1  ;;  %285 = vst.msk [vmem:[#allocation4 + $0x8] sm:$0xff] %vm235_vm2, %v197_v33  ;;  %v200_v34 = vpop.f32.mrb[4].mxu0 }
  0xf7   :  { %v3696_v53 = vpop.f32.mrb[1].mxu1  ;;  %392 = vrot.lane.b32.xlu0 %v378_v51, %s4593_s27  ;;  %v201_v36 = vadd.f32 %v200_v34, %v4865_v44  ;;  %v202_v37 = vpop.f32.mrb[5].mxu0 }
  0xf8   :  { %v382_v54 = vld [vmem:[#allocation2] sm:$0xff]  ;;  %v203_v39 = vadd.f32 %v202_v37, %v4867_v45 }
  0xf9   :  { %v383_v55 = vadd.f32 %v382_v54, %v378_v51  ;;  %v402_v15 = vld [vmem:[#allocation4] sm:$0xff]  ;;  %238 = vst.msk [vmem:[#allocation2 + $0x10] sm:$0xff] %vm235_vm2, %v201_v36 }
  0xfa   :  { %286 = vst.msk [vmem:[#allocation4 + $0x10] sm:$0xff] %vm235_vm2, %v203_v39  ;;  %v206_v41 = vpop.f32.mrb[6].mxu0 }
  0xfb   :  { %v3341_v57 = vmul.f32 -1.442695, %v383_v55  ;;  %256 = vrot.lane.b32.xlu0 %v201_v36, %s4593_s27  ;;  %v207_v42 = vadd.f32 %v206_v41, %v4865_v44  ;;  %v208_v43 = vpop.f32.mrb[7].mxu0 }
  0xfc   :  { %v209_v46 = vadd.f32 %v208_v43, %v4867_v45 }
  0xfd   :  { %4446 = vpow2.f32 %v3341_v57  ;;  %239 = vst.msk [vmem:[#allocation2 + $0x18] sm:$0xff] %vm235_vm2, %v207_v42  ;;  %v583_v30 = vld [vmem:[#allocation4 + $0x8] sm:$0xff] }
  0xfe   :  { %287 = vst.msk [vmem:[#allocation4 + $0x18] sm:$0xff] %vm235_vm2, %v209_v46  ;;  %v212_v47 = vpop.f32.mrb[8].mxu0 }
  0xff   :  { %258 = vrot.lane.b32.xlu0 %v207_v42, %s4593_s27  ;;  %v213_v48 = vadd.f32 %v212_v47, %v4865_v44  ;;  %v214_v49 = vpop.f32.mrb[9].mxu0 }
 0x100   :  { %v215_v50 = vadd.f32 %v214_v49, %v4867_v45  ;;  %v736_v46 = vld [vmem:[#allocation2 + $0x10] sm:$0xff] }
 0x101   :  { %240 = vst.msk [vmem:[#allocation2 + $0x20] sm:$0xff] %vm235_vm2, %v213_v48 }
 0x102   :  { %288 = vst.msk [vmem:[#allocation4 + $0x20] sm:$0xff] %vm235_vm2, %v215_v50  ;;  %v218_v51 = vpop.f32.mrb[10].mxu0 }
 0x103   :  { %260 = vrot.lane.b32.xlu0 %v213_v48, %s4593_s27  ;;  %v219_v52 = vadd.f32 %v218_v51, %v4865_v44  ;;  %v220_v53 = vpop.f32.mrb[11].mxu0 }
 0x104   :  { %v221_v54 = vadd.f32 %v220_v53, %v4867_v45 }
 0x105   :  { %241 = vst.msk [vmem:[#allocation2 + $0x28] sm:$0xff] %vm235_vm2, %v219_v52 }
 0x106   :  { %v475_v60 = vpop.f32.mrb[2].mxu1  ;;  %289 = vst.msk [vmem:[#allocation4 + $0x28] sm:$0xff] %vm235_vm2, %v221_v54  ;;  %v224_v55 = vpop.f32.mrb[12].mxu0 }
 0x107   :  { %v4447_v62 = vpop.eup %4446  ;;  %v3715_v63 = vpop.f32.mrb[3].mxu1  ;;  %v476_v3 = vadd.f32 %v4914_v2, %v475_v60  ;;  %262 = vrot.lane.b32.xlu0 %v219_v52, %s4593_s27  ;;  %v225_v56 = vadd.f32 %v224_v55, %v4865_v44 }
 0x108   :  { %v387_v0 = vadd.f32 1.0, %v4447_v62  ;;  %v226_v57 = vpop.f32.mrb[13].mxu0 }
 0x109   :  { %v227_v58 = vadd.f32 %v226_v57, %v4867_v45  ;;  %242 = vst.msk [vmem:[#allocation2 + $0x30] sm:$0xff] %vm235_vm2, %v225_v56 }
 0x10a   :  { %4448 = vrcp.f32 %v387_v0  ;;  %v230_v59 = vpop.f32.mrb[14].mxu0 }
 0x10b   :  { %264 = vrot.lane.b32.xlu0 %v225_v56, %s4593_s27  ;;  %290 = vst.msk [vmem:[#allocation4 + $0x30] sm:$0xff] %vm235_vm2, %v227_v58  ;;  %v231_v60 = vadd.f32 %v230_v59, %v4865_v44  ;;  %v232_v61 = vpop.f32.mrb[15].mxu0 }
 0x10c   :  { %v233_v62 = vadd.f32 %v232_v61, %v4867_v45 }
 0x10d   :  { %243 = vst.msk [vmem:[#allocation2 + $0x38] sm:$0xff] %vm235_vm2, %v231_v60 }
 0x10e   :  { %291 = vst.msk [vmem:[#allocation4 + $0x38] sm:$0xff] %vm235_vm2, %v233_v62  ;;  %v758_v62 = vld [vmem:[#allocation4 + $0x10] sm:$0xff] }
 0x10f   :  { %266 = vrot.lane.b32.xlu0 %v231_v60, %s4593_s27 }
 0x114   :  { %v4449_v4 = vpop.eup %4448 }
 0x115   :  { %v479_v6 = vmul.f32 %v4449_v4, %v476_v3 }
 0x117   :  { %v480_v16 = vadd.f32 %v479_v6, %v402_v15 }
 0x163   :  { %v253_v7 = vpop.permute.xlu0 %252 }
 0x164   :  { %276 = vst.msk [vmem:[#allocation3] sm:$0xff] %vm235_vm2, %v253_v7  ;;  %v561_v7 = vld [vmem:[#allocation2 + $0x8] sm:$0xff] }
 0x167   :  { %v255_v63 = vpop.permute.xlu1 %254 }
 0x168   :  { %277 = vst.msk [vmem:[#allocation3 + $0x8] sm:$0xff] %vm235_vm2, %v255_v63 }
 0x169   :  { %v393_v9 = vpop.permute.xlu0 %392 }
 0x16b   :  { %v390_v11 = vld [vmem:[#allocation3] sm:$0xff] }
 0x16c   :  { %v395_v12 = vadd.f32 %v393_v9, %v390_v11 }
 0x16d   :  { %v257_v0 = vpop.permute.xlu0 %256 }
 0x16e   :  { %v3342_v13 = vmul.f32 -1.442695, %v395_v12  ;;  %278 = vst.msk [vmem:[#allocation3 + $0x10] sm:$0xff] %vm235_vm2, %v257_v0 }
 0x170   :  { %4450 = vpow2.f32 %v3342_v13 }
 0x171   :  { %v259_v1 = vpop.permute.xlu0 %258 }
 0x172   :  { %279 = vst.msk [vmem:[#allocation3 + $0x18] sm:$0xff] %vm235_vm2, %v259_v1 }
 0x175   :  { %v261_v3 = vpop.permute.xlu0 %260  ;;  %v745_v57 = vld [vmem:[#allocation3 + $0x10] sm:$0xff] }
 0x176   :  { %280 = vst.msk [vmem:[#allocation3 + $0x20] sm:$0xff] %vm235_vm2, %v261_v3 }
 0x179   :  { %v263_v44 = vpop.permute.xlu0 %262 }
 0x17a   :  { %v4451_v14 = vpop.eup %4450  ;;  %281 = vst.msk [vmem:[#allocation3 + $0x28] sm:$0xff] %vm235_vm2, %v263_v44 }
 0x17b   :  { %v399_v17 = vadd.f32 1.0, %v4451_v14 }
 0x17d   :  { %4452 = vrcp.f32 %v399_v17  ;;  %v265_v45 = vpop.permute.xlu0 %264 }
 0x17e   :  { %4454 = vtanh.f32 %v480_v16  ;;  %282 = vst.msk [vmem:[#allocation3 + $0x30] sm:$0xff] %vm235_vm2, %v265_v45 }
 0x181   :  { %v267_v4 = vpop.permute.xlu0 %266 }
 0x182   :  { %283 = vst.msk [vmem:[#allocation3 + $0x38] sm:$0xff] %vm235_vm2, %v267_v4 }
 0x187   :  { %v4453_v18 = vpop.eup %4452 }
 0x188   :  { %v482_v20 = vsub.f32 1.0, %v4453_v18  ;;  %v4455_v21 = vpop.eup %4454  ;;  %v484_v24 = vmul.f32 0.0, %v4453_v18 }
 0x18a   :  { %v483_v22 = vmul.f32 %v4455_v21, %v482_v20  ;;  %v570_v21 = vld [vmem:[#allocation3 + $0x8] sm:$0xff] }
 0x18c   :  { %v485_v25 = vadd.f32 %v484_v24, %v483_v22 }
 0x18e   :  { %v4918_v27 = vmin.f32 %v485_v25, 5.0 }
 0x190   :  { %3733 = vmatmul.mubr.msk.f32.vlgmr.msra.gmra.mrb[16].mxu0 %vm235_vm2, %v4918_v27  ;;  %3752 = vmatmul.mubr.msk.f32.vlgmr.msra.gmra.mrb[4].mxu1 %vm235_vm2, %v4918_v27 }
 0x191   :  { %4215 = vmatpush3.bf16.msra.mxu0 %v4742_v10  ;;  %4227 = vmatpush3.bf16.msra.mxu1 %v4803_v29 }
 0x192   :  { %4216 = vmatprep.subr.bf16.mxu0 %v4590_v5  ;;  %4228 = vmatprep.subr.bf16.mxu1 %v4590_v5 }
 0x193   :  { %3770 = vmatprep.mubr.msk.f32.mxu0 %vm4592_vm0, %v4591_v8  ;;  %3789 = vmatprep.mubr.msk.f32.mxu1 %vm4592_vm0, %v4591_v8 }
 0x195   :  { %4218 = vmatpush3.bf16.msra.mxu0 %v4765_v19  ;;  %4230 = vmatpush3.bf16.msra.mxu1 %v4816_v32 }
 0x196   :  { %4219 = vmatprep.subr.bf16.mxu0 %v4590_v5  ;;  %4231 = vmatprep.subr.bf16.mxu1 %v4590_v5 }
 0x199   :  { %4221 = vmatpush3.bf16.msra.mxu0 %v4778_v23  ;;  %4233 = vmatpush3.bf16.msra.mxu1 %v4830_v35 }
 0x19a   :  { %4222 = vmatprep.subr.bf16.mxu0 %v4590_v5  ;;  %4234 = vmatprep.subr.bf16.mxu1 %v4590_v5 }
 0x19d   :  { %4224 = vmatpush3.bf16.msra.mxu0 %v4790_v26  ;;  %4236 = vmatpush3.bf16.msra.mxu1 %v4842_v38 }
 0x19e   :  { %4237 = vmatprep.subr.bf16.mxu0 %v4590_v5  ;;  %4249 = vmatprep.subr.bf16.mxu1 %v4590_v5 }
 0x263   :  { %v556_v6 = vpop.f32.mrb[16].mxu0  ;;  %v650_v9 = vpop.f32.mrb[4].mxu1 }
 0x264   :  { %v562_v11 = vadd.f32 %v561_v7, %v556_v6  ;;  %v3753_v12 = vpop.f32.mrb[5].mxu1  ;;  %572 = vrot.lane.b32.xlu1 %v556_v6, %s4593_s27  ;;  %v3734_v13 = vpop.f32.mrb[17].mxu0  ;;  %v651_v17 = vadd.f32 %v4914_v2, %v650_v9 }
 0x266   :  { %v3345_v14 = vmul.f32 -1.442695, %v562_v11  ;;  %v911_v11 = vld [vmem:[#allocation2 + $0x18] sm:$0xff] }
 0x268   :  { %4456 = vpow2.f32 %v3345_v14 }
 0x272   :  { %v4457_v15 = vpop.eup %4456 }
 0x273   :  { %v566_v16 = vadd.f32 1.0, %v4457_v15 }
 0x275   :  { %4458 = vrcp.f32 %v566_v16 }
 0x27f   :  { %v4459_v18 = vpop.eup %4458 }
 0x280   :  { %v654_v20 = vmul.f32 %v4459_v18, %v651_v17 }
 0x282   :  { %v655_v31 = vadd.f32 %v654_v20, %v583_v30 }
 0x2d6   :  { %v573_v22 = vpop.permute.xlu1 %572 }
 0x2d7   :  { %v575_v24 = vadd.f32 %v573_v22, %v570_v21 }
 0x2d9   :  { %v3346_v25 = vmul.f32 -1.442695, %v575_v24  ;;  %v920_v24 = vld [vmem:[#allocation3 + $0x18] sm:$0xff] }
 0x2db   :  { %4460 = vpow2.f32 %v3346_v25 }
 0x2e5   :  { %v4461_v28 = vpop.eup %4460 }
 0x2e6   :  { %v579_v33 = vadd.f32 1.0, %v4461_v28 }
 0x2e8   :  { %4462 = vrcp.f32 %v579_v33  ;;  %v933_v33 = vld [vmem:[#allocation4 + $0x18] sm:$0xff] }
 0x2e9   :  { %4464 = vtanh.f32 %v655_v31 }
 0x2f2   :  { %v4463_v34 = vpop.eup %4462 }
 0x2f3   :  { %v657_v36 = vsub.f32 1.0, %v4463_v34  ;;  %v4465_v37 = vpop.eup %4464  ;;  %v659_v41 = vmul.f32 %v4463_v34, %v4918_v27 }
 0x2f5   :  { %v658_v39 = vmul.f32 %v4465_v37, %v657_v36 }
 0x2f7   :  { %v660_v42 = vadd.f32 %v659_v41, %v658_v39 }
 0x2f9   :  { %v661_v43 = vmin.f32 %v660_v42, 5.0 }
 0x2fb   :  { %3771 = vmatmul.mubr.msk.f32.vlgmr.msra.gmra.mrb[18].mxu0 %vm235_vm2, %v661_v43  ;;  %3790 = vmatmul.mubr.msk.f32.vlgmr.msra.gmra.mrb[6].mxu1 %vm235_vm2, %v661_v43 }
 0x2fc   :  { %4239 = vmatpush3.bf16.msra.mxu0 %v4742_v10  ;;  %4251 = vmatpush3.bf16.msra.mxu1 %v4803_v29 }
 0x2fd   :  { %4240 = vmatprep.subr.bf16.mxu0 %v4590_v5  ;;  %4252 = vmatprep.subr.bf16.mxu1 %v4590_v5 }
 0x2fe   :  { %3808 = vmatprep.mubr.msk.f32.mxu0 %vm4592_vm0, %v4591_v8  ;;  %3827 = vmatprep.mubr.msk.f32.mxu1 %vm4592_vm0, %v4591_v8 }
 0x300   :  { %4242 = vmatpush3.bf16.msra.mxu0 %v4765_v19  ;;  %4254 = vmatpush3.bf16.msra.mxu1 %v4816_v32 }
 0x301   :  { %4243 = vmatprep.subr.bf16.mxu0 %v4590_v5  ;;  %4255 = vmatprep.subr.bf16.mxu1 %v4590_v5 }
 0x304   :  { %4245 = vmatpush3.bf16.msra.mxu0 %v4778_v23  ;;  %4257 = vmatpush3.bf16.msra.mxu1 %v4830_v35 }
 0x305   :  { %4246 = vmatprep.subr.bf16.mxu0 %v4590_v5  ;;  %4258 = vmatprep.subr.bf16.mxu1 %v4590_v5 }
 0x308   :  { %4248 = vmatpush3.bf16.msra.mxu0 %v4790_v26  ;;  %4260 = vmatpush3.bf16.msra.mxu1 %v4842_v38 }
 0x309   :  { %4261 = vmatprep.subr.bf16.mxu0 %v4590_v5  ;;  %4273 = vmatprep.subr.bf16.mxu1 %v4590_v5 }
 0x3ce   :  { %v731_v27 = vpop.f32.mrb[18].mxu0  ;;  %v825_v47 = vpop.f32.mrb[6].mxu1 }
 0x3cf   :  { %v737_v48 = vadd.f32 %v736_v46, %v731_v27  ;;  %v3791_v49 = vpop.f32.mrb[7].mxu1  ;;  %747 = vrot.lane.b32.xlu1 %v731_v27, %s4593_s27  ;;  %v3772_v50 = vpop.f32.mrb[19].mxu0  ;;  %v826_v54 = vadd.f32 %v4914_v2, %v825_v47 }
 0x3d1   :  { %v3349_v51 = vmul.f32 -1.442695, %v737_v48  ;;  %v1086_v48 = vld [vmem:[#allocation2 + $0x20] sm:$0xff] }
 0x3d3   :  { %4466 = vpow2.f32 %v3349_v51 }
 0x3dd   :  { %v4467_v52 = vpop.eup %4466 }
 0x3de   :  { %v741_v53 = vadd.f32 1.0, %v4467_v52 }
 0x3e0   :  { %4468 = vrcp.f32 %v741_v53 }
 0x3ea   :  { %v4469_v55 = vpop.eup %4468 }
 0x3eb   :  { %v829_v56 = vmul.f32 %v4469_v55, %v826_v54 }
 0x3ed   :  { %v830_v63 = vadd.f32 %v829_v56, %v758_v62 }
 0x441   :  { %v748_v58 = vpop.permute.xlu1 %747 }
 0x442   :  { %v750_v59 = vadd.f32 %v748_v58, %v745_v57 }
 0x444   :  { %v3350_v60 = vmul.f32 -1.442695, %v750_v59  ;;  %v1095_v59 = vld [vmem:[#allocation3 + $0x20] sm:$0xff] }
 0x446   :  { %4470 = vpow2.f32 %v3350_v60 }
 0x450   :  { %v4471_v61 = vpop.eup %4470 }
 0x451   :  { %v754_v0 = vadd.f32 1.0, %v4471_v61 }
 0x453   :  { %4472 = vrcp.f32 %v754_v0  ;;  %v1108_v0 = vld [vmem:[#allocation4 + $0x20] sm:$0xff] }
 0x454   :  { %4474 = vtanh.f32 %v830_v63 }
 0x45d   :  { %v4473_v1 = vpop.eup %4472 }
 0x45e   :  { %v832_v3 = vsub.f32 1.0, %v4473_v1  ;;  %v4475_v44 = vpop.eup %4474  ;;  %v834_v4 = vmul.f32 %v4473_v1, %v661_v43 }
 0x460   :  { %v833_v45 = vmul.f32 %v4475_v44, %v832_v3 }
 0x462   :  { %v835_v6 = vadd.f32 %v834_v4, %v833_v45 }
 0x464   :  { %v836_v7 = vmin.f32 %v835_v6, 5.0 }
 0x466   :  { %3809 = vmatmul.mubr.msk.f32.vlgmr.msra.gmra.mrb[20].mxu0 %vm235_vm2, %v836_v7  ;;  %3828 = vmatmul.mubr.msk.f32.vlgmr.msra.gmra.mrb[8].mxu1 %vm235_vm2, %v836_v7 }
 0x467   :  { %4263 = vmatpush3.bf16.msra.mxu0 %v4742_v10  ;;  %4275 = vmatpush3.bf16.msra.mxu1 %v4803_v29 }
 0x468   :  { %4264 = vmatprep.subr.bf16.mxu0 %v4590_v5  ;;  %4276 = vmatprep.subr.bf16.mxu1 %v4590_v5 }
 0x469   :  { %3846 = vmatprep.mubr.msk.f32.mxu0 %vm4592_vm0, %v4591_v8  ;;  %3865 = vmatprep.mubr.msk.f32.mxu1 %vm4592_vm0, %v4591_v8 }
 0x46b   :  { %4266 = vmatpush3.bf16.msra.mxu0 %v4765_v19  ;;  %4278 = vmatpush3.bf16.msra.mxu1 %v4816_v32 }
 0x46c   :  { %4267 = vmatprep.subr.bf16.mxu0 %v4590_v5  ;;  %4279 = vmatprep.subr.bf16.mxu1 %v4590_v5 }
 0x46f   :  { %4269 = vmatpush3.bf16.msra.mxu0 %v4778_v23  ;;  %4281 = vmatpush3.bf16.msra.mxu1 %v4830_v35 }
 0x470   :  { %4270 = vmatprep.subr.bf16.mxu0 %v4590_v5  ;;  %4282 = vmatprep.subr.bf16.mxu1 %v4590_v5 }
 0x473   :  { %4272 = vmatpush3.bf16.msra.mxu0 %v4790_v26  ;;  %4284 = vmatpush3.bf16.msra.mxu1 %v4842_v38 }
 0x474   :  { %4285 = vmatprep.subr.bf16.mxu0 %v4590_v5  ;;  %4297 = vmatprep.subr.bf16.mxu1 %v4590_v5 }
 0x539   :  { %v906_v9 = vpop.f32.mrb[20].mxu0  ;;  %v1000_v12 = vpop.f32.mrb[8].mxu1 }
 0x53a   :  { %v912_v13 = vadd.f32 %v911_v11, %v906_v9  ;;  %v3829_v14 = vpop.f32.mrb[9].mxu1  ;;  %922 = vrot.lane.b32.xlu1 %v906_v9, %s4593_s27  ;;  %v3810_v15 = vpop.f32.mrb[21].mxu0  ;;  %v1001_v20 = vadd.f32 %v4914_v2, %v1000_v12 }
 0x53c   :  { %v3353_v16 = vmul.f32 -1.442695, %v912_v13  ;;  %v1261_v13 = vld [vmem:[#allocation2 + $0x28] sm:$0xff] }
 0x53e   :  { %4476 = vpow2.f32 %v3353_v16 }
 0x548   :  { %v4477_v17 = vpop.eup %4476 }
 0x549   :  { %v916_v18 = vadd.f32 1.0, %v4477_v17 }
 0x54b   :  { %4478 = vrcp.f32 %v916_v18 }
 0x555   :  { %v4479_v21 = vpop.eup %4478 }
 0x556   :  { %v1004_v22 = vmul.f32 %v4479_v21, %v1001_v20 }
 0x558   :  { %v1005_v34 = vadd.f32 %v1004_v22, %v933_v33 }
 0x5ac   :  { %v923_v25 = vpop.permute.xlu1 %922 }
 0x5ad   :  { %v925_v28 = vadd.f32 %v923_v25, %v920_v24 }
 0x5af   :  { %v3354_v30 = vmul.f32 -1.442695, %v925_v28  ;;  %v1270_v28 = vld [vmem:[#allocation3 + $0x28] sm:$0xff] }
 0x5b1   :  { %4480 = vpow2.f32 %v3354_v30 }
 0x5bb   :  { %v4481_v31 = vpop.eup %4480 }
 0x5bc   :  { %v929_v36 = vadd.f32 1.0, %v4481_v31 }
 0x5be   :  { %4482 = vrcp.f32 %v929_v36  ;;  %v1283_v36 = vld [vmem:[#allocation4 + $0x28] sm:$0xff] }
 0x5bf   :  { %4484 = vtanh.f32 %v1005_v34 }
 0x5c8   :  { %v4483_v37 = vpop.eup %4482 }
 0x5c9   :  { %v1007_v39 = vsub.f32 1.0, %v4483_v37  ;;  %v4485_v41 = vpop.eup %4484  ;;  %v1009_v43 = vmul.f32 %v4483_v37, %v836_v7 }
 0x5cb   :  { %v1008_v42 = vmul.f32 %v4485_v41, %v1007_v39 }
 0x5cd   :  { %v1010_v27 = vadd.f32 %v1009_v43, %v1008_v42 }
 0x5cf   :  { %v1011_v46 = vmin.f32 %v1010_v27, 5.0 }
 0x5d1   :  { %3847 = vmatmul.mubr.msk.f32.vlgmr.msra.gmra.mrb[22].mxu0 %vm235_vm2, %v1011_v46  ;;  %3866 = vmatmul.mubr.msk.f32.vlgmr.msra.gmra.mrb[10].mxu1 %vm235_vm2, %v1011_v46 }
 0x5d2   :  { %4287 = vmatpush3.bf16.msra.mxu0 %v4742_v10  ;;  %4299 = vmatpush3.bf16.msra.mxu1 %v4803_v29 }
 0x5d3   :  { %4288 = vmatprep.subr.bf16.mxu0 %v4590_v5  ;;  %4300 = vmatprep.subr.bf16.mxu1 %v4590_v5 }
 0x5d4   :  { %3884 = vmatprep.mubr.msk.f32.mxu0 %vm4592_vm0, %v4591_v8  ;;  %3903 = vmatprep.mubr.msk.f32.mxu1 %vm4592_vm0, %v4591_v8 }
 0x5d6   :  { %4290 = vmatpush3.bf16.msra.mxu0 %v4765_v19  ;;  %4302 = vmatpush3.bf16.msra.mxu1 %v4816_v32 }
 0x5d7   :  { %4291 = vmatprep.subr.bf16.mxu0 %v4590_v5  ;;  %4303 = vmatprep.subr.bf16.mxu1 %v4590_v5 }
 0x5da   :  { %4293 = vmatpush3.bf16.msra.mxu0 %v4778_v23  ;;  %4305 = vmatpush3.bf16.msra.mxu1 %v4830_v35 }
 0x5db   :  { %4294 = vmatprep.subr.bf16.mxu0 %v4590_v5  ;;  %4306 = vmatprep.subr.bf16.mxu1 %v4590_v5 }
 0x5de   :  { %4296 = vmatpush3.bf16.msra.mxu0 %v4790_v26  ;;  %4308 = vmatpush3.bf16.msra.mxu1 %v4842_v38 }
 0x5df   :  { %4309 = vmatprep.subr.bf16.mxu0 %v4590_v5  ;;  %4321 = vmatprep.subr.bf16.mxu1 %v4590_v5 }
 0x6a4   :  { %v1081_v47 = vpop.f32.mrb[22].mxu0  ;;  %v1175_v49 = vpop.f32.mrb[10].mxu1 }
 0x6a5   :  { %v1087_v50 = vadd.f32 %v1086_v48, %v1081_v47  ;;  %v3867_v51 = vpop.f32.mrb[11].mxu1  ;;  %1097 = vrot.lane.b32.xlu1 %v1081_v47, %s4593_s27  ;;  %v3848_v52 = vpop.f32.mrb[23].mxu0  ;;  %v1176_v56 = vadd.f32 %v4914_v2, %v1175_v49 }
 0x6a7   :  { %v3357_v53 = vmul.f32 -1.442695, %v1087_v50 }
 0x6a9   :  { %4486 = vpow2.f32 %v3357_v53  ;;  %v1445_v53 = vld [vmem:[#allocation3 + $0x30] sm:$0xff] }
 0x6b3   :  { %v4487_v54 = vpop.eup %4486 }
 0x6b4   :  { %v1091_v55 = vadd.f32 1.0, %v4487_v54 }
 0x6b6   :  { %4488 = vrcp.f32 %v1091_v55 }
 0x6c0   :  { %v4489_v57 = vpop.eup %4488 }
 0x6c1   :  { %v1179_v58 = vmul.f32 %v4489_v57, %v1176_v56 }
 0x6c3   :  { %v1180_v1 = vadd.f32 %v1179_v58, %v1108_v0  ;;  %v1458_v58 = vld [vmem:[#allocation4 + $0x30] sm:$0xff] }
 0x717   :  { %v1098_v60 = vpop.permute.xlu1 %1097 }
 0x718   :  { %v1100_v61 = vadd.f32 %v1098_v60, %v1095_v59 }
 0x71a   :  { %v3358_v62 = vmul.f32 -1.442695, %v1100_v61 }
 0x71c   :  { %4490 = vpow2.f32 %v3358_v62 }
 0x726   :  { %v4491_v63 = vpop.eup %4490 }
 0x727   :  { %v1104_v3 = vadd.f32 1.0, %v4491_v63 }
 0x729   :  { %4492 = vrcp.f32 %v1104_v3 }
 0x72a   :  { %4494 = vtanh.f32 %v1180_v1 }
 0x733   :  { %v4493_v44 = vpop.eup %4492 }
 0x734   :  { %v1182_v45 = vsub.f32 1.0, %v4493_v44  ;;  %v4495_v4 = vpop.eup %4494  ;;  %v1184_v7 = vmul.f32 %v4493_v44, %v1011_v46 }
 0x736   :  { %v1183_v6 = vmul.f32 %v4495_v4, %v1182_v45  ;;  %v1611_v4 = vld [vmem:[#allocation2 + $0x38] sm:$0xff] }
 0x738   :  { %v1185_v9 = vadd.f32 %v1184_v7, %v1183_v6 }
 0x73a   :  { %v1186_v11 = vmin.f32 %v1185_v9, 5.0 }
 0x73c   :  { %3885 = vmatmul.mubr.msk.f32.vlgmr.msra.gmra.mrb[24].mxu0 %vm235_vm2, %v1186_v11  ;;  %3904 = vmatmul.mubr.msk.f32.vlgmr.msra.gmra.mrb[12].mxu1 %vm235_vm2, %v1186_v11 }
 0x73d   :  { %4311 = vmatpush3.bf16.msra.mxu0 %v4742_v10  ;;  %4323 = vmatpush3.bf16.msra.mxu1 %v4803_v29 }
 0x73e   :  { %4312 = vmatprep.subr.bf16.mxu0 %v4590_v5  ;;  %4324 = vmatprep.subr.bf16.mxu1 %v4590_v5 }
 0x73f   :  { %3922 = vmatprep.mubr.msk.f32.mxu0 %vm4592_vm0, %v4591_v8  ;;  %3941 = vmatprep.mubr.msk.f32.mxu1 %vm4592_vm0, %v4591_v8 }
 0x741   :  { %4314 = vmatpush3.bf16.msra.mxu0 %v4765_v19  ;;  %4326 = vmatpush3.bf16.msra.mxu1 %v4816_v32 }
 0x742   :  { %4315 = vmatprep.subr.bf16.mxu0 %v4590_v5  ;;  %4327 = vmatprep.subr.bf16.mxu1 %v4590_v5 }
 0x745   :  { %4317 = vmatpush3.bf16.msra.mxu0 %v4778_v23  ;;  %4329 = vmatpush3.bf16.msra.mxu1 %v4830_v35 }
 0x746   :  { %4318 = vmatprep.subr.bf16.mxu0 %v4590_v5  ;;  %4330 = vmatprep.subr.bf16.mxu1 %v4590_v5 }
 0x749   :  { %4320 = vmatpush3.bf16.msra.mxu0 %v4790_v26  ;;  %4332 = vmatpush3.bf16.msra.mxu1 %v4842_v38 }
 0x74a   :  { %4333 = vmatprep.subr.bf16.mxu0 %v4590_v5  ;;  %4345 = vmatprep.subr.bf16.mxu1 %v4590_v5 }
 0x80f   :  { %v1256_v12 = vpop.f32.mrb[24].mxu0  ;;  %v1350_v14 = vpop.f32.mrb[12].mxu1 }
 0x810   :  { %v1262_v15 = vadd.f32 %v1261_v13, %v1256_v12  ;;  %v3905_v16 = vpop.f32.mrb[13].mxu1  ;;  %1272 = vrot.lane.b32.xlu1 %v1256_v12, %s4593_s27  ;;  %v3886_v17 = vpop.f32.mrb[25].mxu0  ;;  %v1351_v22 = vadd.f32 %v4914_v2, %v1350_v14  ;;  %v1712_v13 = vld [vmem:[%s5574_s0] sm:$0xff]  ;;  %v1713_v14 = vld [vmem:[%s5574_s0 + $0x8] sm:$0xff] }
 0x811   :  { %v1714_v16 = vld [vmem:[%s5574_s0 + $0x10] sm:$0xff]  ;;  %v1715_v17 = vld [vmem:[%s5574_s0 + $0x18] sm:$0xff] }
 0x812   :  { %v3361_v18 = vmul.f32 -1.442695, %v1262_v15  ;;  %v4358_v15 = vpack.c.bf16 %v1713_v14, %v1712_v13 }
 0x814   :  { %4496 = vpow2.f32 %v3361_v18  ;;  %v4361_v18 = vpack.c.bf16 %v1715_v17, %v1714_v16 }
 0x81e   :  { %v4497_v20 = vpop.eup %4496 }
 0x81f   :  { %v1266_v21 = vadd.f32 1.0, %v4497_v20  ;;  %v1716_v20 = vld [vmem:[%s5574_s0 + $0x20] sm:$0xff] }
 0x821   :  { %4498 = vrcp.f32 %v1266_v21  ;;  %v1717_v21 = vld [vmem:[%s5574_s0 + $0x28] sm:$0xff] }
 0x82b   :  { %v4499_v24 = vpop.eup %4498 }
 0x82c   :  { %v1354_v25 = vmul.f32 %v4499_v24, %v1351_v22  ;;  %v4364_v24 = vpack.c.bf16 %v1717_v21, %v1716_v20 }
 0x82e   :  { %v1355_v37 = vadd.f32 %v1354_v25, %v1283_v36 }
 0x882   :  { %v1273_v30 = vpop.permute.xlu1 %1272 }
 0x883   :  { %v1275_v31 = vadd.f32 %v1273_v30, %v1270_v28  ;;  %v1718_v28 = vld [vmem:[%s5574_s0 + $0x30] sm:$0xff]  ;;  %v1719_v30 = vld [vmem:[%s5574_s0 + $0x38] sm:$0xff] }
 0x885   :  { %v3362_v33 = vmul.f32 -1.442695, %v1275_v31  ;;  %v4367_v31 = vpack.c.bf16 %v1719_v30, %v1718_v28 }
 0x887   :  { %4500 = vpow2.f32 %v3362_v33 }
 0x891   :  { %v4501_v34 = vpop.eup %4500 }
 0x892   :  { %v1279_v39 = vadd.f32 1.0, %v4501_v34 }
 0x894   :  { %4502 = vrcp.f32 %v1279_v39 }
 0x895   :  { %4504 = vtanh.f32 %v1355_v37  ;;  %v1620_v37 = vld [vmem:[#allocation3 + $0x38] sm:$0xff] }
 0x89e   :  { %v4503_v41 = vpop.eup %4502 }
 0x89f   :  { %v1357_v42 = vsub.f32 1.0, %v4503_v41  ;;  %v4505_v43 = vpop.eup %4504  ;;  %v1359_v46 = vmul.f32 %v4503_v41, %v1186_v11 }
 0x8a1   :  { %v1358_v27 = vmul.f32 %v4505_v43, %v1357_v42 }
 0x8a3   :  { %v1360_v47 = vadd.f32 %v1359_v46, %v1358_v27  ;;  %v1633_v27 = vld [vmem:[#allocation4 + $0x38] sm:$0xff] }
 0x8a5   :  { %v1361_v48 = vmin.f32 %v1360_v47, 5.0 }
 0x8a7   :  { %3923 = vmatmul.mubr.msk.f32.vlgmr.msra.gmra.mrb[26].mxu0 %vm235_vm2, %v1361_v48  ;;  %3942 = vmatmul.mubr.msk.f32.vlgmr.msra.gmra.mrb[14].mxu1 %vm235_vm2, %v1361_v48 }
 0x8a8   :  { %4335 = vmatpush3.bf16.msra.mxu0 %v4742_v10  ;;  %4347 = vmatpush3.bf16.msra.mxu1 %v4803_v29 }
 0x8a9   :  { %4336 = vmatprep.subr.bf16.mxu0 %v4590_v5  ;;  %4348 = vmatprep.subr.bf16.mxu1 %v4590_v5 }
 0x8aa   :  { %3960 = vmatprep.mubr.msk.f32.mxu0 %vm4592_vm0, %v4591_v8  ;;  %3979 = vmatprep.mubr.msk.f32.mxu1 %vm4592_vm0, %v4591_v8 }
 0x8ac   :  { %4338 = vmatpush3.bf16.msra.mxu0 %v4765_v19  ;;  %4350 = vmatpush3.bf16.msra.mxu1 %v4816_v32  ;;  %v1436_v19 = vld [vmem:[#allocation2 + $0x30] sm:$0xff] }
 0x8ad   :  { %4339 = vmatprep.subr.bf16.mxu0 %v4590_v5  ;;  %4351 = vmatprep.subr.bf16.mxu1 %v4590_v5 }
 0x8b0   :  { %4341 = vmatpush3.bf16.msra.mxu0 %v4778_v23  ;;  %4353 = vmatpush3.bf16.msra.mxu1 %v4830_v35 }
 0x8b1   :  { %4342 = vmatprep.subr.bf16.mxu0 %v4590_v5  ;;  %4354 = vmatprep.subr.bf16.mxu1 %v4590_v5 }
 0x8b4   :  { %4344 = vmatpush3.bf16.msra.mxu0 %v4790_v26  ;;  %4356 = vmatpush3.bf16.msra.mxu1 %v4842_v38 }
 0x8b5   :  { %4357 = vmatprep.subr.bf16.mxu0 %v4590_v5  ;;  %4369 = vmatprep.subr.bf16.mxu1 %v4590_v5 }
 0x97a   :  { %v1431_v10 = vpop.f32.mrb[26].mxu0  ;;  %v1525_v29 = vpop.f32.mrb[14].mxu1 }
 0x97b   :  { %v1437_v32 = vadd.f32 %v1436_v19, %v1431_v10  ;;  %v3943_v49 = vpop.f32.mrb[15].mxu1  ;;  %1447 = vrot.lane.b32.xlu1 %v1431_v10, %s4593_s27  ;;  %v3924_v23 = vpop.f32.mrb[27].mxu0  ;;  %v1526_v26 = vadd.f32 %v4914_v2, %v1525_v29 }
 0x97c   :  { %v1851_v23 = vld [vmem:[%s5538_s9] sm:$0xff] }
 0x97d   :  { %v3365_v35 = vmul.f32 -1.442695, %v1437_v32 }
 0x97f   :  { %4506 = vpow2.f32 %v3365_v35  ;;  %v1852_v35 = vld [vmem:[%s5538_s9 + $0x8] sm:$0xff] }
 0x989   :  { %v4507_v50 = vpop.eup %4506 }
 0x98a   :  { %v1441_v51 = vadd.f32 1.0, %v4507_v50  ;;  %v5154_v50 = vpack.c.bf16 %v1852_v35, %v1851_v23 }
 0x98c   :  { %4508 = vrcp.f32 %v1441_v51  ;;  %v3372_v51 = vld [vmem:[%s5575_s25] ss:$0 sm:$0xff] }
 0x996   :  { %v4509_v38 = vpop.eup %4508 }
 0x997   :  { %v1529_v52 = vmul.f32 %v4509_v38, %v1526_v26 }
 0x999   :  { %v1530_v59 = vadd.f32 %v1529_v52, %v1458_v58 }
 0x9ed   :  { %v1448_v54 = vpop.permute.xlu1 %1447 }
 0x9ee   :  { %v1450_v55 = vadd.f32 %v1448_v54, %v1445_v53 }
 0x9f0   :  { %v3366_v56 = vmul.f32 -1.442695, %v1450_v55  ;;  %v1853_v55 = vld [vmem:[%s5538_s9 + $0x10] sm:$0xff] }
 0x9f2   :  { %4510 = vpow2.f32 %v3366_v56  ;;  %v1854_v56 = vld [vmem:[%s5538_s9 + $0x18] sm:$0xff] }
 0x9fc   :  { %v4511_v57 = vpop.eup %4510 }
 0x9fd   :  { %v1454_v60 = vadd.f32 1.0, %v4511_v57  ;;  %v5180_v57 = vpack.c.bf16 %v1854_v56, %v1853_v55 }
 0x9ff   :  { %4512 = vrcp.f32 %v1454_v60  ;;  %v1807_v60 = vld [vmem:[%s5576_s30] sm:$0xff] }
 0xa00   :  { %4514 = vtanh.f32 %v1530_v59 }
 0xa09   :  { %v4513_v61 = vpop.eup %4512 }
 0xa0a   :  { %v1532_v62 = vsub.f32 1.0, %v4513_v61  ;;  %v4515_v63 = vpop.eup %4514  ;;  %v1534_v1 = vmul.f32 %v4513_v61, %v1361_v48 }
 0xa0c   :  { %v1533_v0 = vmul.f32 %v4515_v63, %v1532_v62 }
 0xa0e   :  { %v1535_v3 = vadd.f32 %v1534_v1, %v1533_v0  ;;  %v5201_v0 = vld [vmem:[%s5539_s10] ss:$0 sm:$0xff] }
 0xa10   :  { %v1536_v44 = vmin.f32 %v1535_v3, 5.0 }
 0xa12   :  { %3961 = vmatmul.mubr.msk.f32.vlgmr.msra.gmra.mrb[28].mxu0 %vm235_vm2, %v1536_v44  ;;  %3980 = vmatmul.mubr.msk.f32.vlgmr.msra.gmra.mrb[16].mxu1 %vm235_vm2, %v1536_v44 }
 0xa13   :  { %3998 = vmatprep.mubr.msk.f32.mxu0 %vm4592_vm0, %v4591_v8  ;;  %4009 = vmatprep.mubr.msk.f32.mxu1 %vm4592_vm0, %v4591_v8 }
 0xa14   :  { %4359 = vmatpush3.bf16.msra.mxu0 %v4358_v15  ;;  %4371 = vmatpush3.bf16.msra.mxu1 %v5154_v50 }
 0xa15   :  { %4360 = vmatprep.subr.bf16.mxu0 %v4590_v5  ;;  %4372 = vmatprep.subr.bf16.mxu1 %v4590_v5 }
 0xa18   :  { %4362 = vmatpush3.bf16.msra.mxu0 %v4361_v18  ;;  %4374 = vmatpush3.bf16.msra.mxu1 %v5180_v57 }
 0xa19   :  { %4363 = vmatprep.subr.bf16.mxu0 %v4590_v5  ;;  %4381 = vmatprep.subr.bf16.mxu1 %v4590_v5 }
 0xa1c   :  { %4365 = vmatpush3.bf16.msra.mxu0 %v4364_v24 }
 0xa1d   :  { %4366 = vmatprep.subr.bf16.mxu0 %v4590_v5 }
 0xa20   :  { %4368 = vmatpush3.bf16.msra.mxu0 %v4367_v31 }
 0xa21   :  { %4375 = vmatprep.subr.bf16.mxu0 %v4590_v5 }
 0xae5   :  { %v1606_v45 = vpop.f32.mrb[28].mxu0  ;;  %v1700_v6 = vpop.f32.mrb[16].mxu1 }
 0xae6   :  { %v1612_v7 = vadd.f32 %v1611_v4, %v1606_v45  ;;  %v3981_v9 = vpop.f32.mrb[17].mxu1  ;;  %1622 = vrot.lane.b32.xlu1 %v1606_v45, %s4593_s27  ;;  %v3962_v11 = vpop.f32.mrb[29].mxu0  ;;  %v1701_v33 = vadd.f32 %v4914_v2, %v1700_v6 }
 0xae8   :  { %v3369_v12 = vmul.f32 -1.442695, %v1612_v7 }
 0xaea   :  { %4516 = vpow2.f32 %v3369_v12 }
 0xaf4   :  { %v4517_v22 = vpop.eup %4516 }
 0xaf5   :  { %v1616_v25 = vadd.f32 1.0, %v4517_v22 }
 0xaf7   :  { %4518 = vrcp.f32 %v1616_v25 }
 0xb01   :  { %v4519_v34 = vpop.eup %4518 }
 0xb02   :  { %v1704_v36 = vmul.f32 %v4519_v34, %v1701_v33 }
 0xb04   :  { %v1705_v46 = vadd.f32 %v1704_v36, %v1633_v27 }
 0xb58   :  { %v1623_v39 = vpop.permute.xlu1 %1622 }
 0xb59   :  { %v1625_v41 = vadd.f32 %v1623_v39, %v1620_v37 }
 0xb5b   :  { %v3370_v42 = vmul.f32 -1.442695, %v1625_v41 }
 0xb5d   :  { %4520 = vpow2.f32 %v3370_v42 }
 0xb67   :  { %v4521_v43 = vpop.eup %4520 }
 0xb68   :  { %v1629_v47 = vadd.f32 1.0, %v4521_v43 }
 0xb6a   :  { %4522 = vrcp.f32 %v1629_v47 }
 0xb6b   :  { %4524 = vtanh.f32 %v1705_v46 }
 0xb74   :  { %v4523_v48 = vpop.eup %4522 }
 0xb75   :  { %v1707_v10 = vsub.f32 1.0, %v4523_v48  ;;  %v4525_v19 = vpop.eup %4524  ;;  %v1709_v32 = vmul.f32 %v4523_v48, %v1536_v44 }
 0xb77   :  { %v1708_v29 = vmul.f32 %v4525_v19, %v1707_v10 }
 0xb79   :  { %v1710_v49 = vadd.f32 %v1709_v32, %v1708_v29 }
 0xb7b   :  { %v1711_v2 = vmin.f32 %v1710_v49, 5.0 }
 0xb7d   :  { %3999 = vmatmul.mubr.msk.f32.vlgmr.msra.gmra.mrb[30].mxu0 %vm235_vm2, %v1711_v2 }
 0xb7e   :  { %4020 = vmatprep.mubr.msk.f32.mxu0 %vm4592_vm0, %v4591_v8  ;;  %4377 = vmatpush3.bf16.msra.mxu0 %v5154_v50 }
 0xb7f   :  { %4378 = vmatprep.subr.bf16.mxu0 %v4590_v5 }
 0xb82   :  { %4380 = vmatpush3.bf16.msra.mxu0 %v5180_v57 }
 0xb83   :  { %4387 = vmatprep.subr.bf16.mxu0 %v4590_v5 }
 0xc50   :  { %v1796_v26 = vpop.f32.mrb[30].mxu0 }
 0xc51   :  { %v5163_v38 = vadd.f32 %v3372_v51, %v1796_v26  ;;  %v4000_v52 = vpop.f32.mrb[31].mxu0 }
 0xc53   :  { %v5166_v53 = vmax.f32 %v5163_v38, -9.2103405  ;;  %1801 = vst.msk [vmem:[%s5551_s22] sm:$0xff] %vm97_vm1, %v5163_v38  ;;  %s4594_s22 = smov 96  }
 0xc55   :  { %v1808_v54 = vmul.f32 0.5, %v5166_v53 }
 0xc57   :  { %v1809_v58 = vmul.f32 1.442695, %v1808_v54 }
 0xc59   :  { %4526 = vpow2.f32 %v1809_v58 }
 0xc63   :  { %v4527_v59 = vpop.eup %4526 }
 0xc64   :  { %1812 = vrot.lane.b32.xlu0 %v4527_v59, %s4594_s22 }
 0xcd6   :  { %v1813_v61 = vpop.permute.xlu0 %1812 }
 0xcd7   :  { %v1815_v62 = vmul.f32 %v1813_v61, %v1807_v60 }
 0xcd9   :  { %v1816_v63 = vadd.f32 %v1815_v62, %v5163_v38 }
 0xcdb   :  { %4010 = vmatmul.mubr.msk.f32.vlgmr.msra.gmra.mrb[18].mxu1 %vm97_vm1, %v1816_v63 }
 0xcdc   :  { %4383 = vmatpush3.bf16.msra.mxu1 %v5154_v50  ;;  %4031 = vmatprep.mubr.msk.f32.mxu1 %vm4592_vm0, %v4591_v8 }
 0xcdd   :  { %4384 = vmatprep.subr.bf16.mxu1 %v4590_v5 }
 0xce0   :  { %4386 = vmatpush3.bf16.msra.mxu1 %v5180_v57 }
 0xce1   :  { %4393 = vmatprep.subr.bf16.mxu1 %v4590_v5 }
 0xdae   :  { %v1931_v1 = vpop.f32.mrb[18].mxu1 }
 0xdaf   :  { %v1932_v3 = vadd.f32 %v5201_v0, %v1931_v1  ;;  %v4011_v44 = vpop.f32.mrb[19].mxu1 }
 0xdb1   :  { %1942 = vrot.lane.b32.xlu1 %v1932_v3, %s4595_s4  ;;  %v3377_v45 = vmul.f32 -1.442695, %v1932_v3 }
 0xdb3   :  { %4528 = vpow2.f32 %v3377_v45 }
 0xdbd   :  { %v4529_v4 = vpop.eup %4528 }
 0xdbe   :  { %v1938_v6 = vadd.f32 1.0, %v4529_v4 }
 0xdc0   :  { %4530 = vrcp.f32 %v1938_v6 }
 0xdca   :  { %v4531_v7 = vpop.eup %4530 }
 0xdcb   :  { %v1952_v16 = vsub.f32 1.0, %v4531_v7 }
 0xe23   :  { %v1943_v9 = vpop.permute.xlu1 %1942 }
 0xe24   :  { %v1945_v11 = vmul.f32 %v4531_v7, %v1943_v9 }
 0xe26   :  { %1947 = vrot.lane.b32.xlu0 %v1945_v11, %s4593_s27 }
 0xe2a   :  { %1958 = vrot.lane.b32.xlu0 %v1816_v63, %s4595_s4 }
 0xe98   :  { %v1948_v12 = vpop.permute.xlu0 %1947 }
 0xe99   :  { %v1950_v13 = vadd.f32 %v1948_v12, %v1932_v3 }
 0xe9b   :  { %4532 = vtanh.f32 %v1950_v13 }
 0xe9c   :  { %v1959_v15 = vpop.permute.xlu0 %1958 }
 0xe9d   :  { %v1961_v18 = vmul.f32 %v4531_v7, %v1959_v15 }
 0xea5   :  { %v4533_v14 = vpop.eup %4532 }
 0xea6   :  { %1954 = vrot.lane.b32.xlu1 %v4533_v14, %s4594_s22 }
 0xf18   :  { %v1955_v17 = vpop.permute.xlu1 %1954 }
 0xf19   :  { %v1957_v20 = vmul.f32 %v1955_v17, %v1952_v16 }
 0xf1b   :  { %v1962_v21 = vadd.f32 %v1961_v18, %v1957_v20 }
 0xf1d   :  { %v3378_v22 = vclamps-f32 %v1962_v21, 5.0 }
 0xf1f   :  { %1966 = vrot.lane.b32.xlu1 %v3378_v22, %s4594_s22 }
 0xf91   :  { %v1967_v24 = vpop.permute.xlu1 %1966 }
 0xf92   :  { %1969 = vst.msk [vmem:[%s5549_s20] sm:$0xff] %vm97_vm1, %v1967_v24  ;;  %4021 = vmatmul.mubr.msk.f32.vlgmr.msra.gmra.mrb[32].mxu0 %vm97_vm1, %v1967_v24 }
 0xf93   :  { %4389 = vmatpush3.bf16.msra.mxu0 %v5154_v50  ;;  %4042 = vmatprep.mubr.msk.f32.mxu0 %vm4592_vm0, %v4591_v8 }
 0xf94   :  { %4390 = vmatprep.subr.bf16.mxu0 %v4590_v5 }
 0xf97   :  { %4392 = vmatpush3.bf16.msra.mxu0 %v5180_v57 }
 0xf98   :  { %4399 = vmatprep.subr.bf16.mxu0 %v4590_v5 }
0x1065   :  { %v2038_v25 = vpop.f32.mrb[32].mxu0 }
0x1066   :  { %v2039_v28 = vadd.f32 %v5201_v0, %v2038_v25  ;;  %v4022_v30 = vpop.f32.mrb[33].mxu0 }
0x1068   :  { %2049 = vrot.lane.b32.xlu0 %v2039_v28, %s4595_s4  ;;  %v3380_v31 = vmul.f32 -1.442695, %v2039_v28 }
0x106a   :  { %4534 = vpow2.f32 %v3380_v31 }
0x1074   :  { %v4535_v33 = vpop.eup %4534 }
0x1075   :  { %v2045_v34 = vadd.f32 1.0, %v4535_v33 }
0x1077   :  { %4536 = vrcp.f32 %v2045_v34 }
0x1081   :  { %v4537_v36 = vpop.eup %4536 }
0x1082   :  { %v2059_v27 = vsub.f32 1.0, %v4537_v36  ;;  %v2065_v47 = vmul.f32 %v4537_v36, %v3378_v22 }
0x10da   :  { %v2050_v37 = vpop.permute.xlu0 %2049 }
0x10db   :  { %v2052_v39 = vmul.f32 %v4537_v36, %v2050_v37 }
0x10dd   :  { %2054 = vrot.lane.b32.xlu1 %v2052_v39, %s4593_s27 }
0x114f   :  { %v2055_v41 = vpop.permute.xlu1 %2054 }
0x1150   :  { %v2057_v42 = vadd.f32 %v2055_v41, %v2039_v28 }
0x1152   :  { %4538 = vtanh.f32 %v2057_v42 }
0x115c   :  { %v4539_v43 = vpop.eup %4538 }
0x115d   :  { %2061 = vrot.lane.b32.xlu0 %v4539_v43, %s4594_s22 }
0x11cf   :  { %v2062_v46 = vpop.permute.xlu0 %2061 }
0x11d0   :  { %v2064_v48 = vmul.f32 %v2062_v46, %v2059_v27 }
0x11d2   :  { %v2066_v10 = vadd.f32 %v2065_v47, %v2064_v48 }
0x11d4   :  { %v3381_v19 = vclamps-f32 %v2066_v10, 5.0 }
0x11d6   :  { %2070 = vrot.lane.b32.xlu1 %v3381_v19, %s4594_s22 }
0x1248   :  { %v2071_v29 = vpop.permute.xlu1 %2070 }
0x1249   :  { %3382 = vst.msk [vmem:[%s5549_s20 + $0x8] sm:$0xff] %vm97_vm1, %v2071_v29  ;;  %4032 = vmatmul.mubr.msk.f32.vlgmr.msra.gmra.mrb[20].mxu1 %vm97_vm1, %v2071_v29 }
0x124a   :  { %4395 = vmatpush3.bf16.msra.mxu1 %v5154_v50  ;;  %4053 = vmatprep.mubr.msk.f32.mxu1 %vm4592_vm0, %v4591_v8 }
0x124b   :  { %4396 = vmatprep.subr.bf16.mxu1 %v4590_v5 }
0x124e   :  { %4398 = vmatpush3.bf16.msra.mxu1 %v5180_v57 }
0x124f   :  { %4405 = vmatprep.subr.bf16.mxu1 %v4590_v5 }
0x131c   :  { %v2143_v32 = vpop.f32.mrb[20].mxu1 }
0x131d   :  { %v2144_v49 = vadd.f32 %v5201_v0, %v2143_v32  ;;  %v4033_v2 = vpop.f32.mrb[21].mxu1 }
0x131f   :  { %2154 = vrot.lane.b32.xlu0 %v2144_v49, %s4595_s4  ;;  %v3384_v23 = vmul.f32 -1.442695, %v2144_v49 }
0x1321   :  { %4540 = vpow2.f32 %v3384_v23 }
0x132b   :  { %v4541_v35 = vpop.eup %4540 }
0x132c   :  { %v2150_v51 = vadd.f32 1.0, %v4541_v35 }
0x132e   :  { %4542 = vrcp.f32 %v2150_v51 }
0x1338   :  { %v4543_v26 = vpop.eup %4542 }
0x1339   :  { %v2164_v59 = vsub.f32 1.0, %v4543_v26  ;;  %v2170_v61 = vmul.f32 %v4543_v26, %v3381_v19 }
0x1391   :  { %v2155_v52 = vpop.permute.xlu0 %2154 }
0x1392   :  { %v2157_v54 = vmul.f32 %v4543_v26, %v2155_v52 }
0x1394   :  { %2159 = vrot.lane.b32.xlu1 %v2157_v54, %s4593_s27 }
0x1406   :  { %v2160_v55 = vpop.permute.xlu1 %2159 }
0x1407   :  { %v2162_v56 = vadd.f32 %v2160_v55, %v2144_v49  ;;  %v2714_v55 = vld [vmem:[%s5540_s11 + $0x8] sm:$0xff] }
0x1409   :  { %4544 = vtanh.f32 %v2162_v56 }
0x1413   :  { %v4545_v58 = vpop.eup %4544 }
0x1414   :  { %2166 = vrot.lane.b32.xlu0 %v4545_v58, %s4594_s22 }
0x1486   :  { %v2167_v60 = vpop.permute.xlu0 %2166 }
0x1487   :  { %v2169_v62 = vmul.f32 %v2167_v60, %v2164_v59 }
0x1489   :  { %v2171_v63 = vadd.f32 %v2170_v61, %v2169_v62 }
0x148b   :  { %v3385_v1 = vclamps-f32 %v2171_v63, 5.0 }
0x148d   :  { %2175 = vrot.lane.b32.xlu1 %v3385_v1, %s4594_s22 }
0x14ff   :  { %v2176_v3 = vpop.permute.xlu1 %2175 }
0x1500   :  { %3386 = vst.msk [vmem:[%s5549_s20 + $0x10] sm:$0xff] %vm97_vm1, %v2176_v3  ;;  %4043 = vmatmul.mubr.msk.f32.vlgmr.msra.gmra.mrb[34].mxu0 %vm97_vm1, %v2176_v3  ;;  %v2715_v3 = vld [vmem:[%s5540_s11 + $0x10] sm:$0xff] }
0x1501   :  { %4401 = vmatpush3.bf16.msra.mxu0 %v5154_v50  ;;  %4064 = vmatprep.mubr.msk.f32.mxu0 %vm4592_vm0, %v4591_v8 }
0x1502   :  { %4402 = vmatprep.subr.bf16.mxu0 %v4590_v5 }
0x1505   :  { %4404 = vmatpush3.bf16.msra.mxu0 %v5180_v57 }
0x1506   :  { %4411 = vmatprep.subr.bf16.mxu0 %v4590_v5 }
0x15d3   :  { %v2248_v44 = vpop.f32.mrb[34].mxu0 }
0x15d4   :  { %v2249_v45 = vadd.f32 %v5201_v0, %v2248_v44  ;;  %v4044_v4 = vpop.f32.mrb[35].mxu0  ;;  %v2716_v44 = vld [vmem:[%s5540_s11 + $0x18] sm:$0xff] }
0x15d6   :  { %2259 = vrot.lane.b32.xlu0 %v2249_v45, %s4595_s4  ;;  %v3388_v6 = vmul.f32 -1.442695, %v2249_v45 }
0x15d8   :  { %4546 = vpow2.f32 %v3388_v6  ;;  %v2705_v6 = vld [vmem:[%s5549_s20] sm:$0xff] }
0x15e2   :  { %v4547_v7 = vpop.eup %4546 }
0x15e3   :  { %v2255_v9 = vadd.f32 1.0, %v4547_v7  ;;  %v2706_v7 = vld [vmem:[%s5549_s20 + $0x8] sm:$0xff] }
0x15e5   :  { %4548 = vrcp.f32 %v2255_v9  ;;  %v2707_v9 = vld [vmem:[%s5549_s20 + $0x10] sm:$0xff] }
0x15ef   :  { %v4549_v11 = vpop.eup %4548 }
0x15f0   :  { %v2269_v17 = vsub.f32 1.0, %v4549_v11  ;;  %v2275_v20 = vmul.f32 %v4549_v11, %v3385_v1 }
0x1648   :  { %v2260_v12 = vpop.permute.xlu0 %2259 }
0x1649   :  { %v2262_v13 = vmul.f32 %v4549_v11, %v2260_v12 }
0x164b   :  { %2264 = vrot.lane.b32.xlu1 %v2262_v13, %s4593_s27 }
0x16bd   :  { %v2265_v14 = vpop.permute.xlu1 %2264 }
0x16be   :  { %v2267_v15 = vadd.f32 %v2265_v14, %v2249_v45  ;;  %v4421_v45 = vpack.c.bf16 %v2716_v44, %v2715_v3 }
0x16c0   :  { %4550 = vtanh.f32 %v2267_v15 }
0x16ca   :  { %v4551_v16 = vpop.eup %4550 }
0x16cb   :  { %2271 = vrot.lane.b32.xlu0 %v4551_v16, %s4594_s22 }
0x173d   :  { %v2272_v18 = vpop.permute.xlu0 %2271 }
0x173e   :  { %v2274_v21 = vmul.f32 %v2272_v18, %v2269_v17  ;;  %v5338_v17 = vld [vmem:[%s5541_s12] ss:$0 sm:$0xff] }
0x1740   :  { %v2276_v22 = vadd.f32 %v2275_v20, %v2274_v21 }
0x1742   :  { %v3389_v24 = vclamps-f32 %v2276_v22, 5.0 }
0x1744   :  { %2280 = vrot.lane.b32.xlu1 %v3389_v24, %s4594_s22 }
0x17b6   :  { %v2281_v25 = vpop.permute.xlu1 %2280 }
0x17b7   :  { %3390 = vst.msk [vmem:[%s5549_s20 + $0x18] sm:$0xff] %vm97_vm1, %v2281_v25  ;;  %4054 = vmatmul.mubr.msk.f32.vlgmr.msra.gmra.mrb[22].mxu1 %vm97_vm1, %v2281_v25 }
0x17b8   :  { %4407 = vmatpush3.bf16.msra.mxu1 %v5154_v50  ;;  %4075 = vmatprep.mubr.msk.f32.mxu1 %vm4592_vm0, %v4591_v8 }
0x17b9   :  { %4408 = vmatprep.subr.bf16.mxu1 %v4590_v5 }
0x17bc   :  { %4410 = vmatpush3.bf16.msra.mxu1 %v5180_v57 }
0x17be   :  { %v2708_v11 = vld [vmem:[%s5549_s20 + $0x18] sm:$0xff] }
0x188a   :  { %v2353_v28 = vpop.f32.mrb[22].mxu1 }
0x188b   :  { %v2354_v30 = vadd.f32 %v5201_v0, %v2353_v28  ;;  %v4055_v31 = vpop.f32.mrb[23].mxu1 }
0x188d   :  { %2364 = vrot.lane.b32.xlu0 %v2354_v30, %s4595_s4  ;;  %v3392_v33 = vmul.f32 -1.442695, %v2354_v30 }
0x188f   :  { %4552 = vpow2.f32 %v3392_v33 }
0x1899   :  { %v4553_v34 = vpop.eup %4552 }
0x189a   :  { %v2360_v36 = vadd.f32 1.0, %v4553_v34 }
0x189c   :  { %4554 = vrcp.f32 %v2360_v36 }
0x18a6   :  { %v4555_v37 = vpop.eup %4554 }
0x18a7   :  { %v2374_v46 = vsub.f32 1.0, %v4555_v37  ;;  %v2380_v48 = vmul.f32 %v4555_v37, %v3389_v24 }
0x18ff   :  { %v2365_v39 = vpop.permute.xlu0 %2364 }
0x1900   :  { %v2367_v41 = vmul.f32 %v4555_v37, %v2365_v39 }
0x1902   :  { %2369 = vrot.lane.b32.xlu1 %v2367_v41, %s4593_s27 }
0x1974   :  { %v2370_v42 = vpop.permute.xlu1 %2369 }
0x1975   :  { %v2372_v43 = vadd.f32 %v2370_v42, %v2354_v30 }
0x1977   :  { %4556 = vtanh.f32 %v2372_v43 }
0x1981   :  { %v4557_v27 = vpop.eup %4556 }
0x1982   :  { %2376 = vrot.lane.b32.xlu0 %v4557_v27, %s4594_s22 }
0x19f4   :  { %v2377_v47 = vpop.permute.xlu0 %2376 }
0x19f5   :  { %v2379_v10 = vmul.f32 %v2377_v47, %v2374_v46 }
0x19f7   :  { %v2381_v19 = vadd.f32 %v2380_v48, %v2379_v10  ;;  %v2862_v10 = vld [vmem:[%s5542_s13] sm:$0xff] }
0x19f9   :  { %v3393_v29 = vclamps-f32 %v2381_v19, 5.0  ;;  %v2863_v19 = vld [vmem:[%s5542_s13 + $0x8] sm:$0xff] }
0x19fb   :  { %2385 = vrot.lane.b32.xlu1 %v3393_v29, %s4594_s22 }
0x1a6d   :  { %v2386_v32 = vpop.permute.xlu1 %2385 }
0x1a6e   :  { %3394 = vst.msk [vmem:[%s5549_s20 + $0x20] sm:$0xff] %vm97_vm1, %v2386_v32  ;;  %4065 = vmatmul.mubr.msk.f32.vlgmr.msra.gmra.mrb[36].mxu0 %vm97_vm1, %v2386_v32 }
0x1a6f   :  { %4413 = vmatpush3.bf16.msra.mxu0 %v5154_v50  ;;  %4086 = vmatprep.mubr.msk.f32.mxu0 %vm4592_vm0, %v4591_v8 }
0x1a70   :  { %4414 = vmatprep.subr.bf16.mxu0 %v4590_v5 }
0x1a73   :  { %4416 = vmatpush3.bf16.msra.mxu0 %v5180_v57  ;;  %v2713_v57 = vld [vmem:[%s5540_s11] sm:$0xff] }
0x1a74   :  { %v4417_v56 = vpack.c.bf16 %v2714_v55, %v2713_v57 }
0x1a75   :  { %v2709_v12 = vld [vmem:[%s5549_s20 + $0x20] sm:$0xff] }
0x1a76   :  { %4418 = vmatprep.subr.bf16.mxu1 %v4417_v56 }
0x1b41   :  { %v2458_v49 = vpop.f32.mrb[36].mxu0 }
0x1b42   :  { %v2459_v2 = vadd.f32 %v5201_v0, %v2458_v49  ;;  %v4066_v23 = vpop.f32.mrb[37].mxu0 }
0x1b44   :  { %2469 = vrot.lane.b32.xlu0 %v2459_v2, %s4595_s4  ;;  %v3396_v35 = vmul.f32 -1.442695, %v2459_v2 }
0x1b46   :  { %4558 = vpow2.f32 %v3396_v35 }
0x1b50   :  { %v4559_v51 = vpop.eup %4558 }
0x1b51   :  { %v2465_v26 = vadd.f32 1.0, %v4559_v51 }
0x1b53   :  { %4560 = vrcp.f32 %v2465_v26 }
0x1b5d   :  { %v4561_v52 = vpop.eup %4560 }
0x1b5e   :  { %v2479_v59 = vsub.f32 1.0, %v4561_v52  ;;  %v2485_v61 = vmul.f32 %v4561_v52, %v3393_v29  ;;  %v4425_v29 = vpack.c.bf16 %v2863_v19, %v2862_v10 }
0x1b60   :  { %4426 = vmatprep.subr.bf16.mxu0 %v4425_v29 }
0x1bb6   :  { %v2470_v50 = vpop.permute.xlu0 %2469 }
0x1bb7   :  { %v2472_v54 = vmul.f32 %v4561_v52, %v2470_v50 }
0x1bb9   :  { %2474 = vrot.lane.b32.xlu1 %v2472_v54, %s4593_s27 }
0x1c2b   :  { %v2475_v8 = vpop.permute.xlu1 %2474 }
0x1c2c   :  { %v2477_v5 = vadd.f32 %v2475_v8, %v2459_v2 }
0x1c2e   :  { %4562 = vtanh.f32 %v2477_v5 }
0x1c38   :  { %v4563_v58 = vpop.eup %4562 }
0x1c39   :  { %2481 = vrot.lane.b32.xlu0 %v4563_v58, %s4594_s22 }
0x1cab   :  { %v2482_v60 = vpop.permute.xlu0 %2481 }
0x1cac   :  { %v2484_v62 = vmul.f32 %v2482_v60, %v2479_v59 }
0x1cae   :  { %v5292_v63 = vadd.f32 %v2485_v61, %v2484_v62 }
0x1cb0   :  { %v3397_v1 = vclamps-f32 %v5292_v63, 5.0 }
0x1cb2   :  { %2490 = vrot.lane.b32.xlu1 %v3397_v1, %s4594_s22 }
0x1d24   :  { %v2491_v4 = vpop.permute.xlu1 %2490 }
0x1d25   :  { %3398 = vst.msk [vmem:[%s5549_s20 + $0x28] sm:$0xff] %vm97_vm1, %v2491_v4  ;;  %4076 = vmatmul.mubr.msk.f32.vlgmr.msra.gmra.mrb[24].mxu1 %vm97_vm1, %v2491_v4  ;;  %v1821_v4 = vmul.f32 %v5163_v38, %v5163_v38  ;;  %v1817_v38 = vsub.f32 -2.3025851, %v5166_v53 }
0x1d26   :  { %4420 = vmatpush3.bf16.msra.mxu1 %v4417_v56  ;;  %4097 = vmatprep.mubr.msk.f32.mxu1 %vm97_vm1, %v2705_v6  ;;  %v1819_v6 = vmul.f32 1.442695, %v5166_v53 }
0x1d27   :  { %4422 = vmatprep.subr.bf16.mxu1 %v4421_v45 }
0x1d2a   :  { %4424 = vmatpush3.bf16.msra.mxu1 %v4421_v45 }
0x1d2c   :  { %v2710_v13 = vld [vmem:[%s5549_s20 + $0x28] sm:$0xff] }
0x1d2d   :  { %4098 = vmatmul.mubr.msk.f32.vlgmr.msra.gmra.mrb[26].mxu1 %vm97_vm1, %v2706_v7 }
0x1d2e   :  { %4100 = vmatprep.mubr.msk.f32.mxu1 %vm97_vm1, %v2707_v9 }
0x1d31   :  { %4101 = vmatmul.mubr.msk.f32.gmra.mrb[28].mxu1 %vm97_vm1, %v2708_v11  ;;  %v3008_v11 = vld [vmem:[%s5544_s15] sm:$0xff] }
0x1d32   :  { %4103 = vmatprep.mubr.msk.f32.mxu1 %vm97_vm1, %v2709_v12  ;;  %v3009_v12 = vld [vmem:[%s5544_s15 + $0x8] sm:$0xff] }
0x1d35   :  { %4104 = vmatmul.mubr.msk.f32.gmra.mrb[30].mxu1 %vm97_vm1, %v2710_v13 }
0x1df8   :  { %v2563_v14 = vpop.f32.mrb[24].mxu1 }
0x1df9   :  { %v2564_v15 = vadd.f32 %v5201_v0, %v2563_v14  ;;  %v4077_v16 = vpop.f32.mrb[25].mxu1 }
0x1dfb   :  { %2574 = vrot.lane.b32.xlu0 %v2564_v15, %s4595_s4  ;;  %v3400_v37 = vmul.f32 -1.442695, %v2564_v15 }
0x1dfd   :  { %4564 = vpow2.f32 %v3400_v37 }
0x1e00   :  { %v4099_v18 = vpop.f32.mrb[26].mxu1 }
0x1e01   :  { %v2820_v20 = vadd.f32 %v4099_v18, %v5338_v17  ;;  %v2814_v21 = vpop.f32.mrb[27].mxu1 }
0x1e02   :  { %v2815_v22 = vadd.f32 %v5338_v17, %v2814_v21 }
0x1e03   :  { %2855 = vst.msk [vmem:[%s5548_s19 + $0x8] sm:$0xff] %vm2853_vm3, %v2820_v20 }
0x1e04   :  { %2854 = vst.msk [vmem:[%s5548_s19] sm:$0xff] %vm2853_vm3, %v2815_v22  ;;  %v4102_v24 = vpop.f32.mrb[28].mxu1 }
0x1e05   :  { %v2830_v25 = vadd.f32 %v4102_v24, %v5338_v17  ;;  %v2824_v28 = vpop.f32.mrb[29].mxu1  ;;  %v1818_v24 = vmul.f32 0.5, %v1817_v38 }
0x1e06   :  { %v2825_v30 = vadd.f32 %v5338_v17, %v2824_v28 }
0x1e07   :  { %2857 = vst.msk [vmem:[%s5548_s19 + $0x18] sm:$0xff] %vm2853_vm3, %v2830_v25  ;;  %v4565_v39 = vpop.eup %4564 }
0x1e08   :  { %2856 = vst.msk [vmem:[%s5548_s19 + $0x10] sm:$0xff] %vm2853_vm3, %v2825_v30  ;;  %v4105_v31 = vpop.f32.mrb[30].mxu1  ;;  %v2570_v41 = vadd.f32 1.0, %v4565_v39 }
0x1e09   :  { %v2840_v33 = vadd.f32 %v4105_v31, %v5338_v17  ;;  %v2834_v34 = vpop.f32.mrb[31].mxu1 }
0x1e0a   :  { %v2835_v36 = vadd.f32 %v5338_v17, %v2834_v34  ;;  %4566 = vrcp.f32 %v2570_v41  ;;  %v5421_v34 = vld [vmem:[%s5543_s14] ss:$0 sm:$0xff] }
0x1e0b   :  { %2859 = vst.msk [vmem:[%s5548_s19 + $0x28] sm:$0xff] %vm2853_vm3, %v2840_v33 }
0x1e0c   :  { %2858 = vst.msk [vmem:[%s5548_s19 + $0x20] sm:$0xff] %vm2853_vm3, %v2835_v36 }
0x1e14   :  { %v4567_v42 = vpop.eup %4566 }
0x1e15   :  { %v2584_v32 = vsub.f32 1.0, %v4567_v42  ;;  %v2590_v2 = vmul.f32 %v4567_v42, %v3397_v1 }
0x1e6d   :  { %v2575_v43 = vpop.permute.xlu0 %2574 }
0x1e6e   :  { %v2577_v27 = vmul.f32 %v4567_v42, %v2575_v43 }
0x1e70   :  { %2579 = vrot.lane.b32.xlu1 %v2577_v27, %s4593_s27 }
0x1ee2   :  { %v2580_v46 = vpop.permute.xlu1 %2579 }
0x1ee3   :  { %v2582_v47 = vadd.f32 %v2580_v46, %v2564_v15  ;;  %v4429_v15 = vpack.c.bf16 %v3009_v12, %v3008_v11 }
0x1ee5   :  { %4568 = vtanh.f32 %v2582_v47  ;;  %4430 = vmatprep.subr.bf16.mxu1 %v4429_v15 }
0x1ee6   :  { %4432 = vmatpush3.bf16.msra.mxu1 %v4429_v15 }
0x1eef   :  { %v4569_v48 = vpop.eup %4568 }
0x1ef0   :  { %2586 = vrot.lane.b32.xlu0 %v4569_v48, %s4594_s22 }
0x1f62   :  { %v2587_v49 = vpop.permute.xlu0 %2586 }
0x1f63   :  { %v2589_v23 = vmul.f32 %v2587_v49, %v2584_v32  ;;  %v3154_v49 = vld [vmem:[%s5546_s17] sm:$0xff] }
0x1f65   :  { %v2591_v35 = vadd.f32 %v2590_v2, %v2589_v23  ;;  %v3155_v2 = vld [vmem:[%s5546_s17 + $0x8] sm:$0xff] }
0x1f66   :  { %v4433_v23 = vpack.c.bf16 %v3155_v2, %v3154_v49 }
0x1f67   :  { %v3401_v51 = vclamps-f32 %v2591_v35, 5.0 }
0x1f69   :  { %2595 = vrot.lane.b32.xlu1 %v3401_v51, %s4594_s22 }
0x1fdb   :  { %v2596_v26 = vpop.permute.xlu1 %2595 }
0x1fdc   :  { %3402 = vst.msk [vmem:[%s5549_s20 + $0x30] sm:$0xff] %vm97_vm1, %v2596_v26  ;;  %4087 = vmatmul.mubr.msk.f32.vlgmr.msra.gmra.mrb[38].mxu0 %vm97_vm1, %v2596_v26 }
0x1fdd   :  { %4428 = vmatpush3.bf16.msra.mxu0 %v4425_v29  ;;  %4113 = vmatprep.mubr.msk.f32.mxu0 %vm2853_vm3, %v2815_v22 }
0x1fde   :  { %4434 = vmatprep.subr.bf16.mxu0 %v4433_v23 }
0x1fe0   :  { %4114 = vmatmul.mubr.msk.f32.vlgmr.msra.gmra.mrb[40].mxu0 %vm2853_vm3, %v2820_v20 }
0x1fe1   :  { %4116 = vmatprep.mubr.msk.f32.mxu0 %vm2853_vm3, %v2825_v30  ;;  %4436 = vmatpush3.bf16.msra.mxu0 %v4433_v23 }
0x1fe3   :  { %v2711_v52 = vld [vmem:[%s5549_s20 + $0x30] sm:$0xff] }
0x1fe4   :  { %4106 = vmatprep.mubr.msk.f32.mxu1 %vm97_vm1, %v2711_v52  ;;  %4117 = vmatmul.mubr.msk.f32.gmra.mrb[42].mxu0 %vm2853_vm3, %v2830_v25 }
0x1fe5   :  { %4119 = vmatprep.mubr.msk.f32.mxu0 %vm2853_vm3, %v2835_v36 }
0x1fe8   :  { %4120 = vmatmul.mubr.msk.f32.gmra.mrb[44].mxu0 %vm2853_vm3, %v2840_v33 }
0x20af   :  { %v2668_v50 = vpop.f32.mrb[38].mxu0 }
0x20b0   :  { %v2669_v54 = vadd.f32 %v5201_v0, %v2668_v50  ;;  %v4088_v8 = vpop.f32.mrb[39].mxu0 }
0x20b2   :  { %2679 = vrot.lane.b32.xlu0 %v2669_v54, %s4595_s4  ;;  %v3404_v60 = vmul.f32 -1.442695, %v2669_v54 }
0x20b3   :  { %v4115_v5 = vpop.f32.mrb[40].mxu0 }
0x20b4   :  { %v2961_v57 = vpop.f32.mrb[41].mxu0  ;;  %4570 = vpow2.f32 %v3404_v60  ;;  %v2967_v36 = vadd.f32 %v4115_v5, %v5421_v34 }
0x20b5   :  { %v2962_v40 = vadd.f32 %v5421_v34, %v2961_v57 }
0x20b6   :  { %v3001_v43 = vmax.f32 %v2967_v36, 0.0 }
0x20b7   :  { %v4118_v55 = vpop.f32.mrb[42].mxu0  ;;  %v3000_v39 = vmax.f32 %v2962_v40, 0.0 }
0x20b8   :  { %v2971_v56 = vpop.f32.mrb[43].mxu0  ;;  %v2977_v27 = vadd.f32 %v4118_v55, %v5421_v34 }
0x20b9   :  { %v2972_v41 = vadd.f32 %v5421_v34, %v2971_v56 }
0x20ba   :  { %v3003_v10 = vmax.f32 %v2977_v27, 0.0 }
0x20bb   :  { %v5398_v58 = vpop.f32.mrb[44].mxu0  ;;  %v3002_v47 = vmax.f32 %v2972_v41, 0.0 }
0x20bc   :  { %v2981_v59 = vpop.f32.mrb[45].mxu0  ;;  %v2987_v19 = vadd.f32 %v5398_v58, %v5421_v34  ;;  %v3425_v58 = vld [vmem:[%s5545_s16] ss:$0 sm:$0xff] }
0x20bd   :  { %v2982_v48 = vadd.f32 %v5421_v34, %v2981_v59 }
0x20be   :  { %v4571_v61 = vpop.eup %4570  ;;  %v3005_v32 = vmax.f32 %v2987_v19, 0.0 }
0x20bf   :  { %v2675_v62 = vadd.f32 1.0, %v4571_v61  ;;  %v3004_v29 = vmax.f32 %v2982_v48, 0.0 }
0x20c1   :  { %4572 = vrcp.f32 %v2675_v62 }
0x20cb   :  { %v4573_v63 = vpop.eup %4572 }
0x20cc   :  { %v2689_v7 = vsub.f32 1.0, %v4573_v63  ;;  %v2695_v13 = vmul.f32 %v4573_v63, %v3401_v51 }
0x2124   :  { %v2680_v1 = vpop.permute.xlu0 %2679 }
0x2125   :  { %v2682_v3 = vmul.f32 %v4573_v63, %v2680_v1 }
0x2127   :  { %2684 = vrot.lane.b32.xlu1 %v2682_v3, %s4593_s27 }
0x2199   :  { %v2685_v0 = vpop.permute.xlu1 %2684 }
0x219a   :  { %v2687_v44 = vadd.f32 %v2685_v0, %v2669_v54 }
0x219c   :  { %4574 = vtanh.f32 %v2687_v44 }
0x219d   :  { %4576 = vpow2.f32 %v1819_v6 }
0x21a6   :  { %v4575_v45 = vpop.eup %4574 }
0x21a7   :  { %2691 = vrot.lane.b32.xlu0 %v4575_v45, %s4594_s22  ;;  %v4577_v18 = vpop.eup %4576 }
0x21ab   :  { %1823 = vrot.lane.b32.xlu0 %v1821_v4, %s4595_s4 }
0x2219   :  { %v2692_v9 = vpop.permute.xlu0 %2691 }
0x221a   :  { %v2694_v14 = vmul.f32 %v2692_v9, %v2689_v7 }
0x221c   :  { %v2696_v16 = vadd.f32 %v2695_v13, %v2694_v14 }
0x221d   :  { %v1824_v20 = vpop.permute.xlu0 %1823 }
0x221e   :  { %v3405_v21 = vclamps-f32 %v2696_v16, 5.0  ;;  %v1826_v22 = vadd.f32 %v4577_v18, %v1824_v20  ;;  %v3434_v20 = vld [vmem:[%s5547_s18] ss:$0 sm:$0xff] }
0x2220   :  { %v1827_v25 = vmul.f32 5.0, %v1826_v22  ;;  %2700 = vrot.lane.b32.xlu1 %v3405_v21, %s4594_s22 }
0x2222   :  { %v1828_v28 = vadd.f32 %v1827_v25, %v1818_v24 }
0x2224   :  { %v3374_v30 = vadd.f32 -0.5, %v1828_v28 }
0x2226   :  { %v1833_v31 = vsel %vm1832_vm4, %v3374_v30, 0.0 }
0x2227   :  { %1835 = vrot.lane.b32.xlu1 %v1833_v31, %s4594_s22 }
0x222b   :  { %1803 = vrot.lane.b32.xlu1 %v5166_v53, %s4594_s22 }
0x2292   :  { %v2701_v33 = vpop.permute.xlu1 %2700 }
0x2293   :  { %3406 = vst.msk [vmem:[%s5549_s20 + $0x38] sm:$0xff] %vm97_vm1, %v2701_v33 }
0x2299   :  { %v1836_v37 = vpop.permute.xlu1 %1835 }
0x229a   :  { %v2712_v53 = vld [vmem:[%s5549_s20 + $0x38] sm:$0xff]  ;;  %v1838_v42 = vsel %vm97_vm1, %v1836_v37, 0.0 }
0x229b   :  { %4107 = vmatmul.mubr.msk.f32.gmra.mrb[32].mxu1 %vm97_vm1, %v2712_v53  ;;  %1839 = vadd.xlane.f32.xlu0 %v1838_v42 }
0x229c   :  { %4129 = vmatprep.mubr.msk.f32.mxu1 %vm2853_vm3, %v3000_v39 }
0x229d   :  { %v1804_v46 = vpop.permute.xlu1 %1803 }
0x229e   :  { %1806 = vst.msk [vmem:[%s5552_s23] sm:$0xff] %vm97_vm1, %v1804_v46 }
0x229f   :  { %4130 = vmatmul.mubr.msk.f32.vlgmr.msra.gmra.mrb[34].mxu1 %vm2853_vm3, %v3001_v43 }
0x22a0   :  { %4132 = vmatprep.mubr.msk.f32.mxu1 %vm2853_vm3, %v3002_v47 }
0x22a3   :  { %4133 = vmatmul.mubr.msk.f32.gmra.mrb[36].mxu1 %vm2853_vm3, %v3003_v10 }
0x22a4   :  { %4135 = vmatprep.mubr.msk.f32.mxu1 %vm2853_vm3, %v3004_v29 }
0x22a7   :  { %4136 = vmatmul.mubr.msk.f32.gmra.mrb[38].mxu1 %vm2853_vm3, %v3005_v32 }
0x2328   :  { %v1840_v35 = vpop.xlane.xlu0 %1839 }
0x2329   :  { %v1841_v51 = vrot.slane %v1840_v35, 4 }
0x232b   :  { %v1842_v26 = vadd.f32 %v1841_v51, %v1840_v35 }
0x232d   :  { %v1843_v52 = vrot.slane %v1842_v26, 2 }
0x232f   :  { %v1844_v50 = vadd.f32 %v1843_v52, %v1842_v26 }
0x2331   :  { %v1845_v54 = vrot.slane %v1844_v50, 1 }
0x2333   :  { %v1846_v8 = vadd.f32 %v1845_v54, %v1844_v50 }
0x2335   :  { %4437 = vpush %v1846_v8 }
0x2366   :  { %s4438_s30 = spop %4437 }
0x2367   :  { %s1848_s9 = smul.f32 0.25, %s4438_s30 }
0x2369   :  { %1850 = sst [smem:[#allocation5]] %s1848_s9 }
0x236e   :  { %v4108_v5 = vpop.f32.mrb[32].mxu1 }
0x236f   :  { %v2850_v57 = vadd.f32 %v4108_v5, %v5338_v17  ;;  %v2844_v55 = vpop.f32.mrb[33].mxu1 }
0x2370   :  { %v2845_v56 = vadd.f32 %v5338_v17, %v2844_v55 }
0x2371   :  { %2861 = vst.msk [vmem:[%s5548_s19 + $0x38] sm:$0xff] %vm2853_vm3, %v2850_v57 }
0x2372   :  { %2860 = vst.msk [vmem:[%s5548_s19 + $0x30] sm:$0xff] %vm2853_vm3, %v2845_v56  ;;  %4122 = vmatprep.mubr.msk.f32.mxu0 %vm2853_vm3, %v2845_v56  ;;  %v4131_v59 = vpop.f32.mrb[34].mxu1 }
0x2373   :  { %v3113_v60 = vadd.f32 %v4131_v59, %v3425_v58  ;;  %4123 = vmatmul.mubr.msk.f32.gmra.mrb[46].mxu0 %vm2853_vm3, %v2850_v57  ;;  %v3107_v17 = vpop.f32.mrb[35].mxu1 }
0x2374   :  { %v3108_v61 = vadd.f32 %v3425_v58, %v3107_v17 }
0x2375   :  { %v3147_v1 = vmax.f32 %v3113_v60, 0.0 }
0x2376   :  { %v3146_v62 = vmax.f32 %v3108_v61, 0.0  ;;  %v4134_v63 = vpop.f32.mrb[36].mxu1 }
0x2377   :  { %v3123_v3 = vadd.f32 %v4134_v63, %v3425_v58  ;;  %v3117_v0 = vpop.f32.mrb[37].mxu1 }
0x2378   :  { %v3118_v44 = vadd.f32 %v3425_v58, %v3117_v0  ;;  %4145 = vmatprep.mubr.msk.f32.mxu0 %vm2853_vm3, %v3146_v62 }
0x2379   :  { %4146 = vmatmul.mubr.msk.f32.vlgmr.msra.gmra.mrb[48].mxu0 %vm2853_vm3, %v3147_v1  ;;  %v3149_v6 = vmax.f32 %v3123_v3, 0.0 }
0x237a   :  { %v3148_v45 = vmax.f32 %v3118_v44, 0.0  ;;  %v4137_v4 = vpop.f32.mrb[38].mxu1 }
0x237b   :  { %v3133_v7 = vadd.f32 %v4137_v4, %v3425_v58  ;;  %v3127_v9 = vpop.f32.mrb[39].mxu1 }
0x237c   :  { %v3128_v11 = vadd.f32 %v3425_v58, %v3127_v9  ;;  %4148 = vmatprep.mubr.msk.f32.mxu0 %vm2853_vm3, %v3148_v45 }
0x237d   :  { %4149 = vmatmul.mubr.msk.f32.gmra.mrb[50].mxu0 %vm2853_vm3, %v3149_v6  ;;  %v3151_v13 = vmax.f32 %v3133_v7, 0.0 }
0x237e   :  { %v3150_v12 = vmax.f32 %v3128_v11, 0.0 }
0x2380   :  { %4151 = vmatprep.mubr.msk.f32.mxu0 %vm2853_vm3, %v3150_v12 }
0x2381   :  { %4152 = vmatmul.mubr.msk.f32.gmra.mrb[52].mxu0 %vm2853_vm3, %v3151_v13 }
0x2446   :  { %v4124_v14 = vpop.f32.mrb[46].mxu0 }
0x2447   :  { %v2997_v15 = vadd.f32 %v4124_v14, %v5421_v34  ;;  %v2991_v16 = vpop.f32.mrb[47].mxu0 }
0x2448   :  { %v2992_v38 = vadd.f32 %v5421_v34, %v2991_v16 }
0x2449   :  { %v3007_v21 = vmax.f32 %v2997_v15, 0.0 }
0x244a   :  { %v3006_v18 = vmax.f32 %v2992_v38, 0.0 }
0x244c   :  { %4138 = vmatprep.mubr.msk.f32.mxu1 %vm2853_vm3, %v3006_v18  ;;  %v4147_v22 = vpop.f32.mrb[48].mxu0 }
0x244d   :  { %v3259_v24 = vadd.f32 %v4147_v22, %v3434_v20  ;;  %4139 = vmatmul.mubr.msk.f32.gmra.mrb[40].mxu1 %vm2853_vm3, %v3007_v21  ;;  %v3253_v25 = vpop.f32.mrb[49].mxu0 }
0x244e   :  { %v3254_v28 = vadd.f32 %v3434_v20, %v3253_v25 }
0x244f   :  { %3293 = vst.msk [vmem:[%s5550_s21 + $0x8] sm:$0xff] %vm2853_vm3, %v3259_v24 }
0x2450   :  { %3292 = vst.msk [vmem:[%s5550_s21] sm:$0xff] %vm2853_vm3, %v3254_v28  ;;  %v4150_v30 = vpop.f32.mrb[50].mxu0 }
0x2451   :  { %v3269_v31 = vadd.f32 %v4150_v30, %v3434_v20  ;;  %v3263_v33 = vpop.f32.mrb[51].mxu0 }
0x2452   :  { %v3264_v34 = vadd.f32 %v3434_v20, %v3263_v33 }
0x2453   :  { %3295 = vst.msk [vmem:[%s5550_s21 + $0x18] sm:$0xff] %vm2853_vm3, %v3269_v31 }
0x2454   :  { %3294 = vst.msk [vmem:[%s5550_s21 + $0x10] sm:$0xff] %vm2853_vm3, %v3264_v34  ;;  %v4153_v40 = vpop.f32.mrb[52].mxu0 }
0x2455   :  { %v3279_v36 = vadd.f32 %v4153_v40, %v3434_v20  ;;  %v3273_v37 = vpop.f32.mrb[53].mxu0 }
0x2456   :  { %v3274_v39 = vadd.f32 %v3434_v20, %v3273_v37 }
0x2457   :  { %3297 = vst.msk [vmem:[%s5550_s21 + $0x28] sm:$0xff] %vm2853_vm3, %v3279_v36 }
0x2458   :  { %3296 = vst.msk [vmem:[%s5550_s21 + $0x20] sm:$0xff] %vm2853_vm3, %v3274_v39 }
0x2520   :  { %v4140_v41 = vpop.f32.mrb[40].mxu1 }
0x2521   :  { %v3143_v53 = vadd.f32 %v4140_v41, %v3425_v58  ;;  %v3137_v42 = vpop.f32.mrb[41].mxu1 }
0x2522   :  { %v3138_v43 = vadd.f32 %v3425_v58, %v3137_v42 }
0x2523   :  { %v3153_v46 = vmax.f32 %v3143_v53, 0.0 }
0x2524   :  { %v3152_v27 = vmax.f32 %v3138_v43, 0.0 }
0x2526   :  { %4154 = vmatprep.mubr.msk.f32.mxu0 %vm2853_vm3, %v3152_v27 }
0x2527   :  { %4155 = vmatmul.mubr.msk.f32.gmra.mrb[54].mxu0 %vm2853_vm3, %v3153_v46 }
0x2528   :  { %4587 = shalt.err (!%p4584_p2)
}
0x2529   :  { %s4596_s30 = smov [#allocation5]  }
0x252a   :  { %3317 = dma.smem_to_hbm %s4596_s30, 16, %s5553_s24, [#allocation6]  }
0x25fa   :  { %v4156_v47 = vpop.f32.mrb[54].mxu0 }
0x25fb   :  { %v3289_v48 = vadd.f32 %v4156_v47, %v3434_v20  ;;  %v3283_v10 = vpop.f32.mrb[55].mxu0 }
0x25fc   :  { %v3284_v19 = vadd.f32 %v3434_v20, %v3283_v10 }
0x25fd   :  { %3299 = vst.msk [vmem:[%s5550_s21 + $0x38] sm:$0xff] %vm2853_vm3, %v3289_v48 }
0x25fe   :  { %3298 = vst.msk [vmem:[%s5550_s21 + $0x30] sm:$0xff] %vm2853_vm3, %v3284_v19 }
0x25ff   :  { %4588 = dma.done.wait [#allocation6], 16  }
0x2600   :  { %4589 = vsyncadd [#allocation6], 4294967280 }
0x2601   :  { %3331 = sfence }
0x2602   :  { %3332 = vsyncpa [#allocation6], 1 }

</bundles_post_ra>
